<compile_context>
chip_gen: v6e
topology: v6e:2x2x1
jax: 0.10.0
libtpu: 0.0.40
codegen_flags: <defaults>
</compile_context>

<pallas_src>
import functools

import jax
import jax.numpy as jnp
from jax import lax
from jax.experimental import pallas as pl
from jax.experimental.pallas import tpu as pltpu


def _boundary_kernel(pred_ref, gt_ref, out_ref, mp_pad, wt_pad, *,
                     C, H, W, S, theta0, theta, pf_mp, pf_avg):
    f32 = jnp.float32
    neg = f32(-jnp.inf)
    eps = 1e-7

    pred = pred_ref[0]      # (C, S)  raw logits, flattened spatial
    gt_row = gt_ref[0]      # (1, S)  float class map, flattened spatial

    # NOTE: the reference computes torch.softmax(pred, dim=1) but only uses its
    # .size(); it has no effect on the output, so it is not computed here.

    # ------------------------------------------------------------------
    # Pad-region-only init (once per grid step).  Interiors are always
    # overwritten before being read, so no full-buffer fills are needed.
    # ------------------------------------------------------------------
    if pf_mp > 0:
        mp_pad[:, 0:pf_mp] = jnp.full((C, pf_mp), neg, f32)
        mp_pad[:, pf_mp + S:] = jnp.full((C, pf_mp), neg, f32)
    wt_pad[:, 0:pf_avg] = jnp.zeros((1, pf_avg), f32)
    wt_pad[:, pf_avg + S:] = jnp.zeros((1, pf_avg), f32)

    # Column (lane) indices + per-dx column-validity masks, built once and
    # reused by every horizontal pooling pass.
    col1 = lax.broadcasted_iota(jnp.int32, (1, S), 1) % W
    colC = lax.broadcasted_iota(jnp.int32, (C, S), 1) % W
    p_max = max((theta0 - 1) // 2, (theta - 1) // 2)
    col_masks = {}
    for dx in range(-p_max, p_max + 1):
        if dx == 0 or abs(dx) >= W:
            continue
        col_masks[dx] = jnp.logical_and(colC + dx >= 0, colC + dx < W)

    # ------------------------------------------------------------------
    # weit = 1 + 5 * |avg_pool2d(gt, k=31, stride=1, pad=15) - gt|
    # (zero padding, divisor 31*31 = count_include_pad=True), separable box
    # sum on the zero-padded flat layout.
    # TODO(synk): dyadic shift-and-add tree and (H, W) sublane-dense repack for
    # this 31-tap box filter (review items 2 & 4) are not implemented yet.
    # ------------------------------------------------------------------
    wt_pad[:, pf_avg:pf_avg + S] = gt_row
    racc = jnp.zeros((1, S), f32)
    for dy in range(-15, 16):                  # vertical pass (whole-row shifts)
        if abs(dy) >= H:
            continue                           # contributes exactly 0 (zero pad)
        off = pf_avg + dy * W
        racc = racc + wt_pad[:, off:off + S]
    wt_pad[:, pf_avg:pf_avg + S] = racc
    box = jnp.zeros((1, S), f32)
    for dx in range(-15, 16):                  # horizontal pass (masked shifts)
        if abs(dx) >= W:
            continue                           # contributes exactly 0
        off = pf_avg + dx
        cand = wt_pad[:, off:off + S]
        valid = jnp.logical_and(col1 + dx >= 0, col1 + dx < W)
        box = box + jnp.where(valid, cand, 0.0)
    weit_row = 1.0 + 5.0 * jnp.abs(box / 961.0 - gt_row)          # (1, S)

    # ------------------------------------------------------------------
    # one-hot ground truth: scatter of clamp(gt, 0, C-1) (trunc-to-int)
    # ------------------------------------------------------------------
    cls = jnp.clip(gt_row, 0.0, f32(C - 1)).astype(jnp.int32)      # (1, S)
    ch = lax.broadcasted_iota(jnp.int32, (C, S), 0)
    one_hot = (ch == cls).astype(f32)                              # (C, S)

    # ------------------------------------------------------------------
    # Separable F.max_pool2d(x, k, stride=1, padding=(k-1)//2) on the flat
    # layout: vertical max (row shifts, -inf pads = PyTorch implicit padding),
    # then horizontal max with column-validity masks.  The dy=0 / dx=0 center
    # taps guarantee no -inf leaks into in-image pixels.
    # ------------------------------------------------------------------
    def maxpool(x, k):
        p = (k - 1) // 2
        mp_pad[:, pf_mp:pf_mp + S] = x
        vacc = None
        for dy in range(-p, p + 1):            # vertical pass
            if abs(dy) >= H:
                continue                       # whole row out of image -> -inf
            off = pf_mp + dy * W
            cand = mp_pad[:, off:off + S]
            vacc = cand if vacc is None else jnp.maximum(vacc, cand)
        mp_pad[:, pf_mp:pf_mp + S] = vacc      # reuse the same interior
        acc = None
        for dx in range(-p, p + 1):            # horizontal pass (masked)
            if abs(dx) >= W:
                continue                       # whole column out of image
            off = pf_mp + dx
            cand = mp_pad[:, off:off + S]
            if dx != 0:
                cand = jnp.where(col_masks[dx], cand, neg)
            acc = cand if acc is None else jnp.maximum(acc, cand)
        return acc

    inv_oh = 1.0 - one_hot
    gt_b = maxpool(inv_oh, theta0) - inv_oh
    inv_pred = 1.0 - pred
    pred_b = maxpool(inv_pred, theta0) - inv_pred      # raw logits, as in the reference
    gt_b_ext = maxpool(gt_b, theta)
    pred_b_ext = maxpool(pred_b, theta)

    # ------------------------------------------------------------------
    # Lane-axis reductions on the MXU:  red(v, x)[0, c] = sum_s v[0,s]*x[c,s].
    # Results stay lane-major as (1, C) rows, which also removes the old
    # O(C^2) diagonal trick used to build a (C, 1) weit column:
    #   - C == 1   : weit weights every pixel   -> fold weit into the dot.
    #   - C == H*W : weit.view(n, c, -1) is a per-channel scalar weit_flat[c]
    #                -> hoist it out of the sum, multiply the (1, C) row.
    # ------------------------------------------------------------------
    ones8 = jnp.ones((8, S), f32)

    def red(v8, x):                       # (8,S) . (C,S)^T -> keep row 0: (1,C)
        r = lax.dot_general(v8, x, (((1,), (1,)), ((), ())),
                            preferred_element_type=jnp.float32)
        return r[0:1, :]

    if C == 1:
        weit8 = jnp.broadcast_to(weit_row, (8, S))
        num_P = red(weit8, pred_b * gt_b_ext)
        num_R = red(weit8, pred_b_ext * gt_b)
    else:  # C == S: weit_row (1, S) == per-channel (1, C) scalars
        num_P = weit_row * red(ones8, pred_b * gt_b_ext)
        num_R = weit_row * red(ones8, pred_b_ext * gt_b)
    den_P = red(ones8, pred_b)
    den_R = red(ones8, gt_b)

    P = num_P / (den_P + eps)
    R = num_R / (den_R + eps)
    BF1 = 2.0 * P * R / (P + R + eps)
    out_ref[0] = 1.0 - BF1                                         # (1, C)


def boundary_loss_pallas(pred, gt, theta0=3, theta=5):
    """pred: (N, C, H, W) logits; gt: (N, H, W) float class map. Returns scalar loss."""
    N, C, H, W = pred.shape
    assert gt.shape == (N, H, W), "gt must be (N, H, W)"
    # crop(): identity when gt spatial size == pred spatial size (offsets are 0).
    # TODO(synk): crop path for mismatched gt/pred spatial sizes not implemented.
    S = H * W
    if S % C != 0:
        raise ValueError("weit.view(n, c, -1) requires H*W divisible by C (as in the reference)")
    m = S // C
    if m not in (1, S):
        raise ValueError("weit.view(n, c, -1) only broadcasts when C == 1 or C == H*W "
                         "(the PyTorch reference errors otherwise)")

    pred_f = pred.reshape(N, C, S).astype(jnp.float32)
    gt_row = gt.reshape(N, 1, S).astype(jnp.float32)

    p_max = max((theta0 - 1) // 2, (theta - 1) // 2)
    pf_mp = p_max * W + p_max          # -inf pad length (flat) for the max pools
    pf_avg = 15 * W + 15               # zero pad length (flat) for the 31x31 avg pool

    kernel = functools.partial(_boundary_kernel, C=C, H=H, W=W, S=S,
                               theta0=theta0, theta=theta, pf_mp=pf_mp, pf_avg=pf_avg)

    # Scoped-VMEM budget: double-buffered input blocks + scratch + ~10 live
    # (C, S) f32 temporaries with headroom; clamped so it stays legal on
    # v7x (64 MiB physical) while raising the 16/32 MiB defaults on v5e/v6e.
    need = 4 * (2 * 2 * (C * S + S)                 # double-buffered in/out blocks
                + C * (S + 2 * pf_mp)               # -inf padded max-pool scratch
                + (S + 2 * pf_avg)                  # zero padded avg-pool scratch
                + 10 * C * S) + (1 << 20)           # live (C, S) temporaries + slack
    vmem_limit = int(min(max(need, 32 * 1024 * 1024), 48 * 1024 * 1024))

    one_minus_bf1 = pl.pallas_call(
        kernel,
        out_shape=jax.ShapeDtypeStruct((N, 1, C), jnp.float32),
        grid_spec=pltpu.PrefetchScalarGridSpec(
            num_scalar_prefetch=0,
            grid=(N,),
            in_specs=[
                pl.BlockSpec((1, C, S), lambda n: (n, 0, 0)),
                pl.BlockSpec((1, 1, S), lambda n: (n, 0, 0)),
            ],
            out_specs=pl.BlockSpec((1, 1, C), lambda n: (n, 0, 0)),
            scratch_shapes=[
                pltpu.VMEM((C, S + 2 * pf_mp), jnp.float32),   # -inf padded max-pool scratch
                pltpu.VMEM((1, S + 2 * pf_avg), jnp.float32),  # zero padded avg-pool scratch
            ],
        ),
        compiler_params=pltpu.CompilerParams(
            dimension_semantics=("parallel",),
            vmem_limit_bytes=vmem_limit,
        ),
    )(pred_f, gt_row)

    return jnp.mean(one_minus_bf1)


def boundary_loss_reference(pred, gt, theta0=3, theta=5):
    """Pure-JAX (XLA) re-implementation of the PyTorch forward, used for validation."""
    N, C, H, W = pred.shape
    ones = (1, 1, 1, 1)
    gt4 = gt[:, None, :, :]
    box = lax.reduce_window(gt4, jnp.float32(0.0), lax.add, (1, 1, 31, 31), ones,
                            [(0, 0), (0, 0), (15, 15), (15, 15)])
    weit = 1.0 + 5.0 * jnp.abs(box / 961.0 - gt4)

    def maxpool(x, k):
        p = (k - 1) // 2
        return lax.reduce_window(x, jnp.float32(-jnp.inf), lax.max, (1, 1, k, k), ones,
                                 [(0, 0), (0, 0), (p, p), (p, p)])

    cls = jnp.clip(gt, 0.0, C - 1).astype(jnp.int32)
    one_hot = (jnp.arange(C)[None, :, None, None] == cls[:, None, :, :]).astype(jnp.float32)
    gt_b = maxpool(1.0 - one_hot, theta0) - (1.0 - one_hot)
    pred_b = maxpool(1.0 - pred, theta0) - (1.0 - pred)
    gt_b_ext = maxpool(gt_b, theta)
    pred_b_ext = maxpool(pred_b, theta)
    gt_b = gt_b.reshape(N, C, -1)
    pred_b = pred_b.reshape(N, C, -1)
    gt_b_ext = gt_b_ext.reshape(N, C, -1)
    pred_b_ext = pred_b_ext.reshape(N, C, -1)
    weit_v = weit.reshape(N, C, -1)
    P = jnp.sum(pred_b * gt_b_ext * weit_v, axis=2) / (jnp.sum(pred_b, axis=2) + 1e-7)
    R = jnp.sum(pred_b_ext * gt_b * weit_v, axis=2) / (jnp.sum(gt_b, axis=2) + 1e-7)
    BF1 = 2.0 * P * R / (P + R + 1e-7)
    return jnp.mean(1.0 - BF1)


if __name__ == "__main__":
    key = jax.random.PRNGKey(0)
    kp, kg = jax.random.split(key)
    # C == H*W so that the reference's `weit.view(n, c, -1)` broadcast is valid
    # (the PyTorch code raises for any other C != 1).
    N, C, H, W = 2, 64, 8, 8
    pred = jax.random.normal(kp, (N, C, H, W), dtype=jnp.float32)
    gt = jax.random.randint(kg, (N, H, W), 0, C).astype(jnp.float32)

    loss = jax.jit(boundary_loss_pallas)(pred, gt)
    loss = jax.block_until_ready(loss)

    ref = jax.block_until_ready(boundary_loss_reference(pred, gt))
    lf, rf = float(loss), float(ref)
    if not (jnp.isfinite(loss) and abs(lf - rf) <= 2e-4 * max(1.0, abs(rf))):
        raise AssertionError(f"mismatch: pallas={lf} ref={rf}")
    print("KERNEL_OK")
</pallas_src>

<mosaic_0001>
module attributes {stable_mosaic.version = 11 : i64} {
  func.func @_boundary_kernel(%arg0: i32, %arg1: memref<1x64x64xf32, #tpu.memory_space<vmem>>, %arg2: memref<1x1x64xf32, #tpu.memory_space<vmem>>, %arg3: memref<1x1x64xf32, #tpu.memory_space<vmem>>, %arg4: memref<64x100xf32, #tpu.memory_space<vmem>>, %arg5: memref<1x334xf32, #tpu.memory_space<vmem>>) attributes {dimension_semantics = [#tpu.dimension_semantics<parallel>], iteration_bounds = array<i64: 2>, scalar_prefetch = 0 : i64, scratch_operands = 2 : i64, tpu.core_type = #tpu.core_type<tc>, window_params = [{transform_indices = @transform_0, window_bounds = array<i64: 1, 64, 64>}, {transform_indices = @transform_1, window_bounds = array<i64: 1, 1, 64>}, {transform_indices = @transform_2, window_bounds = array<i64: 1, 1, 64>}]} {
    %c0 = arith.constant 0 : index
    %c0_0 = arith.constant 0 : index
    %c0_1 = arith.constant 0 : index
    %0 = vector.load %arg1[%c0, %c0_0, %c0_1] : memref<1x64x64xf32, #tpu.memory_space<vmem>>, vector<1x64x64xf32>
    %1 = vector.shape_cast %0 : vector<1x64x64xf32> to vector<64x64xf32>
    %c0_2 = arith.constant 0 : index
    %c0_3 = arith.constant 0 : index
    %c0_4 = arith.constant 0 : index
    %2 = vector.load %arg2[%c0_2, %c0_3, %c0_4] : memref<1x1x64xf32, #tpu.memory_space<vmem>>, vector<1x1x64xf32>
    %3 = vector.shape_cast %2 : vector<1x1x64xf32> to vector<1x64xf32>
    %cst = arith.constant 0xFF800000 : f32
    %4 = vector.broadcast %cst : f32 to vector<64x18xf32>
    %c0_5 = arith.constant 0 : index
    %c0_6 = arith.constant 0 : index
    %5 = vector.load %arg4[%c0_5, %c0_6] : memref<64x100xf32, #tpu.memory_space<vmem>>, vector<64x18xf32>
    tpu.vector_store %arg4[%c0_5, %c0_6], %4 {strides = array<i32>} : memref<64x100xf32, #tpu.memory_space<vmem>>, vector<64x18xf32>,
    %cst_7 = arith.constant 0xFF800000 : f32
    %6 = vector.broadcast %cst_7 : f32 to vector<64x18xf32>
    %c0_8 = arith.constant 0 : index
    %c82 = arith.constant 82 : index
    %7 = vector.load %arg4[%c0_8, %c82] : memref<64x100xf32, #tpu.memory_space<vmem>>, vector<64x18xf32>
    tpu.vector_store %arg4[%c0_8, %c82], %6 {strides = array<i32>} : memref<64x100xf32, #tpu.memory_space<vmem>>, vector<64x18xf32>,
    %cst_9 = arith.constant 0.000000e+00 : f32
    %8 = vector.broadcast %cst_9 : f32 to vector<1x135xf32>
    %c0_10 = arith.constant 0 : index
    %c0_11 = arith.constant 0 : index
    %9 = vector.load %arg5[%c0_10, %c0_11] : memref<1x334xf32, #tpu.memory_space<vmem>>, vector<1x135xf32>
    tpu.vector_store %arg5[%c0_10, %c0_11], %8 {strides = array<i32>} : memref<1x334xf32, #tpu.memory_space<vmem>>, vector<1x135xf32>,
    %cst_12 = arith.constant 0.000000e+00 : f32
    %10 = vector.broadcast %cst_12 : f32 to vector<1x135xf32>
    %c0_13 = arith.constant 0 : index
    %c199 = arith.constant 199 : index
    %11 = vector.load %arg5[%c0_13, %c199] : memref<1x334xf32, #tpu.memory_space<vmem>>, vector<1x135xf32>
    tpu.vector_store %arg5[%c0_13, %c199], %10 {strides = array<i32>} : memref<1x334xf32, #tpu.memory_space<vmem>>, vector<1x135xf32>,
    %12 = tpu.iota {dimensions = array<i32: 1>} : vector<1x64xi32>
    %c8_i32 = arith.constant 8 : i32
    %c0_i32 = arith.constant 0 : i32
    %13 = arith.cmpi eq, %c8_i32, %c0_i32 : i32
    %c1_i32 = arith.constant 1 : i32
    %14 = arith.select %13, %c1_i32, %c8_i32 : i32
    %15 = vector.broadcast %14 : i32 to vector<1x64xi32>
    %16 = arith.remsi %12, %15 : vector<1x64xi32>
    %c0_i32_14 = arith.constant 0 : i32
    %17 = vector.broadcast %c0_i32_14 : i32 to vector<1x64xi32>
    %18 = arith.cmpi ne, %16, %17 : vector<1x64xi32>
    %c0_i32_15 = arith.constant 0 : i32
    %19 = vector.broadcast %c0_i32_15 : i32 to vector<1x64xi32>
    %20 = arith.cmpi slt, %16, %19 : vector<1x64xi32>
    %c0_i32_16 = arith.constant 0 : i32
    %21 = arith.cmpi slt, %14, %c0_i32_16 : i32
    %22 = vector.broadcast %21 : i1 to vector<1x64xi1>
    %23 = vector.broadcast %22 : vector<1x64xi1> to vector<1x64xi1>
    %24 = arith.xori %20, %23 : vector<1x64xi1>
    %25 = arith.andi %24, %18 : vector<1x64xi1>
    %26 = vector.broadcast %14 : i32 to vector<1x64xi32>
    %27 = arith.addi %16, %26 : vector<1x64xi32>
    %28 = arith.select %25, %27, %16 : vector<1x64xi1>, vector<1x64xi32>
    %29 = tpu.iota {dimensions = array<i32: 1>} : vector<64x64xi32>
    %c8_i32_17 = arith.constant 8 : i32
    %c0_i32_18 = arith.constant 0 : i32
    %30 = arith.cmpi eq, %c8_i32_17, %c0_i32_18 : i32
    %c1_i32_19 = arith.constant 1 : i32
    %31 = arith.select %30, %c1_i32_19, %c8_i32_17 : i32
    %32 = vector.broadcast %31 : i32 to vector<64x64xi32>
    %33 = arith.remsi %29, %32 : vector<64x64xi32>
    %c0_i32_20 = arith.constant 0 : i32
    %34 = vector.broadcast %c0_i32_20 : i32 to vector<64x64xi32>
    %35 = arith.cmpi ne, %33, %34 : vector<64x64xi32>
    %c0_i32_21 = arith.constant 0 : i32
    %36 = vector.broadcast %c0_i32_21 : i32 to vector<64x64xi32>
    %37 = arith.cmpi slt, %33, %36 : vector<64x64xi32>
    %c0_i32_22 = arith.constant 0 : i32
    %38 = arith.cmpi slt, %31, %c0_i32_22 : i32
    %39 = vector.broadcast %38 : i1 to vector<64x64xi1>
    %40 = vector.broadcast %39 : vector<64x64xi1> to vector<64x64xi1>
    %41 = arith.xori %37, %40 : vector<64x64xi1>
    %42 = arith.andi %41, %35 : vector<64x64xi1>
    %43 = vector.broadcast %31 : i32 to vector<64x64xi32>
    %44 = arith.addi %33, %43 : vector<64x64xi32>
    %45 = arith.select %42, %44, %33 : vector<64x64xi1>, vector<64x64xi32>
    %c-2_i32 = arith.constant -2 : i32
    %46 = vector.broadcast %c-2_i32 : i32 to vector<64x64xi32>
    %47 = arith.addi %45, %46 : vector<64x64xi32>
    %c0_i32_23 = arith.constant 0 : i32
    %48 = vector.broadcast %c0_i32_23 : i32 to vector<64x64xi32>
    %49 = arith.cmpi sge, %47, %48 : vector<64x64xi32>
    %c-2_i32_24 = arith.constant -2 : i32
    %50 = vector.broadcast %c-2_i32_24 : i32 to vector<64x64xi32>
    %51 = arith.addi %45, %50 : vector<64x64xi32>
    %c8_i32_25 = arith.constant 8 : i32
    %52 = vector.broadcast %c8_i32_25 : i32 to vector<64x64xi32>
    %53 = arith.cmpi slt, %51, %52 : vector<64x64xi32>
    %54 = arith.andi %49, %53 : vector<64x64xi1>
    %c-1_i32 = arith.constant -1 : i32
    %55 = vector.broadcast %c-1_i32 : i32 to vector<64x64xi32>
    %56 = arith.addi %45, %55 : vector<64x64xi32>
    %c0_i32_26 = arith.constant 0 : i32
    %57 = vector.broadcast %c0_i32_26 : i32 to vector<64x64xi32>
    %58 = arith.cmpi sge, %56, %57 : vector<64x64xi32>
    %c-1_i32_27 = arith.constant -1 : i32
    %59 = vector.broadcast %c-1_i32_27 : i32 to vector<64x64xi32>
    %60 = arith.addi %45, %59 : vector<64x64xi32>
    %c8_i32_28 = arith.constant 8 : i32
    %61 = vector.broadcast %c8_i32_28 : i32 to vector<64x64xi32>
    %62 = arith.cmpi slt, %60, %61 : vector<64x64xi32>
    %63 = arith.andi %58, %62 : vector<64x64xi1>
    %c1_i32_29 = arith.constant 1 : i32
    %64 = vector.broadcast %c1_i32_29 : i32 to vector<64x64xi32>
    %65 = arith.addi %45, %64 : vector<64x64xi32>
    %c0_i32_30 = arith.constant 0 : i32
    %66 = vector.broadcast %c0_i32_30 : i32 to vector<64x64xi32>
    %67 = arith.cmpi sge, %65, %66 : vector<64x64xi32>
    %c1_i32_31 = arith.constant 1 : i32
    %68 = vector.broadcast %c1_i32_31 : i32 to vector<64x64xi32>
    %69 = arith.addi %45, %68 : vector<64x64xi32>
    %c8_i32_32 = arith.constant 8 : i32
    %70 = vector.broadcast %c8_i32_32 : i32 to vector<64x64xi32>
    %71 = arith.cmpi slt, %69, %70 : vector<64x64xi32>
    %72 = arith.andi %67, %71 : vector<64x64xi1>
    %c2_i32 = arith.constant 2 : i32
    %73 = vector.broadcast %c2_i32 : i32 to vector<64x64xi32>
    %74 = arith.addi %45, %73 : vector<64x64xi32>
    %c0_i32_33 = arith.constant 0 : i32
    %75 = vector.broadcast %c0_i32_33 : i32 to vector<64x64xi32>
    %76 = arith.cmpi sge, %74, %75 : vector<64x64xi32>
    %c2_i32_34 = arith.constant 2 : i32
    %77 = vector.broadcast %c2_i32_34 : i32 to vector<64x64xi32>
    %78 = arith.addi %45, %77 : vector<64x64xi32>
    %c8_i32_35 = arith.constant 8 : i32
    %79 = vector.broadcast %c8_i32_35 : i32 to vector<64x64xi32>
    %80 = arith.cmpi slt, %78, %79 : vector<64x64xi32>
    %81 = arith.andi %76, %80 : vector<64x64xi1>
    %c0_36 = arith.constant 0 : index
    %c135 = arith.constant 135 : index
    %82 = vector.load %arg5[%c0_36, %c135] : memref<1x334xf32, #tpu.memory_space<vmem>>, vector<1x64xf32>
    tpu.vector_store %arg5[%c0_36, %c135], %3 {strides = array<i32>} : memref<1x334xf32, #tpu.memory_space<vmem>>, vector<1x64xf32>,
    %cst_37 = arith.constant 0.000000e+00 : f32
    %83 = vector.broadcast %cst_37 : f32 to vector<1x64xf32>
    %c0_38 = arith.constant 0 : index
    %c79 = arith.constant 79 : index
    %84 = vector.load %arg5[%c0_38, %c79] : memref<1x334xf32, #tpu.memory_space<vmem>>, vector<1x64xf32>
    %85 = arith.addf %83, %84 : vector<1x64xf32>
    %c0_39 = arith.constant 0 : index
    %c87 = arith.constant 87 : index
    %86 = vector.load %arg5[%c0_39, %c87] : memref<1x334xf32, #tpu.memory_space<vmem>>, vector<1x64xf32>
    %87 = arith.addf %85, %86 : vector<1x64xf32>
    %c0_40 = arith.constant 0 : index
    %c95 = arith.constant 95 : index
    %88 = vector.load %arg5[%c0_40, %c95] : memref<1x334xf32, #tpu.memory_space<vmem>>, vector<1x64xf32>
    %89 = arith.addf %87, %88 : vector<1x64xf32>
    %c0_41 = arith.constant 0 : index
    %c103 = arith.constant 103 : index
    %90 = vector.load %arg5[%c0_41, %c103] : memref<1x334xf32, #tpu.memory_space<vmem>>, vector<1x64xf32>
    %91 = arith.addf %89, %90 : vector<1x64xf32>
    %c0_42 = arith.constant 0 : index
    %c111 = arith.constant 111 : index
    %92 = vector.load %arg5[%c0_42, %c111] : memref<1x334xf32, #tpu.memory_space<vmem>>, vector<1x64xf32>
    %93 = arith.addf %91, %92 : vector<1x64xf32>
    %c0_43 = arith.constant 0 : index
    %c119 = arith.constant 119 : index
    %94 = vector.load %arg5[%c0_43, %c119] : memref<1x334xf32, #tpu.memory_space<vmem>>, vector<1x64xf32>
    %95 = arith.addf %93, %94 : vector<1x64xf32>
    %c0_44 = arith.constant 0 : index
    %c127 = arith.constant 127 : index
    %96 = vector.load %arg5[%c0_44, %c127] : memref<1x334xf32, #tpu.memory_space<vmem>>, vector<1x64xf32>
    %97 = arith.addf %95, %96 : vector<1x64xf32>
    %c0_45 = arith.constant 0 : index
    %c135_46 = arith.constant 135 : index
    %98 = vector.load %arg5[%c0_45, %c135_46] : memref<1x334xf32, #tpu.memory_space<vmem>>, vector<1x64xf32>
    %99 = arith.addf %97, %98 : vector<1x64xf32>
    %c0_47 = arith.constant 0 : index
    %c143 = arith.constant 143 : index
    %100 = vector.load %arg5[%c0_47, %c143] : memref<1x334xf32, #tpu.memory_space<vmem>>, vector<1x64xf32>
    %101 = arith.addf %99, %100 : vector<1x64xf32>
    %c0_48 = arith.constant 0 : index
    %c151 = arith.constant 151 : index
    %102 = vector.load %arg5[%c0_48, %c151] : memref<1x334xf32, #tpu.memory_space<vmem>>, vector<1x64xf32>
    %103 = arith.addf %101, %102 : vector<1x64xf32>
    %c0_49 = arith.constant 0 : index
    %c159 = arith.constant 159 : index
    %104 = vector.load %arg5[%c0_49, %c159] : memref<1x334xf32, #tpu.memory_space<vmem>>, vector<1x64xf32>
    %105 = arith.addf %103, %104 : vector<1x64xf32>
    %c0_50 = arith.constant 0 : index
    %c167 = arith.constant 167 : index
    %106 = vector.load %arg5[%c0_50, %c167] : memref<1x334xf32, #tpu.memory_space<vmem>>, vector<1x64xf32>
    %107 = arith.addf %105, %106 : vector<1x64xf32>
    %c0_51 = arith.constant 0 : index
    %c175 = arith.constant 175 : index
    %108 = vector.load %arg5[%c0_51, %c175] : memref<1x334xf32, #tpu.memory_space<vmem>>, vector<1x64xf32>
    %109 = arith.addf %107, %108 : vector<1x64xf32>
    %c0_52 = arith.constant 0 : index
    %c183 = arith.constant 183 : index
    %110 = vector.load %arg5[%c0_52, %c183] : memref<1x334xf32, #tpu.memory_space<vmem>>, vector<1x64xf32>
    %111 = arith.addf %109, %110 : vector<1x64xf32>
    %c0_53 = arith.constant 0 : index
    %c191 = arith.constant 191 : index
    %112 = vector.load %arg5[%c0_53, %c191] : memref<1x334xf32, #tpu.memory_space<vmem>>, vector<1x64xf32>
    %113 = arith.addf %111, %112 : vector<1x64xf32>
    %c0_54 = arith.constant 0 : index
    %c135_55 = arith.constant 135 : index
    %114 = vector.load %arg5[%c0_54, %c135_55] : memref<1x334xf32, #tpu.memory_space<vmem>>, vector<1x64xf32>
    tpu.vector_store %arg5[%c0_54, %c135_55], %113 {strides = array<i32>} : memref<1x334xf32, #tpu.memory_space<vmem>>, vector<1x64xf32>,
    %cst_56 = arith.constant 0.000000e+00 : f32
    %115 = vector.broadcast %cst_56 : f32 to vector<1x64xf32>
    %c0_57 = arith.constant 0 : index
    %c128 = arith.constant 128 : index
    %116 = vector.load %arg5[%c0_57, %c128] : memref<1x334xf32, #tpu.memory_space<vmem>>, vector<1x64xf32>
    %c-7_i32 = arith.constant -7 : i32
    %117 = vector.broadcast %c-7_i32 : i32 to vector<1x64xi32>
    %118 = arith.addi %28, %117 : vector<1x64xi32>
    %c0_i32_58 = arith.constant 0 : i32
    %119 = vector.broadcast %c0_i32_58 : i32 to vector<1x64xi32>
    %120 = arith.cmpi sge, %118, %119 : vector<1x64xi32>
    %c-7_i32_59 = arith.constant -7 : i32
    %121 = vector.broadcast %c-7_i32_59 : i32 to vector<1x64xi32>
    %122 = arith.addi %28, %121 : vector<1x64xi32>
    %c8_i32_60 = arith.constant 8 : i32
    %123 = vector.broadcast %c8_i32_60 : i32 to vector<1x64xi32>
    %124 = arith.cmpi slt, %122, %123 : vector<1x64xi32>
    %125 = arith.andi %120, %124 : vector<1x64xi1>
    %cst_61 = arith.constant 0.000000e+00 : f32
    %126 = vector.broadcast %cst_61 : f32 to vector<1x64xf32>
    %127 = arith.select %125, %116, %126 : vector<1x64xi1>, vector<1x64xf32>
    %128 = arith.addf %115, %127 : vector<1x64xf32>
    %c0_62 = arith.constant 0 : index
    %c129 = arith.constant 129 : index
    %129 = vector.load %arg5[%c0_62, %c129] : memref<1x334xf32, #tpu.memory_space<vmem>>, vector<1x64xf32>
    %c-6_i32 = arith.constant -6 : i32
    %130 = vector.broadcast %c-6_i32 : i32 to vector<1x64xi32>
    %131 = arith.addi %28, %130 : vector<1x64xi32>
    %c0_i32_63 = arith.constant 0 : i32
    %132 = vector.broadcast %c0_i32_63 : i32 to vector<1x64xi32>
    %133 = arith.cmpi sge, %131, %132 : vector<1x64xi32>
    %c-6_i32_64 = arith.constant -6 : i32
    %134 = vector.broadcast %c-6_i32_64 : i32 to vector<1x64xi32>
    %135 = arith.addi %28, %134 : vector<1x64xi32>
    %c8_i32_65 = arith.constant 8 : i32
    %136 = vector.broadcast %c8_i32_65 : i32 to vector<1x64xi32>
    %137 = arith.cmpi slt, %135, %136 : vector<1x64xi32>
    %138 = arith.andi %133, %137 : vector<1x64xi1>
    %cst_66 = arith.constant 0.000000e+00 : f32
    %139 = vector.broadcast %cst_66 : f32 to vector<1x64xf32>
    %140 = arith.select %138, %129, %139 : vector<1x64xi1>, vector<1x64xf32>
    %141 = arith.addf %128, %140 : vector<1x64xf32>
    %c0_67 = arith.constant 0 : index
    %c130 = arith.constant 130 : index
    %142 = vector.load %arg5[%c0_67, %c130] : memref<1x334xf32, #tpu.memory_space<vmem>>, vector<1x64xf32>
    %c-5_i32 = arith.constant -5 : i32
    %143 = vector.broadcast %c-5_i32 : i32 to vector<1x64xi32>
    %144 = arith.addi %28, %143 : vector<1x64xi32>
    %c0_i32_68 = arith.constant 0 : i32
    %145 = vector.broadcast %c0_i32_68 : i32 to vector<1x64xi32>
    %146 = arith.cmpi sge, %144, %145 : vector<1x64xi32>
    %c-5_i32_69 = arith.constant -5 : i32
    %147 = vector.broadcast %c-5_i32_69 : i32 to vector<1x64xi32>
    %148 = arith.addi %28, %147 : vector<1x64xi32>
    %c8_i32_70 = arith.constant 8 : i32
    %149 = vector.broadcast %c8_i32_70 : i32 to vector<1x64xi32>
    %150 = arith.cmpi slt, %148, %149 : vector<1x64xi32>
    %151 = arith.andi %146, %150 : vector<1x64xi1>
    %cst_71 = arith.constant 0.000000e+00 : f32
    %152 = vector.broadcast %cst_71 : f32 to vector<1x64xf32>
    %153 = arith.select %151, %142, %152 : vector<1x64xi1>, vector<1x64xf32>
    %154 = arith.addf %141, %153 : vector<1x64xf32>
    %c0_72 = arith.constant 0 : index
    %c131 = arith.constant 131 : index
    %155 = vector.load %arg5[%c0_72, %c131] : memref<1x334xf32, #tpu.memory_space<vmem>>, vector<1x64xf32>
    %c-4_i32 = arith.constant -4 : i32
    %156 = vector.broadcast %c-4_i32 : i32 to vector<1x64xi32>
    %157 = arith.addi %28, %156 : vector<1x64xi32>
    %c0_i32_73 = arith.constant 0 : i32
    %158 = vector.broadcast %c0_i32_73 : i32 to vector<1x64xi32>
    %159 = arith.cmpi sge, %157, %158 : vector<1x64xi32>
    %c-4_i32_74 = arith.constant -4 : i32
    %160 = vector.broadcast %c-4_i32_74 : i32 to vector<1x64xi32>
    %161 = arith.addi %28, %160 : vector<1x64xi32>
    %c8_i32_75 = arith.constant 8 : i32
    %162 = vector.broadcast %c8_i32_75 : i32 to vector<1x64xi32>
    %163 = arith.cmpi slt, %161, %162 : vector<1x64xi32>
    %164 = arith.andi %159, %163 : vector<1x64xi1>
    %cst_76 = arith.constant 0.000000e+00 : f32
    %165 = vector.broadcast %cst_76 : f32 to vector<1x64xf32>
    %166 = arith.select %164, %155, %165 : vector<1x64xi1>, vector<1x64xf32>
    %167 = arith.addf %154, %166 : vector<1x64xf32>
    %c0_77 = arith.constant 0 : index
    %c132 = arith.constant 132 : index
    %168 = vector.load %arg5[%c0_77, %c132] : memref<1x334xf32, #tpu.memory_space<vmem>>, vector<1x64xf32>
    %c-3_i32 = arith.constant -3 : i32
    %169 = vector.broadcast %c-3_i32 : i32 to vector<1x64xi32>
    %170 = arith.addi %28, %169 : vector<1x64xi32>
    %c0_i32_78 = arith.constant 0 : i32
    %171 = vector.broadcast %c0_i32_78 : i32 to vector<1x64xi32>
    %172 = arith.cmpi sge, %170, %171 : vector<1x64xi32>
    %c-3_i32_79 = arith.constant -3 : i32
    %173 = vector.broadcast %c-3_i32_79 : i32 to vector<1x64xi32>
    %174 = arith.addi %28, %173 : vector<1x64xi32>
    %c8_i32_80 = arith.constant 8 : i32
    %175 = vector.broadcast %c8_i32_80 : i32 to vector<1x64xi32>
    %176 = arith.cmpi slt, %174, %175 : vector<1x64xi32>
    %177 = arith.andi %172, %176 : vector<1x64xi1>
    %cst_81 = arith.constant 0.000000e+00 : f32
    %178 = vector.broadcast %cst_81 : f32 to vector<1x64xf32>
    %179 = arith.select %177, %168, %178 : vector<1x64xi1>, vector<1x64xf32>
    %180 = arith.addf %167, %179 : vector<1x64xf32>
    %c0_82 = arith.constant 0 : index
    %c133 = arith.constant 133 : index
    %181 = vector.load %arg5[%c0_82, %c133] : memref<1x334xf32, #tpu.memory_space<vmem>>, vector<1x64xf32>
    %c-2_i32_83 = arith.constant -2 : i32
    %182 = vector.broadcast %c-2_i32_83 : i32 to vector<1x64xi32>
    %183 = arith.addi %28, %182 : vector<1x64xi32>
    %c0_i32_84 = arith.constant 0 : i32
    %184 = vector.broadcast %c0_i32_84 : i32 to vector<1x64xi32>
    %185 = arith.cmpi sge, %183, %184 : vector<1x64xi32>
    %c-2_i32_85 = arith.constant -2 : i32
    %186 = vector.broadcast %c-2_i32_85 : i32 to vector<1x64xi32>
    %187 = arith.addi %28, %186 : vector<1x64xi32>
    %c8_i32_86 = arith.constant 8 : i32
    %188 = vector.broadcast %c8_i32_86 : i32 to vector<1x64xi32>
    %189 = arith.cmpi slt, %187, %188 : vector<1x64xi32>
    %190 = arith.andi %185, %189 : vector<1x64xi1>
    %cst_87 = arith.constant 0.000000e+00 : f32
    %191 = vector.broadcast %cst_87 : f32 to vector<1x64xf32>
    %192 = arith.select %190, %181, %191 : vector<1x64xi1>, vector<1x64xf32>
    %193 = arith.addf %180, %192 : vector<1x64xf32>
    %c0_88 = arith.constant 0 : index
    %c134 = arith.constant 134 : index
    %194 = vector.load %arg5[%c0_88, %c134] : memref<1x334xf32, #tpu.memory_space<vmem>>, vector<1x64xf32>
    %c-1_i32_89 = arith.constant -1 : i32
    %195 = vector.broadcast %c-1_i32_89 : i32 to vector<1x64xi32>
    %196 = arith.addi %28, %195 : vector<1x64xi32>
    %c0_i32_90 = arith.constant 0 : i32
    %197 = vector.broadcast %c0_i32_90 : i32 to vector<1x64xi32>
    %198 = arith.cmpi sge, %196, %197 : vector<1x64xi32>
    %c-1_i32_91 = arith.constant -1 : i32
    %199 = vector.broadcast %c-1_i32_91 : i32 to vector<1x64xi32>
    %200 = arith.addi %28, %199 : vector<1x64xi32>
    %c8_i32_92 = arith.constant 8 : i32
    %201 = vector.broadcast %c8_i32_92 : i32 to vector<1x64xi32>
    %202 = arith.cmpi slt, %200, %201 : vector<1x64xi32>
    %203 = arith.andi %198, %202 : vector<1x64xi1>
    %cst_93 = arith.constant 0.000000e+00 : f32
    %204 = vector.broadcast %cst_93 : f32 to vector<1x64xf32>
    %205 = arith.select %203, %194, %204 : vector<1x64xi1>, vector<1x64xf32>
    %206 = arith.addf %193, %205 : vector<1x64xf32>
    %c0_94 = arith.constant 0 : index
    %c135_95 = arith.constant 135 : index
    %207 = vector.load %arg5[%c0_94, %c135_95] : memref<1x334xf32, #tpu.memory_space<vmem>>, vector<1x64xf32>
    %c0_i32_96 = arith.constant 0 : i32
    %208 = vector.broadcast %c0_i32_96 : i32 to vector<1x64xi32>
    %209 = arith.addi %28, %208 : vector<1x64xi32>
    %c0_i32_97 = arith.constant 0 : i32
    %210 = vector.broadcast %c0_i32_97 : i32 to vector<1x64xi32>
    %211 = arith.cmpi sge, %209, %210 : vector<1x64xi32>
    %c0_i32_98 = arith.constant 0 : i32
    %212 = vector.broadcast %c0_i32_98 : i32 to vector<1x64xi32>
    %213 = arith.addi %28, %212 : vector<1x64xi32>
    %c8_i32_99 = arith.constant 8 : i32
    %214 = vector.broadcast %c8_i32_99 : i32 to vector<1x64xi32>
    %215 = arith.cmpi slt, %213, %214 : vector<1x64xi32>
    %216 = arith.andi %211, %215 : vector<1x64xi1>
    %cst_100 = arith.constant 0.000000e+00 : f32
    %217 = vector.broadcast %cst_100 : f32 to vector<1x64xf32>
    %218 = arith.select %216, %207, %217 : vector<1x64xi1>, vector<1x64xf32>
    %219 = arith.addf %206, %218 : vector<1x64xf32>
    %c0_101 = arith.constant 0 : index
    %c136 = arith.constant 136 : index
    %220 = vector.load %arg5[%c0_101, %c136] : memref<1x334xf32, #tpu.memory_space<vmem>>, vector<1x64xf32>
    %c1_i32_102 = arith.constant 1 : i32
    %221 = vector.broadcast %c1_i32_102 : i32 to vector<1x64xi32>
    %222 = arith.addi %28, %221 : vector<1x64xi32>
    %c0_i32_103 = arith.constant 0 : i32
    %223 = vector.broadcast %c0_i32_103 : i32 to vector<1x64xi32>
    %224 = arith.cmpi sge, %222, %223 : vector<1x64xi32>
    %c1_i32_104 = arith.constant 1 : i32
    %225 = vector.broadcast %c1_i32_104 : i32 to vector<1x64xi32>
    %226 = arith.addi %28, %225 : vector<1x64xi32>
    %c8_i32_105 = arith.constant 8 : i32
    %227 = vector.broadcast %c8_i32_105 : i32 to vector<1x64xi32>
    %228 = arith.cmpi slt, %226, %227 : vector<1x64xi32>
    %229 = arith.andi %224, %228 : vector<1x64xi1>
    %cst_106 = arith.constant 0.000000e+00 : f32
    %230 = vector.broadcast %cst_106 : f32 to vector<1x64xf32>
    %231 = arith.select %229, %220, %230 : vector<1x64xi1>, vector<1x64xf32>
    %232 = arith.addf %219, %231 : vector<1x64xf32>
    %c0_107 = arith.constant 0 : index
    %c137 = arith.constant 137 : index
    %233 = vector.load %arg5[%c0_107, %c137] : memref<1x334xf32, #tpu.memory_space<vmem>>, vector<1x64xf32>
    %c2_i32_108 = arith.constant 2 : i32
    %234 = vector.broadcast %c2_i32_108 : i32 to vector<1x64xi32>
    %235 = arith.addi %28, %234 : vector<1x64xi32>
    %c0_i32_109 = arith.constant 0 : i32
    %236 = vector.broadcast %c0_i32_109 : i32 to vector<1x64xi32>
    %237 = arith.cmpi sge, %235, %236 : vector<1x64xi32>
    %c2_i32_110 = arith.constant 2 : i32
    %238 = vector.broadcast %c2_i32_110 : i32 to vector<1x64xi32>
    %239 = arith.addi %28, %238 : vector<1x64xi32>
    %c8_i32_111 = arith.constant 8 : i32
    %240 = vector.broadcast %c8_i32_111 : i32 to vector<1x64xi32>
    %241 = arith.cmpi slt, %239, %240 : vector<1x64xi32>
    %242 = arith.andi %237, %241 : vector<1x64xi1>
    %cst_112 = arith.constant 0.000000e+00 : f32
    %243 = vector.broadcast %cst_112 : f32 to vector<1x64xf32>
    %244 = arith.select %242, %233, %243 : vector<1x64xi1>, vector<1x64xf32>
    %245 = arith.addf %232, %244 : vector<1x64xf32>
    %c0_113 = arith.constant 0 : index
    %c138 = arith.constant 138 : index
    %246 = vector.load %arg5[%c0_113, %c138] : memref<1x334xf32, #tpu.memory_space<vmem>>, vector<1x64xf32>
    %c3_i32 = arith.constant 3 : i32
    %247 = vector.broadcast %c3_i32 : i32 to vector<1x64xi32>
    %248 = arith.addi %28, %247 : vector<1x64xi32>
    %c0_i32_114 = arith.constant 0 : i32
    %249 = vector.broadcast %c0_i32_114 : i32 to vector<1x64xi32>
    %250 = arith.cmpi sge, %248, %249 : vector<1x64xi32>
    %c3_i32_115 = arith.constant 3 : i32
    %251 = vector.broadcast %c3_i32_115 : i32 to vector<1x64xi32>
    %252 = arith.addi %28, %251 : vector<1x64xi32>
    %c8_i32_116 = arith.constant 8 : i32
    %253 = vector.broadcast %c8_i32_116 : i32 to vector<1x64xi32>
    %254 = arith.cmpi slt, %252, %253 : vector<1x64xi32>
    %255 = arith.andi %250, %254 : vector<1x64xi1>
    %cst_117 = arith.constant 0.000000e+00 : f32
    %256 = vector.broadcast %cst_117 : f32 to vector<1x64xf32>
    %257 = arith.select %255, %246, %256 : vector<1x64xi1>, vector<1x64xf32>
    %258 = arith.addf %245, %257 : vector<1x64xf32>
    %c0_118 = arith.constant 0 : index
    %c139 = arith.constant 139 : index
    %259 = vector.load %arg5[%c0_118, %c139] : memref<1x334xf32, #tpu.memory_space<vmem>>, vector<1x64xf32>
    %c4_i32 = arith.constant 4 : i32
    %260 = vector.broadcast %c4_i32 : i32 to vector<1x64xi32>
    %261 = arith.addi %28, %260 : vector<1x64xi32>
    %c0_i32_119 = arith.constant 0 : i32
    %262 = vector.broadcast %c0_i32_119 : i32 to vector<1x64xi32>
    %263 = arith.cmpi sge, %261, %262 : vector<1x64xi32>
    %c4_i32_120 = arith.constant 4 : i32
    %264 = vector.broadcast %c4_i32_120 : i32 to vector<1x64xi32>
    %265 = arith.addi %28, %264 : vector<1x64xi32>
    %c8_i32_121 = arith.constant 8 : i32
    %266 = vector.broadcast %c8_i32_121 : i32 to vector<1x64xi32>
    %267 = arith.cmpi slt, %265, %266 : vector<1x64xi32>
    %268 = arith.andi %263, %267 : vector<1x64xi1>
    %cst_122 = arith.constant 0.000000e+00 : f32
    %269 = vector.broadcast %cst_122 : f32 to vector<1x64xf32>
    %270 = arith.select %268, %259, %269 : vector<1x64xi1>, vector<1x64xf32>
    %271 = arith.addf %258, %270 : vector<1x64xf32>
    %c0_123 = arith.constant 0 : index
    %c140 = arith.constant 140 : index
    %272 = vector.load %arg5[%c0_123, %c140] : memref<1x334xf32, #tpu.memory_space<vmem>>, vector<1x64xf32>
    %c5_i32 = arith.constant 5 : i32
    %273 = vector.broadcast %c5_i32 : i32 to vector<1x64xi32>
    %274 = arith.addi %28, %273 : vector<1x64xi32>
    %c0_i32_124 = arith.constant 0 : i32
    %275 = vector.broadcast %c0_i32_124 : i32 to vector<1x64xi32>
    %276 = arith.cmpi sge, %274, %275 : vector<1x64xi32>
    %c5_i32_125 = arith.constant 5 : i32
    %277 = vector.broadcast %c5_i32_125 : i32 to vector<1x64xi32>
    %278 = arith.addi %28, %277 : vector<1x64xi32>
    %c8_i32_126 = arith.constant 8 : i32
    %279 = vector.broadcast %c8_i32_126 : i32 to vector<1x64xi32>
    %280 = arith.cmpi slt, %278, %279 : vector<1x64xi32>
    %281 = arith.andi %276, %280 : vector<1x64xi1>
    %cst_127 = arith.constant 0.000000e+00 : f32
    %282 = vector.broadcast %cst_127 : f32 to vector<1x64xf32>
    %283 = arith.select %281, %272, %282 : vector<1x64xi1>, vector<1x64xf32>
    %284 = arith.addf %271, %283 : vector<1x64xf32>
    %c0_128 = arith.constant 0 : index
    %c141 = arith.constant 141 : index
    %285 = vector.load %arg5[%c0_128, %c141] : memref<1x334xf32, #tpu.memory_space<vmem>>, vector<1x64xf32>
    %c6_i32 = arith.constant 6 : i32
    %286 = vector.broadcast %c6_i32 : i32 to vector<1x64xi32>
    %287 = arith.addi %28, %286 : vector<1x64xi32>
    %c0_i32_129 = arith.constant 0 : i32
    %288 = vector.broadcast %c0_i32_129 : i32 to vector<1x64xi32>
    %289 = arith.cmpi sge, %287, %288 : vector<1x64xi32>
    %c6_i32_130 = arith.constant 6 : i32
    %290 = vector.broadcast %c6_i32_130 : i32 to vector<1x64xi32>
    %291 = arith.addi %28, %290 : vector<1x64xi32>
    %c8_i32_131 = arith.constant 8 : i32
    %292 = vector.broadcast %c8_i32_131 : i32 to vector<1x64xi32>
    %293 = arith.cmpi slt, %291, %292 : vector<1x64xi32>
    %294 = arith.andi %289, %293 : vector<1x64xi1>
    %cst_132 = arith.constant 0.000000e+00 : f32
    %295 = vector.broadcast %cst_132 : f32 to vector<1x64xf32>
    %296 = arith.select %294, %285, %295 : vector<1x64xi1>, vector<1x64xf32>
    %297 = arith.addf %284, %296 : vector<1x64xf32>
    %c0_133 = arith.constant 0 : index
    %c142 = arith.constant 142 : index
    %298 = vector.load %arg5[%c0_133, %c142] : memref<1x334xf32, #tpu.memory_space<vmem>>, vector<1x64xf32>
    %c7_i32 = arith.constant 7 : i32
    %299 = vector.broadcast %c7_i32 : i32 to vector<1x64xi32>
    %300 = arith.addi %28, %299 : vector<1x64xi32>
    %c0_i32_134 = arith.constant 0 : i32
    %301 = vector.broadcast %c0_i32_134 : i32 to vector<1x64xi32>
    %302 = arith.cmpi sge, %300, %301 : vector<1x64xi32>
    %c7_i32_135 = arith.constant 7 : i32
    %303 = vector.broadcast %c7_i32_135 : i32 to vector<1x64xi32>
    %304 = arith.addi %28, %303 : vector<1x64xi32>
    %c8_i32_136 = arith.constant 8 : i32
    %305 = vector.broadcast %c8_i32_136 : i32 to vector<1x64xi32>
    %306 = arith.cmpi slt, %304, %305 : vector<1x64xi32>
    %307 = arith.andi %302, %306 : vector<1x64xi1>
    %cst_137 = arith.constant 0.000000e+00 : f32
    %308 = vector.broadcast %cst_137 : f32 to vector<1x64xf32>
    %309 = arith.select %307, %298, %308 : vector<1x64xi1>, vector<1x64xf32>
    %310 = arith.addf %297, %309 : vector<1x64xf32>
    %cst_138 = arith.constant 9.610000e+02 : f32
    %311 = vector.broadcast %cst_138 : f32 to vector<1x64xf32>
    %312 = arith.divf %310, %311 : vector<1x64xf32>
    %313 = arith.subf %312, %3 : vector<1x64xf32>
    %314 = math.absf %313 : vector<1x64xf32>
    %cst_139 = arith.constant 5.000000e+00 : f32
    %315 = vector.broadcast %cst_139 : f32 to vector<1x64xf32>
    %316 = arith.mulf %315, %314 : vector<1x64xf32>
    %cst_140 = arith.constant 1.000000e+00 : f32
    %317 = vector.broadcast %cst_140 : f32 to vector<1x64xf32>
    %318 = arith.addf %317, %316 : vector<1x64xf32>
    %cst_141 = arith.constant 0.000000e+00 : f32
    %cst_142 = arith.constant 6.300000e+01 : f32
    %319 = vector.broadcast %cst_141 : f32 to vector<1x64xf32>
    %320 = arith.maximumf %319, %3 : vector<1x64xf32>
    %321 = vector.broadcast %cst_142 : f32 to vector<1x64xf32>
    %322 = arith.minimumf %321, %320 : vector<1x64xf32>
    %323 = arith.fptosi %322 : vector<1x64xf32> to vector<1x64xi32>
    %324 = tpu.iota {dimensions = array<i32: 0>} : vector<64x64xi32>
    %325 = vector.broadcast %323 : vector<1x64xi32> to vector<64x64xi32>
    %326 = arith.cmpi eq, %324, %325 : vector<64x64xi32>
    %327 = arith.extui %326 : vector<64x64xi1> to vector<64x64xi32>
    %328 = arith.sitofp %327 : vector<64x64xi32> to vector<64x64xf32>
    %cst_143 = arith.constant 1.000000e+00 : f32
    %329 = vector.broadcast %cst_143 : f32 to vector<64x64xf32>
    %330 = arith.subf %329, %328 : vector<64x64xf32>
    %c0_144 = arith.constant 0 : index
    %c18 = arith.constant 18 : index
    %331 = vector.load %arg4[%c0_144, %c18] : memref<64x100xf32, #tpu.memory_space<vmem>>, vector<64x64xf32>
    tpu.vector_store %arg4[%c0_144, %c18], %330 {strides = array<i32>} : memref<64x100xf32, #tpu.memory_space<vmem>>, vector<64x64xf32>,
    %c0_145 = arith.constant 0 : index
    %c10 = arith.constant 10 : index
    %332 = vector.load %arg4[%c0_145, %c10] : memref<64x100xf32, #tpu.memory_space<vmem>>, vector<64x64xf32>
    %c0_146 = arith.constant 0 : index
    %c18_147 = arith.constant 18 : index
    %333 = vector.load %arg4[%c0_146, %c18_147] : memref<64x100xf32, #tpu.memory_space<vmem>>, vector<64x64xf32>
    %334 = arith.maximumf %332, %333 : vector<64x64xf32>
    %c0_148 = arith.constant 0 : index
    %c26 = arith.constant 26 : index
    %335 = vector.load %arg4[%c0_148, %c26] : memref<64x100xf32, #tpu.memory_space<vmem>>, vector<64x64xf32>
    %336 = arith.maximumf %334, %335 : vector<64x64xf32>
    %c0_149 = arith.constant 0 : index
    %c18_150 = arith.constant 18 : index
    %337 = vector.load %arg4[%c0_149, %c18_150] : memref<64x100xf32, #tpu.memory_space<vmem>>, vector<64x64xf32>
    tpu.vector_store %arg4[%c0_149, %c18_150], %336 {strides = array<i32>} : memref<64x100xf32, #tpu.memory_space<vmem>>, vector<64x64xf32>,
    %c0_151 = arith.constant 0 : index
    %c17 = arith.constant 17 : index
    %338 = vector.load %arg4[%c0_151, %c17] : memref<64x100xf32, #tpu.memory_space<vmem>>, vector<64x64xf32>
    %cst_152 = arith.constant 0xFF800000 : f32
    %339 = vector.broadcast %cst_152 : f32 to vector<64x64xf32>
    %340 = arith.select %63, %338, %339 : vector<64x64xi1>, vector<64x64xf32>
    %c0_153 = arith.constant 0 : index
    %c18_154 = arith.constant 18 : index
    %341 = vector.load %arg4[%c0_153, %c18_154] : memref<64x100xf32, #tpu.memory_space<vmem>>, vector<64x64xf32>
    %342 = arith.maximumf %340, %341 : vector<64x64xf32>
    %c0_155 = arith.constant 0 : index
    %c19 = arith.constant 19 : index
    %343 = vector.load %arg4[%c0_155, %c19] : memref<64x100xf32, #tpu.memory_space<vmem>>, vector<64x64xf32>
    %cst_156 = arith.constant 0xFF800000 : f32
    %344 = vector.broadcast %cst_156 : f32 to vector<64x64xf32>
    %345 = arith.select %72, %343, %344 : vector<64x64xi1>, vector<64x64xf32>
    %346 = arith.maximumf %342, %345 : vector<64x64xf32>
    %347 = arith.subf %346, %330 : vector<64x64xf32>
    %cst_157 = arith.constant 1.000000e+00 : f32
    %348 = vector.broadcast %cst_157 : f32 to vector<64x64xf32>
    %349 = arith.subf %348, %1 : vector<64x64xf32>
    %c0_158 = arith.constant 0 : index
    %c18_159 = arith.constant 18 : index
    %350 = vector.load %arg4[%c0_158, %c18_159] : memref<64x100xf32, #tpu.memory_space<vmem>>, vector<64x64xf32>
    tpu.vector_store %arg4[%c0_158, %c18_159], %349 {strides = array<i32>} : memref<64x100xf32, #tpu.memory_space<vmem>>, vector<64x64xf32>,
    %c0_160 = arith.constant 0 : index
    %c10_161 = arith.constant 10 : index
    %351 = vector.load %arg4[%c0_160, %c10_161] : memref<64x100xf32, #tpu.memory_space<vmem>>, vector<64x64xf32>
    %c0_162 = arith.constant 0 : index
    %c18_163 = arith.constant 18 : index
    %352 = vector.load %arg4[%c0_162, %c18_163] : memref<64x100xf32, #tpu.memory_space<vmem>>, vector<64x64xf32>
    %353 = arith.maximumf %351, %352 : vector<64x64xf32>
    %c0_164 = arith.constant 0 : index
    %c26_165 = arith.constant 26 : index
    %354 = vector.load %arg4[%c0_164, %c26_165] : memref<64x100xf32, #tpu.memory_space<vmem>>, vector<64x64xf32>
    %355 = arith.maximumf %353, %354 : vector<64x64xf32>
    %c0_166 = arith.constant 0 : index
    %c18_167 = arith.constant 18 : index
    %356 = vector.load %arg4[%c0_166, %c18_167] : memref<64x100xf32, #tpu.memory_space<vmem>>, vector<64x64xf32>
    tpu.vector_store %arg4[%c0_166, %c18_167], %355 {strides = array<i32>} : memref<64x100xf32, #tpu.memory_space<vmem>>, vector<64x64xf32>,
    %c0_168 = arith.constant 0 : index
    %c17_169 = arith.constant 17 : index
    %357 = vector.load %arg4[%c0_168, %c17_169] : memref<64x100xf32, #tpu.memory_space<vmem>>, vector<64x64xf32>
    %cst_170 = arith.constant 0xFF800000 : f32
    %358 = vector.broadcast %cst_170 : f32 to vector<64x64xf32>
    %359 = arith.select %63, %357, %358 : vector<64x64xi1>, vector<64x64xf32>
    %c0_171 = arith.constant 0 : index
    %c18_172 = arith.constant 18 : index
    %360 = vector.load %arg4[%c0_171, %c18_172] : memref<64x100xf32, #tpu.memory_space<vmem>>, vector<64x64xf32>
    %361 = arith.maximumf %359, %360 : vector<64x64xf32>
    %c0_173 = arith.constant 0 : index
    %c19_174 = arith.constant 19 : index
    %362 = vector.load %arg4[%c0_173, %c19_174] : memref<64x100xf32, #tpu.memory_space<vmem>>, vector<64x64xf32>
    %cst_175 = arith.constant 0xFF800000 : f32
    %363 = vector.broadcast %cst_175 : f32 to vector<64x64xf32>
    %364 = arith.select %72, %362, %363 : vector<64x64xi1>, vector<64x64xf32>
    %365 = arith.maximumf %361, %364 : vector<64x64xf32>
    %366 = arith.subf %365, %349 : vector<64x64xf32>
    %c0_176 = arith.constant 0 : index
    %c18_177 = arith.constant 18 : index
    %367 = vector.load %arg4[%c0_176, %c18_177] : memref<64x100xf32, #tpu.memory_space<vmem>>, vector<64x64xf32>
    tpu.vector_store %arg4[%c0_176, %c18_177], %347 {strides = array<i32>} : memref<64x100xf32, #tpu.memory_space<vmem>>, vector<64x64xf32>,
    %c0_178 = arith.constant 0 : index
    %c2 = arith.constant 2 : index
    %368 = vector.load %arg4[%c0_178, %c2] : memref<64x100xf32, #tpu.memory_space<vmem>>, vector<64x64xf32>
    %c0_179 = arith.constant 0 : index
    %c10_180 = arith.constant 10 : index
    %369 = vector.load %arg4[%c0_179, %c10_180] : memref<64x100xf32, #tpu.memory_space<vmem>>, vector<64x64xf32>
    %370 = arith.maximumf %368, %369 : vector<64x64xf32>
    %c0_181 = arith.constant 0 : index
    %c18_182 = arith.constant 18 : index
    %371 = vector.load %arg4[%c0_181, %c18_182] : memref<64x100xf32, #tpu.memory_space<vmem>>, vector<64x64xf32>
    %372 = arith.maximumf %370, %371 : vector<64x64xf32>
    %c0_183 = arith.constant 0 : index
    %c26_184 = arith.constant 26 : index
    %373 = vector.load %arg4[%c0_183, %c26_184] : memref<64x100xf32, #tpu.memory_space<vmem>>, vector<64x64xf32>
    %374 = arith.maximumf %372, %373 : vector<64x64xf32>
    %c0_185 = arith.constant 0 : index
    %c34 = arith.constant 34 : index
    %375 = vector.load %arg4[%c0_185, %c34] : memref<64x100xf32, #tpu.memory_space<vmem>>, vector<64x64xf32>
    %376 = arith.maximumf %374, %375 : vector<64x64xf32>
    %c0_186 = arith.constant 0 : index
    %c18_187 = arith.constant 18 : index
    %377 = vector.load %arg4[%c0_186, %c18_187] : memref<64x100xf32, #tpu.memory_space<vmem>>, vector<64x64xf32>
    tpu.vector_store %arg4[%c0_186, %c18_187], %376 {strides = array<i32>} : memref<64x100xf32, #tpu.memory_space<vmem>>, vector<64x64xf32>,
    %c0_188 = arith.constant 0 : index
    %c16 = arith.constant 16 : index
    %378 = vector.load %arg4[%c0_188, %c16] : memref<64x100xf32, #tpu.memory_space<vmem>>, vector<64x64xf32>
    %cst_189 = arith.constant 0xFF800000 : f32
    %379 = vector.broadcast %cst_189 : f32 to vector<64x64xf32>
    %380 = arith.select %54, %378, %379 : vector<64x64xi1>, vector<64x64xf32>
    %c0_190 = arith.constant 0 : index
    %c17_191 = arith.constant 17 : index
    %381 = vector.load %arg4[%c0_190, %c17_191] : memref<64x100xf32, #tpu.memory_space<vmem>>, vector<64x64xf32>
    %cst_192 = arith.constant 0xFF800000 : f32
    %382 = vector.broadcast %cst_192 : f32 to vector<64x64xf32>
    %383 = arith.select %63, %381, %382 : vector<64x64xi1>, vector<64x64xf32>
    %384 = arith.maximumf %380, %383 : vector<64x64xf32>
    %c0_193 = arith.constant 0 : index
    %c18_194 = arith.constant 18 : index
    %385 = vector.load %arg4[%c0_193, %c18_194] : memref<64x100xf32, #tpu.memory_space<vmem>>, vector<64x64xf32>
    %386 = arith.maximumf %384, %385 : vector<64x64xf32>
    %c0_195 = arith.constant 0 : index
    %c19_196 = arith.constant 19 : index
    %387 = vector.load %arg4[%c0_195, %c19_196] : memref<64x100xf32, #tpu.memory_space<vmem>>, vector<64x64xf32>
    %cst_197 = arith.constant 0xFF800000 : f32
    %388 = vector.broadcast %cst_197 : f32 to vector<64x64xf32>
    %389 = arith.select %72, %387, %388 : vector<64x64xi1>, vector<64x64xf32>
    %390 = arith.maximumf %386, %389 : vector<64x64xf32>
    %c0_198 = arith.constant 0 : index
    %c20 = arith.constant 20 : index
    %391 = vector.load %arg4[%c0_198, %c20] : memref<64x100xf32, #tpu.memory_space<vmem>>, vector<64x64xf32>
    %cst_199 = arith.constant 0xFF800000 : f32
    %392 = vector.broadcast %cst_199 : f32 to vector<64x64xf32>
    %393 = arith.select %81, %391, %392 : vector<64x64xi1>, vector<64x64xf32>
    %394 = arith.maximumf %390, %393 : vector<64x64xf32>
    %c0_200 = arith.constant 0 : index
    %c18_201 = arith.constant 18 : index
    %395 = vector.load %arg4[%c0_200, %c18_201] : memref<64x100xf32, #tpu.memory_space<vmem>>, vector<64x64xf32>
    tpu.vector_store %arg4[%c0_200, %c18_201], %366 {strides = array<i32>} : memref<64x100xf32, #tpu.memory_space<vmem>>, vector<64x64xf32>,
    %c0_202 = arith.constant 0 : index
    %c2_203 = arith.constant 2 : index
    %396 = vector.load %arg4[%c0_202, %c2_203] : memref<64x100xf32, #tpu.memory_space<vmem>>, vector<64x64xf32>
    %c0_204 = arith.constant 0 : index
    %c10_205 = arith.constant 10 : index
    %397 = vector.load %arg4[%c0_204, %c10_205] : memref<64x100xf32, #tpu.memory_space<vmem>>, vector<64x64xf32>
    %398 = arith.maximumf %396, %397 : vector<64x64xf32>
    %c0_206 = arith.constant 0 : index
    %c18_207 = arith.constant 18 : index
    %399 = vector.load %arg4[%c0_206, %c18_207] : memref<64x100xf32, #tpu.memory_space<vmem>>, vector<64x64xf32>
    %400 = arith.maximumf %398, %399 : vector<64x64xf32>
    %c0_208 = arith.constant 0 : index
    %c26_209 = arith.constant 26 : index
    %401 = vector.load %arg4[%c0_208, %c26_209] : memref<64x100xf32, #tpu.memory_space<vmem>>, vector<64x64xf32>
    %402 = arith.maximumf %400, %401 : vector<64x64xf32>
    %c0_210 = arith.constant 0 : index
    %c34_211 = arith.constant 34 : index
    %403 = vector.load %arg4[%c0_210, %c34_211] : memref<64x100xf32, #tpu.memory_space<vmem>>, vector<64x64xf32>
    %404 = arith.maximumf %402, %403 : vector<64x64xf32>
    %c0_212 = arith.constant 0 : index
    %c18_213 = arith.constant 18 : index
    %405 = vector.load %arg4[%c0_212, %c18_213] : memref<64x100xf32, #tpu.memory_space<vmem>>, vector<64x64xf32>
    tpu.vector_store %arg4[%c0_212, %c18_213], %404 {strides = array<i32>} : memref<64x100xf32, #tpu.memory_space<vmem>>, vector<64x64xf32>,
    %c0_214 = arith.constant 0 : index
    %c16_215 = arith.constant 16 : index
    %406 = vector.load %arg4[%c0_214, %c16_215] : memref<64x100xf32, #tpu.memory_space<vmem>>, vector<64x64xf32>
    %cst_216 = arith.constant 0xFF800000 : f32
    %407 = vector.broadcast %cst_216 : f32 to vector<64x64xf32>
    %408 = arith.select %54, %406, %407 : vector<64x64xi1>, vector<64x64xf32>
    %c0_217 = arith.constant 0 : index
    %c17_218 = arith.constant 17 : index
    %409 = vector.load %arg4[%c0_217, %c17_218] : memref<64x100xf32, #tpu.memory_space<vmem>>, vector<64x64xf32>
    %cst_219 = arith.constant 0xFF800000 : f32
    %410 = vector.broadcast %cst_219 : f32 to vector<64x64xf32>
    %411 = arith.select %63, %409, %410 : vector<64x64xi1>, vector<64x64xf32>
    %412 = arith.maximumf %408, %411 : vector<64x64xf32>
    %c0_220 = arith.constant 0 : index
    %c18_221 = arith.constant 18 : index
    %413 = vector.load %arg4[%c0_220, %c18_221] : memref<64x100xf32, #tpu.memory_space<vmem>>, vector<64x64xf32>
    %414 = arith.maximumf %412, %413 : vector<64x64xf32>
    %c0_222 = arith.constant 0 : index
    %c19_223 = arith.constant 19 : index
    %415 = vector.load %arg4[%c0_222, %c19_223] : memref<64x100xf32, #tpu.memory_space<vmem>>, vector<64x64xf32>
    %cst_224 = arith.constant 0xFF800000 : f32
    %416 = vector.broadcast %cst_224 : f32 to vector<64x64xf32>
    %417 = arith.select %72, %415, %416 : vector<64x64xi1>, vector<64x64xf32>
    %418 = arith.maximumf %414, %417 : vector<64x64xf32>
    %c0_225 = arith.constant 0 : index
    %c20_226 = arith.constant 20 : index
    %419 = vector.load %arg4[%c0_225, %c20_226] : memref<64x100xf32, #tpu.memory_space<vmem>>, vector<64x64xf32>
    %cst_227 = arith.constant 0xFF800000 : f32
    %420 = vector.broadcast %cst_227 : f32 to vector<64x64xf32>
    %421 = arith.select %81, %419, %420 : vector<64x64xi1>, vector<64x64xf32>
    %422 = arith.maximumf %418, %421 : vector<64x64xf32>
    %cst_228 = arith.constant 1.000000e+00 : f32
    %423 = vector.broadcast %cst_228 : f32 to vector<8x64xf32>
    %424 = arith.mulf %366, %394 : vector<64x64xf32>
    %cst_229 = arith.constant dense<0.000000e+00> : vector<8x64xf32>
    %425 = tpu.matmul %423, %424, %cst_229 {dimension_numbers = #tpu.dot_dimension_numbers<[1], [1], [0], [0], [0, 0, 1, 0], [], []>} : vector<8x64xf32>, vector<64x64xf32>, vector<8x64xf32> -> vector<8x64xf32>
    %426 = vector.extract_strided_slice %425 {offsets = [0, 0], sizes = [1, 64], strides = [1, 1]} : vector<8x64xf32> to vector<1x64xf32>
    %427 = arith.mulf %318, %426 : vector<1x64xf32>
    %428 = arith.mulf %422, %347 : vector<64x64xf32>
    %cst_230 = arith.constant dense<0.000000e+00> : vector<8x64xf32>
    %429 = tpu.matmul %423, %428, %cst_230 {dimension_numbers = #tpu.dot_dimension_numbers<[1], [1], [0], [0], [0, 0, 1, 0], [], []>} : vector<8x64xf32>, vector<64x64xf32>, vector<8x64xf32> -> vector<8x64xf32>
    %430 = vector.extract_strided_slice %429 {offsets = [0, 0], sizes = [1, 64], strides = [1, 1]} : vector<8x64xf32> to vector<1x64xf32>
    %431 = arith.mulf %318, %430 : vector<1x64xf32>
    %cst_231 = arith.constant dense<0.000000e+00> : vector<8x64xf32>
    %432 = tpu.matmul %423, %366, %cst_231 {dimension_numbers = #tpu.dot_dimension_numbers<[1], [1], [0], [0], [0, 0, 1, 0], [], []>} : vector<8x64xf32>, vector<64x64xf32>, vector<8x64xf32> -> vector<8x64xf32>
    %433 = vector.extract_strided_slice %432 {offsets = [0, 0], sizes = [1, 64], strides = [1, 1]} : vector<8x64xf32> to vector<1x64xf32>
    %cst_232 = arith.constant dense<0.000000e+00> : vector<8x64xf32>
    %434 = tpu.matmul %423, %347, %cst_232 {dimension_numbers = #tpu.dot_dimension_numbers<[1], [1], [0], [0], [0, 0, 1, 0], [], []>} : vector<8x64xf32>, vector<64x64xf32>, vector<8x64xf32> -> vector<8x64xf32>
    %435 = vector.extract_strided_slice %434 {offsets = [0, 0], sizes = [1, 64], strides = [1, 1]} : vector<8x64xf32> to vector<1x64xf32>
    %cst_233 = arith.constant 1.000000e-07 : f32
    %436 = vector.broadcast %cst_233 : f32 to vector<1x64xf32>
    %437 = arith.addf %433, %436 : vector<1x64xf32>
    %438 = arith.divf %427, %437 : vector<1x64xf32>
    %cst_234 = arith.constant 1.000000e-07 : f32
    %439 = vector.broadcast %cst_234 : f32 to vector<1x64xf32>
    %440 = arith.addf %435, %439 : vector<1x64xf32>
    %441 = arith.divf %431, %440 : vector<1x64xf32>
    %cst_235 = arith.constant 2.000000e+00 : f32
    %442 = vector.broadcast %cst_235 : f32 to vector<1x64xf32>
    %443 = arith.mulf %442, %438 : vector<1x64xf32>
    %444 = arith.mulf %443, %441 : vector<1x64xf32>
    %445 = arith.addf %438, %441 : vector<1x64xf32>
    %cst_236 = arith.constant 1.000000e-07 : f32
    %446 = vector.broadcast %cst_236 : f32 to vector<1x64xf32>
    %447 = arith.addf %445, %446 : vector<1x64xf32>
    %448 = arith.divf %444, %447 : vector<1x64xf32>
    %cst_237 = arith.constant 1.000000e+00 : f32
    %449 = vector.broadcast %cst_237 : f32 to vector<1x64xf32>
    %450 = arith.subf %449, %448 : vector<1x64xf32>
    %c0_238 = arith.constant 0 : index
    %c0_239 = arith.constant 0 : index
    %c0_240 = arith.constant 0 : index
    %451 = vector.load %arg3[%c0_238, %c0_239, %c0_240] : memref<1x1x64xf32, #tpu.memory_space<vmem>>, vector<1x1x64xf32>
    %452 = vector.shape_cast %451 : vector<1x1x64xf32> to vector<1x64xf32>
    %453 = vector.shape_cast %450 : vector<1x64xf32> to vector<1x1x64xf32>
    tpu.vector_store %arg3[%c0_238, %c0_239, %c0_240], %453 {strides = array<i32>} : memref<1x1x64xf32, #tpu.memory_space<vmem>>, vector<1x1x64xf32>,
    return
  }
  func.func @transform_0(%arg0: i32) -> (i32, i32, i32) {
    %c0_i32 = arith.constant 0 : i32
    %c0_i32_0 = arith.constant 0 : i32
    %c0_i32_1 = arith.constant 0 : i32
    return %arg0, %c0_i32, %c0_i32_0 : i32, i32, i32
  }
  func.func @transform_1(%arg0: i32) -> (i32, i32, i32) {
    %c0_i32 = arith.constant 0 : i32
    %c0_i32_0 = arith.constant 0 : i32
    %c0_i32_1 = arith.constant 0 : i32
    return %arg0, %c0_i32, %c0_i32_0 : i32, i32, i32
  }
  func.func @transform_2(%arg0: i32) -> (i32, i32, i32) {
    %c0_i32 = arith.constant 0 : i32
    %c0_i32_0 = arith.constant 0 : i32
    %c0_i32_1 = arith.constant 0 : i32
    return %arg0, %c0_i32, %c0_i32_0 : i32, i32, i32
  }
}

</mosaic_0001>

<bundles_post_ra>
// kernel: boundary_loss_pallas.1
= control target key start
LH: loop header
LB: loop body
LE: loop exit
PB: predicated region body
PF: predicated region fallthrough
CT: control target
= control target key end

     0   :  { %s2681_s9 = smov 0   ;;  %s3894_s0 = inlined_call_operand.vmem [shape: f32[2,64,64], index: 0, kind: input, shape index: {}]   ;;  %s3895_s1 = inlined_call_operand.vmem [shape: f32[2,1,64], index: 1, kind: input, shape index: {}]   ;;  %s3896_s2 = inlined_call_operand.vmem [shape: f32[2,1,64], index: 2, kind: output, shape index: {}]  }
   0x1 LB: > { %s2398_s10 = sadd.s32 4294967295, %s2626_s9   ;;  %p2402_p0 = scmp.ge.s32.totalorder %s2626_s9, 1  ;;  %s2626_s9 = sphi %s2681_s9, %s12_s9  }
   0x2   : > { %p120_p1 = scmp.lt.s32.totalorder %s2626_s9, 3 }
   0x4   : > { %p121_p2 = pnand %p2402_p0, %p120_p1 }
   0x5   : > { %p2689_p3 = scmp.lt.s32.totalorder (!%p121_p2), %s2398_s10, 1  ;;  %s2630_s15 = smov (!%p121_p2), 18  }
   0x6   : > { %124 = sbr.rel (%p121_p2) target bundleno = 1824 (0x720), region = 28  ;;  %s2631_s16 = smov (!%p121_p2), 120  }
   0x7   : > { %s2632_s17 = smov (!%p121_p2), 112   ;;  %s2633_s22 = smov (!%p121_p2), 8  }
   0x8   : > { %s2634_s23 = smov (!%p121_p2), 110   ;;  %s2635_s24 = smov (!%p121_p2), 111  }
   0x9   : > { %s2636_s25 = smov (!%p121_p2), 109   ;;  %s2637_s26 = smov (!%p121_p2), 104  }
   0xa   : > { %s2638_s27 = smov (!%p121_p2), 96   ;;  %s2639_s28 = smov (!%p121_p2), 16  }
   0xb   : > { %vm163_vm0 = vcmask 146432   ;;  %v2628_v0 = vmov -inf   ;;  %vm172_vm1 = vcmask 818832   ;;  %v2629_v1 = vmov 0.0   ;;  %s3903_s10 = smov (!%p2689_p3, %s2398_s10), 1  ;;  %s2640_s29 = smov 108  }
   0xc   : > { %171 = vst.msk [vmem:[#allocation2 + $0x38] sm:$0xff] %vm163_vm0, %v2628_v0  ;;  %164 = vst.msk [vmem:[#allocation2] sm:$0xff] %vm163_vm0, %v2628_v0  ;;  %2488 = vmatprep.subr.mxu0 %v2629_v1  ;;  %2507 = vmatprep.subr.mxu1 %v2629_v1  ;;  %v181_v2 = vlaneseq  ;;  %s2711_s14 = scalar_lea.vmem %s3895_s1, %s3903_s10  ;;  %vm545_vm10 = vcmask 670864   ;;  %s2451_s18 = sshll.u32 %s3903_s10, 6 }
   0xd   : > { %165 = vst.msk [vmem:[#allocation2 + $0x8] sm:$0xff] %vm163_vm0, %v2628_v0  ;;  %166 = vst.msk [vmem:[#allocation2 + $0x10] sm:$0xff] %vm163_vm0, %v2628_v0  ;;  %v162_v3 = vld [vmem:[%s2711_s14] sm:$0x1]  ;;  %s2814_s21 = scalar_lea.vmem %s3894_s0, %s2451_s18  ;;  %s2641_s30 = smov 7  }
   0xe   : > { %167 = vst.msk [vmem:[#allocation2 + $0x18] sm:$0xff] %vm163_vm0, %v2628_v0  ;;  %168 = vst.msk [vmem:[#allocation2 + $0x20] sm:$0xff] %vm163_vm0, %v2628_v0  ;;  %v2715_v4 = vshrl.u32 %v181_v2, 7  ;;  %v465_v5 = vmax.f32 %v162_v3, 0.0  ;;  %v2823_v50 = vld [vmem:[%s2814_s21 + $0x38] sm:$0xff]  ;;  %v2831_v52 = vld [vmem:[%s2814_s21 + $0x30] sm:$0xff] }
   0xf   : > { %169 = vst.msk [vmem:[#allocation2 + $0x28] sm:$0xff] %vm163_vm0, %v2628_v0  ;;  %170 = vst.msk [vmem:[#allocation2 + $0x30] sm:$0xff] %vm163_vm0, %v2628_v0  ;;  %v809_v51 = vsub.f32 1.0, %v2823_v50  ;;  %v808_v53 = vsub.f32 1.0, %v2831_v52  ;;  %v2838_v54 = vld [vmem:[%s2814_s21 + $0x28] sm:$0xff]  ;;  %v2853_v3 = vld [vmem:[%s2814_s21 + $0x20] sm:$0xff] }
  0x10   : > { %180 = vst.msk [vmem:[#allocation2 + $0x38] sm:$0xff] %vm172_vm1, %v2628_v0  ;;  %179 = vst.msk [vmem:[#allocation2 + $0x30] sm:$0xff] %vm172_vm1, %v2628_v0  ;;  %v466_v6 = vmin.f32 %v465_v5, 63.0  ;;  %v352_v7 = vsub.s32 0, %v2715_v4  ;;  %v476_v9 = vadd.s32 56, %v2715_v4  ;;  %v475_v11 = vadd.s32 48, %v2715_v4 }
  0x11   : > { %173 = vst.msk [vmem:[#allocation2] sm:$0xff] %vm172_vm1, %v2628_v0  ;;  %174 = vst.msk [vmem:[#allocation2 + $0x8] sm:$0xff] %vm172_vm1, %v2628_v0  ;;  %v474_v12 = vadd.s32 40, %v2715_v4  ;;  %v473_v13 = vadd.s32 32, %v2715_v4  ;;  %v472_v15 = vadd.s32 24, %v2715_v4  ;;  %v471_v16 = vadd.s32 16, %v2715_v4 }
  0x12   : > { %175 = vst.msk [vmem:[#allocation2 + $0x10] sm:$0xff] %vm172_vm1, %v2628_v0  ;;  %176 = vst.msk [vmem:[#allocation2 + $0x18] sm:$0xff] %vm172_vm1, %v2628_v0  ;;  %v2564_v8 = vtrunc.f32 %v466_v6  ;;  %v470_v23 = vadd.s32 8, %v2715_v4  ;;  %v807_v55 = vsub.f32 1.0, %v2838_v54  ;;  %v2848_v59 = vld [vmem:[%s2814_s21 + $0x8] sm:$0xff]  ;;  %vm183_vm13 = vcmp.lt.s32.totalorder %v181_v2, 135 }
  0x13   : > { %177 = vst.msk [vmem:[#allocation2 + $0x20] sm:$0xff] %vm172_vm1, %v2628_v0  ;;  %178 = vst.msk [vmem:[#allocation2 + $0x28] sm:$0xff] %vm172_vm1, %v2628_v0  ;;  %v803_v0 = vsub.f32 1.0, %v2848_v59  ;;  %vm186_vm14 = vcmp.ge.s32.totalorder %v181_v2, 71  ;;  %vm187_vm15 = vcmp.lt.s32.totalorder %v181_v2, 206  ;;  %s2643_s3 = smov 88  }
  0x14   : > { %v2565_v10 = vcvt.f32.s32 %v2564_v8  ;;  %185 = vst.msk [vmem:[#allocation3] sm:$0x3] %vm183_vm13, %v2629_v1  ;;  %vm188_vm0 = vmand %vm186_vm14, %vm187_vm15  ;;  %s2644_s4 = smov 72   ;;  %s2645_s5 = smov 56   ;;  %vm255_vm13 = vcmask 785408   ;;  %vm262_vm14 = vcmask 719872  }
  0x15   : > { %189 = vst.msk [vmem:[#allocation3 + $0x1] sm:$0x3] %vm188_vm0, %v2629_v1  ;;  %s2646_s6 = smov 40   ;;  %s2647_s7 = smov 24   ;;  %vm269_vm15 = vcmask 654336   ;;  %vm278_vm0 = vcmask 588800  }
  0x16   : > { %v480_v14 = vrot.slane %v2565_v10, %v352_v7  ;;  %v806_v10 = vsub.f32 1.0, %v2853_v3  ;;  %s2648_s8 = smov 80   ;;  %s2649_s11 = smov 64  }
  0x17   : > { %s2650_s12 = smov 48   ;;  %s2651_s13 = smov 32  }
  0x18   : > { %vm488_vm2 = vcmp.eq.s32.totalorder %v476_v9, %v480_v14  ;;  %vm487_vm3 = vcmp.eq.s32.totalorder %v475_v11, %v480_v14  ;;  %vm486_vm4 = vcmp.eq.s32.totalorder %v474_v12, %v480_v14  ;;  %vm485_vm5 = vcmp.eq.s32.totalorder %v473_v13, %v480_v14  ;;  %v2861_v11 = vld [vmem:[%s2814_s21 + $0x18] sm:$0xff]  ;;  %s2655_s18 = smov 124   ;;  %s2656_s19 = smov 125  }
  0x19   : > { %v2727_v17 = vsel %vm488_vm2, 1.0, %v2629_v1  ;;  %v2730_v18 = vsel %vm487_vm3, 1.0, %v2629_v1  ;;  %v2733_v19 = vsel %vm486_vm4, 1.0, %v2629_v1  ;;  %v2736_v20 = vsel %vm485_vm5, 1.0, %v2629_v1  ;;  %s2657_s20 = smov 122  }
  0x1a   : > { %v512_v21 = vsub.f32 1.0, %v2727_v17  ;;  %v510_v22 = vsub.f32 1.0, %v2733_v19  ;;  %vm484_vm6 = vcmp.eq.s32.totalorder %v472_v15, %v480_v14  ;;  %vm483_vm7 = vcmp.eq.s32.totalorder %v471_v16, %v480_v14 }
  0x1b   : > { %v511_v24 = vsub.f32 1.0, %v2730_v18  ;;  %v509_v25 = vsub.f32 1.0, %v2736_v20  ;;  %v2750_v26 = vsel %vm484_vm6, 1.0, %v2629_v1  ;;  %v2753_v27 = vsel %vm483_vm7, 1.0, %v2629_v1 }
  0x1c   : > { %535 = vrot.lane.b32.xlu0 %v512_v21, %s2630_s15  ;;  %531 = vrot.lane.b32.xlu1 %v510_v22, %s2630_s15  ;;  %vm482_vm8 = vcmp.eq.s32.totalorder %v470_v23, %v480_v14  ;;  %vm481_vm9 = vcmp.eq.s32.totalorder %v2715_v4, %v480_v14  ;;  %v508_v28 = vsub.f32 1.0, %v2750_v26  ;;  %v507_v29 = vsub.f32 1.0, %v2753_v27  ;;  %v2869_v23 = vld [vmem:[%s2814_s21 + $0x10] sm:$0xff] }
  0x1d   : > { %v2765_v30 = vsel %vm482_vm8, 1.0, %v2629_v1  ;;  %v2768_v31 = vsel %vm481_vm9, 1.0, %v2629_v1  ;;  %v805_v16 = vsub.f32 1.0, %v2861_v11  ;;  %vm285_vm3 = vcmask 523264  }
  0x1e   : > { %v506_v32 = vsub.f32 1.0, %v2765_v30  ;;  %v505_v33 = vsub.f32 1.0, %v2768_v31  ;;  %vm3557_vm4 = vcmp.ge.s32.totalorder %v181_v2, 7  ;;  %vm3562_vm5 = vcmp.lt.s32.totalorder %v181_v2, 71 }
  0x1f   : > { %vm226_vm6 = vmand %vm3557_vm4, %vm3562_vm5  ;;  %vm2642_vm7 = vmmov 0   ;;  %vm234_vm8 = vcmask 982016   ;;  %vm241_vm9 = vcmask 916480  }
  0x20   : > { %533 = vrot.lane.b32.xlu0 %v511_v24, %s2630_s15  ;;  %529 = vrot.lane.b32.xlu1 %v509_v25, %s2630_s15 }
  0x21   : > { %2504 = vmatprep.mubr.msk.f32.mxu0 %vm2642_vm7, %v2629_v1  ;;  %2523 = vmatprep.mubr.msk.f32.mxu1 %vm2642_vm7, %v2629_v1 }
  0x24   : > { %527 = vrot.lane.b32.xlu0 %v508_v28, %s2630_s15  ;;  %525 = vrot.lane.b32.xlu1 %v507_v29, %s2630_s15 }
  0x28   : > { %523 = vrot.lane.b32.xlu0 %v506_v32, %s2630_s15  ;;  %521 = vrot.lane.b32.xlu1 %v505_v33, %s2630_s15 }
  0x8e   : > { %v536_v34 = vpop.permute.xlu0 %535  ;;  %v532_v35 = vpop.permute.xlu1 %531 }
  0x8f   : > { %553 = vst.msk [vmem:[#allocation2 + $0x38] sm:$0xff] %vm545_vm10, %v536_v34  ;;  %551 = vst.msk [vmem:[#allocation2 + $0x28] sm:$0xff] %vm545_vm10, %v532_v35 }
  0x92   : > { %v534_v36 = vpop.permute.xlu0 %533  ;;  %v530_v37 = vpop.permute.xlu1 %529 }
  0x93   : > { %552 = vst.msk [vmem:[#allocation2 + $0x30] sm:$0xff] %vm545_vm10, %v534_v36  ;;  %550 = vst.msk [vmem:[#allocation2 + $0x20] sm:$0xff] %vm545_vm10, %v530_v37 }
  0x96   : > { %v561_v38 = vld [vmem:[#allocation2 + $0x38] sm:$0xff]  ;;  %v528_v39 = vpop.permute.xlu0 %527  ;;  %v526_v40 = vpop.permute.xlu1 %525  ;;  %v559_v44 = vld [vmem:[#allocation2 + $0x28] sm:$0xff] }
  0x97   : > { %584 = vrot.lane.b32.xlu0 %v561_v38, %s2631_s16  ;;  %616 = vrot.lane.b32.xlu1 %v561_v38, %s2632_s17  ;;  %549 = vst.msk [vmem:[#allocation2 + $0x18] sm:$0xff] %vm545_vm10, %v528_v39  ;;  %548 = vst.msk [vmem:[#allocation2 + $0x10] sm:$0xff] %vm545_vm10, %v526_v40  ;;  %v2877_v39 = vld [vmem:[%s2814_s21] sm:$0xff]  ;;  %s2658_s21 = smov 123  }
  0x9a   : > { %v560_v41 = vld [vmem:[#allocation2 + $0x30] sm:$0xff]  ;;  %v524_v42 = vpop.permute.xlu0 %523  ;;  %v522_v43 = vpop.permute.xlu1 %521  ;;  %v558_v45 = vld [vmem:[#allocation2 + $0x20] sm:$0xff] }
  0x9b   : > { %582 = vrot.lane.b32.xlu0 %v560_v41, %s2631_s16  ;;  %614 = vrot.lane.b32.xlu1 %v560_v41, %s2632_s17  ;;  %547 = vst.msk [vmem:[#allocation2 + $0x8] sm:$0xff] %vm545_vm10, %v524_v42  ;;  %546 = vst.msk [vmem:[#allocation2] sm:$0xff] %vm545_vm10, %v522_v43 }
  0x9e   : > { %v557_v46 = vld [vmem:[#allocation2 + $0x18] sm:$0xff]  ;;  %v2802_v47 = vld [vmem:[#allocation2 + $0x10] sm:$0xff] }
  0x9f   : > { %580 = vrot.lane.b32.xlu0 %v559_v44, %s2631_s16  ;;  %612 = vrot.lane.b32.xlu1 %v559_v44, %s2632_s17 }
  0xa2   : > { %v2809_v48 = vld [vmem:[#allocation2 + $0x8] sm:$0xff]  ;;  %v2820_v49 = vld [vmem:[#allocation2] sm:$0xff] }
  0xa3   : > { %578 = vrot.lane.b32.xlu0 %v558_v45, %s2631_s16  ;;  %610 = vrot.lane.b32.xlu1 %v558_v45, %s2632_s17 }
  0xa7   : > { %576 = vrot.lane.b32.xlu0 %v557_v46, %s2631_s16  ;;  %608 = vrot.lane.b32.xlu1 %v557_v46, %s2632_s17 }
  0xab   : > { %574 = vrot.lane.b32.xlu0 %v2802_v47, %s2631_s16  ;;  %606 = vrot.lane.b32.xlu1 %v2802_v47, %s2632_s17 }
  0xaf   : > { %572 = vrot.lane.b32.xlu0 %v2809_v48, %s2631_s16  ;;  %604 = vrot.lane.b32.xlu1 %v2809_v48, %s2632_s17 }
  0xb3   : > { %570 = vrot.lane.b32.xlu0 %v2820_v49, %s2631_s16  ;;  %602 = vrot.lane.b32.xlu1 %v2820_v49, %s2632_s17 }
  0xb7   : > { %832 = vrot.lane.b32.xlu1 %v809_v51, %s2630_s15 }
  0xbb   : > { %830 = vrot.lane.b32.xlu1 %v808_v53, %s2630_s15 }
  0xbf   : > { %828 = vrot.lane.b32.xlu1 %v807_v55, %s2630_s15 }
 0x109   : > { %v585_v56 = vpop.permute.xlu0 %584  ;;  %v617_v57 = vpop.permute.xlu1 %616 }
 0x10a   : > { %v601_v58 = vmax.f32 %v561_v38, %v585_v56  ;;  %v804_v38 = vsub.f32 1.0, %v2869_v23 }
 0x10c   : > { %v633_v60 = vmax.f32 %v601_v58, %v617_v57 }
 0x10d   : > { %v583_v61 = vpop.permute.xlu0 %582  ;;  %v615_v62 = vpop.permute.xlu1 %614 }
 0x10e   : > { %v600_v63 = vmax.f32 %v560_v41, %v583_v61  ;;  %656 = vrot.lane.b32.xlu0 %v633_v60, %s2633_s22 }
 0x110   : > { %v632_v5 = vmax.f32 %v600_v63, %v615_v62 }
 0x111   : > { %v581_v6 = vpop.permute.xlu0 %580  ;;  %v613_v8 = vpop.permute.xlu1 %612 }
 0x112   : > { %v599_v9 = vmax.f32 %v559_v44, %v581_v6  ;;  %654 = vrot.lane.b32.xlu1 %v632_v5, %s2633_s22  ;;  %820 = vrot.lane.b32.xlu0 %v803_v0, %s2630_s15  ;;  %v802_v44 = vsub.f32 1.0, %v2877_v39 }
 0x114   : > { %v631_v12 = vmax.f32 %v599_v9, %v613_v8 }
 0x115   : > { %v579_v13 = vpop.permute.xlu0 %578  ;;  %v611_v14 = vpop.permute.xlu1 %610 }
 0x116   : > { %v598_v15 = vmax.f32 %v558_v45, %v579_v13  ;;  %652 = vrot.lane.b32.xlu0 %v631_v12, %s2633_s22  ;;  %826 = vrot.lane.b32.xlu1 %v806_v10, %s2630_s15 }
 0x118   : > { %v630_v34 = vmax.f32 %v598_v15, %v611_v14 }
 0x119   : > { %v577_v35 = vpop.permute.xlu0 %576  ;;  %v609_v36 = vpop.permute.xlu1 %608 }
 0x11a   : > { %v597_v37 = vmax.f32 %v557_v46, %v577_v35  ;;  %650 = vrot.lane.b32.xlu0 %v630_v34, %s2633_s22  ;;  %824 = vrot.lane.b32.xlu1 %v805_v16, %s2630_s15 }
 0x11c   : > { %v629_v40 = vmax.f32 %v597_v37, %v609_v36 }
 0x11d   : > { %v575_v41 = vpop.permute.xlu0 %574  ;;  %v607_v42 = vpop.permute.xlu1 %606 }
 0x11e   : > { %v596_v43 = vmax.f32 %v2802_v47, %v575_v41  ;;  %648 = vrot.lane.b32.xlu0 %v629_v40, %s2633_s22  ;;  %822 = vrot.lane.b32.xlu1 %v804_v38, %s2630_s15 }
 0x120   : > { %v628_v45 = vmax.f32 %v596_v43, %v607_v42 }
 0x121   : > { %v573_v46 = vpop.permute.xlu0 %572  ;;  %v605_v56 = vpop.permute.xlu1 %604 }
 0x122   : > { %v595_v57 = vmax.f32 %v2809_v48, %v573_v46  ;;  %646 = vrot.lane.b32.xlu0 %v628_v45, %s2633_s22  ;;  %818 = vrot.lane.b32.xlu1 %v802_v44, %s2630_s15 }
 0x124   : > { %v627_v47 = vmax.f32 %v595_v57, %v605_v56 }
 0x125   : > { %v571_v58 = vpop.permute.xlu0 %570  ;;  %v603_v60 = vpop.permute.xlu1 %602 }
 0x126   : > { %v594_v61 = vmax.f32 %v2820_v49, %v571_v58  ;;  %644 = vrot.lane.b32.xlu0 %v627_v47, %s2633_s22 }
 0x128   : > { %v626_v62 = vmax.f32 %v594_v61, %v603_v60 }
 0x129   : > { %v833_v63 = vpop.permute.xlu1 %832 }
 0x12a   : > { %642 = vrot.lane.b32.xlu0 %v626_v62, %s2633_s22 }
 0x12d   : > { %v831_v5 = vpop.permute.xlu1 %830 }
 0x131   : > { %v829_v6 = vpop.permute.xlu1 %828 }
 0x180   : > { %v657_v48 = vpop.permute.xlu0 %656 }
 0x181   : > { %673 = vst.msk [vmem:[#allocation2 + $0x38] sm:$0xff] %vm545_vm10, %v657_v48 }
 0x184   : > { %v655_v8 = vpop.permute.xlu1 %654  ;;  %v821_v9 = vpop.permute.xlu0 %820 }
 0x185   : > { %672 = vst.msk [vmem:[#allocation2 + $0x30] sm:$0xff] %vm545_vm10, %v655_v8  ;;  %v191_v8 = vand.u32 127, %v181_v2 }
 0x188   : > { %v653_v12 = vpop.permute.xlu0 %652  ;;  %v681_v13 = vld [vmem:[#allocation2 + $0x38] sm:$0xff]  ;;  %v827_v15 = vpop.permute.xlu1 %826 }
 0x189   : > { %671 = vst.msk [vmem:[#allocation2 + $0x28] sm:$0xff] %vm545_vm10, %v653_v12  ;;  %849 = vst.msk [vmem:[#allocation2 + $0x38] sm:$0xff] %vm545_vm10, %v833_v63  ;;  %736 = vrot.lane.b32.xlu0 %v681_v13, %s2634_s23  ;;  %704 = vrot.lane.b32.xlu1 %v681_v13, %s2635_s24 }
 0x18c   : > { %v651_v49 = vpop.permute.xlu0 %650  ;;  %v680_v14 = vld [vmem:[#allocation2 + $0x30] sm:$0xff]  ;;  %v825_v40 = vpop.permute.xlu1 %824 }
 0x18d   : > { %670 = vst.msk [vmem:[#allocation2 + $0x20] sm:$0xff] %vm545_vm10, %v651_v49  ;;  %768 = vrot.lane.b32.xlu0 %v681_v13, %s2636_s25  ;;  %848 = vst.msk [vmem:[#allocation2 + $0x30] sm:$0xff] %vm545_vm10, %v831_v5  ;;  %734 = vrot.lane.b32.xlu1 %v680_v14, %s2634_s23 }
 0x190   : > { %v649_v34 = vpop.permute.xlu0 %648  ;;  %v679_v35 = vld [vmem:[#allocation2 + $0x28] sm:$0xff]  ;;  %v823_v43 = vpop.permute.xlu1 %822  ;;  %v2933_v58 = vld [vmem:[#allocation2 + $0x38] sm:$0xff] }
 0x191   : > { %669 = vst.msk [vmem:[#allocation2 + $0x18] sm:$0xff] %vm545_vm10, %v649_v34  ;;  %702 = vrot.lane.b32.xlu0 %v680_v14, %s2635_s24  ;;  %766 = vrot.lane.b32.xlu1 %v680_v14, %s2636_s25  ;;  %847 = vst.msk [vmem:[#allocation2 + $0x28] sm:$0xff] %vm545_vm10, %v829_v6 }
 0x194   : > { %v647_v36 = vpop.permute.xlu0 %646  ;;  %v678_v37 = vld [vmem:[#allocation2 + $0x20] sm:$0xff]  ;;  %v819_v57 = vpop.permute.xlu1 %818  ;;  %v2939_v60 = vld [vmem:[#allocation2 + $0x30] sm:$0xff] }
 0x195   : > { %668 = vst.msk [vmem:[#allocation2 + $0x10] sm:$0xff] %vm545_vm10, %v647_v36  ;;  %732 = vrot.lane.b32.xlu0 %v679_v35, %s2634_s23  ;;  %700 = vrot.lane.b32.xlu1 %v679_v35, %s2635_s24  ;;  %846 = vst.msk [vmem:[#allocation2 + $0x20] sm:$0xff] %vm545_vm10, %v827_v15 }
 0x198   : > { %v645_v41 = vpop.permute.xlu0 %644  ;;  %v677_v42 = vld [vmem:[#allocation2 + $0x18] sm:$0xff]  ;;  %v2945_v61 = vld [vmem:[#allocation2 + $0x28] sm:$0xff] }
 0x199   : > { %667 = vst.msk [vmem:[#allocation2 + $0x8] sm:$0xff] %vm545_vm10, %v645_v41  ;;  %764 = vrot.lane.b32.xlu0 %v679_v35, %s2636_s25  ;;  %730 = vrot.lane.b32.xlu1 %v678_v37, %s2634_s23  ;;  %845 = vst.msk [vmem:[#allocation2 + $0x18] sm:$0xff] %vm545_vm10, %v825_v40 }
 0x19c   : > { %v643_v45 = vpop.permute.xlu0 %642  ;;  %v676_v46 = vld [vmem:[#allocation2 + $0x10] sm:$0xff]  ;;  %v2951_v62 = vld [vmem:[#allocation2 + $0x20] sm:$0xff] }
 0x19d   : > { %666 = vst.msk [vmem:[#allocation2] sm:$0xff] %vm545_vm10, %v643_v45  ;;  %698 = vrot.lane.b32.xlu0 %v678_v37, %s2635_s24  ;;  %762 = vrot.lane.b32.xlu1 %v678_v37, %s2636_s25  ;;  %844 = vst.msk [vmem:[#allocation2 + $0x10] sm:$0xff] %vm545_vm10, %v823_v43 }
 0x1a0   : > { %v675_v56 = vld [vmem:[#allocation2 + $0x8] sm:$0xff]  ;;  %v2957_v63 = vld [vmem:[#allocation2 + $0x18] sm:$0xff] }
 0x1a1   : > { %728 = vrot.lane.b32.xlu0 %v677_v42, %s2634_s23  ;;  %696 = vrot.lane.b32.xlu1 %v677_v42, %s2635_s24  ;;  %843 = vst.msk [vmem:[#allocation2 + $0x8] sm:$0xff] %vm545_vm10, %v821_v9  ;;  %v2982_v9 = vand.u32 7, %v191_v8 }
 0x1a3   : > { %v2985_v12 = vadd.s32 4294967295, %v2982_v9  ;;  %v2989_v13 = vadd.s32 1, %v2982_v9 }
 0x1a4   : > { %v674_v47 = vld [vmem:[#allocation2] sm:$0xff]  ;;  %v2963_v5 = vld [vmem:[#allocation2 + $0x10] sm:$0xff] }
 0x1a5   : > { %760 = vrot.lane.b32.xlu0 %v677_v42, %s2636_s25  ;;  %726 = vrot.lane.b32.xlu1 %v676_v46, %s2634_s23  ;;  %842 = vst.msk [vmem:[#allocation2] sm:$0xff] %vm545_vm10, %v819_v57  ;;  %vm209_vm11 = vcmp.ge.s32.totalorder %v2985_v12, 0  ;;  %vm214_vm12 = vcmp.lt.s32.totalorder %v2989_v13, 8  ;;  %v450_v13 = vadd.s32 7, %v2982_v9 }
 0x1a8   : > { %v2969_v6 = vld [vmem:[#allocation2 + $0x8] sm:$0xff] }
 0x1a9   : > { %694 = vrot.lane.b32.xlu0 %v676_v46, %s2635_s24  ;;  %758 = vrot.lane.b32.xlu1 %v676_v46, %s2636_s25 }
 0x1ac   : > { %v2975_v48 = vld [vmem:[#allocation2] sm:$0xff] }
 0x1ad   : > { %724 = vrot.lane.b32.xlu0 %v675_v56, %s2634_s23  ;;  %692 = vrot.lane.b32.xlu1 %v675_v56, %s2635_s24 }
 0x1b1   : > { %756 = vrot.lane.b32.xlu0 %v675_v56, %s2636_s25  ;;  %690 = vrot.lane.b32.xlu1 %v674_v47, %s2635_s24 }
 0x1b5   : > { %722 = vrot.lane.b32.xlu0 %v674_v47, %s2634_s23  ;;  %754 = vrot.lane.b32.xlu1 %v674_v47, %s2636_s25 }
 0x1b9   : > { %880 = vrot.lane.b32.xlu0 %v2933_v58, %s2631_s16  ;;  %912 = vrot.lane.b32.xlu1 %v2933_v58, %s2632_s17 }
 0x1bd   : > { %878 = vrot.lane.b32.xlu0 %v2939_v60, %s2631_s16  ;;  %910 = vrot.lane.b32.xlu1 %v2939_v60, %s2632_s17 }
 0x1c1   : > { %908 = vrot.lane.b32.xlu0 %v2945_v61, %s2632_s17  ;;  %876 = vrot.lane.b32.xlu1 %v2945_v61, %s2631_s16 }
 0x1c5   : > { %874 = vrot.lane.b32.xlu0 %v2951_v62, %s2631_s16  ;;  %906 = vrot.lane.b32.xlu1 %v2951_v62, %s2632_s17 }
 0x1c9   : > { %904 = vrot.lane.b32.xlu0 %v2957_v63, %s2632_s17  ;;  %872 = vrot.lane.b32.xlu1 %v2957_v63, %s2631_s16 }
 0x1cd   : > { %870 = vrot.lane.b32.xlu0 %v2963_v5, %s2631_s16  ;;  %902 = vrot.lane.b32.xlu1 %v2963_v5, %s2632_s17 }
 0x1d1   : > { %900 = vrot.lane.b32.xlu0 %v2969_v6, %s2632_s17  ;;  %868 = vrot.lane.b32.xlu1 %v2969_v6, %s2631_s16 }
 0x1d5   : > { %866 = vrot.lane.b32.xlu0 %v2975_v48, %s2631_s16  ;;  %898 = vrot.lane.b32.xlu1 %v2975_v48, %s2632_s17 }
 0x1fb   : > { %v737_v49 = vpop.permute.xlu0 %736  ;;  %v705_v14 = vpop.permute.xlu1 %704 }
 0x1fc   : > { %v721_v15 = vsel %vm209_vm11, %v705_v14, -inf }
 0x1fd   : > { %v753_v34 = vmax.f32 %v721_v15, %v737_v49 }
 0x1ff   : > { %v769_v35 = vpop.permute.xlu0 %768  ;;  %v735_v36 = vpop.permute.xlu1 %734 }
 0x200   : > { %v785_v37 = vsel %vm214_vm12, %v769_v35, -inf }
 0x201   : > { %v793_v40 = vmax.f32 %v753_v34, %v785_v37 }
 0x203   : > { %v703_v41 = vpop.permute.xlu0 %702  ;;  %v767_v42 = vpop.permute.xlu1 %766  ;;  %v2998_v43 = vsub.f32 %v793_v40, %v512_v21 }
 0x204   : > { %v720_v45 = vsel %vm209_vm11, %v703_v41, -inf  ;;  %v784_v56 = vsel %vm214_vm12, %v767_v42, -inf }
 0x205   : > { %v752_v46 = vmax.f32 %v720_v45, %v735_v36  ;;  %1120 = vrot.lane.b32.xlu1 %v2998_v43, %s2630_s15 }
 0x207   : > { %v792_v57 = vmax.f32 %v752_v46, %v784_v56  ;;  %v733_v47 = vpop.permute.xlu0 %732  ;;  %v701_v8 = vpop.permute.xlu1 %700 }
 0x208   : > { %v719_v49 = vsel %vm209_vm11, %v701_v8, -inf }
 0x209   : > { %v3010_v17 = vsub.f32 %v792_v57, %v511_v24  ;;  %v751_v21 = vmax.f32 %v719_v49, %v733_v47 }
 0x20b   : > { %v765_v14 = vpop.permute.xlu0 %764  ;;  %1118 = vrot.lane.b32.xlu1 %v3010_v17, %s2630_s15  ;;  %v731_v15 = vpop.permute.xlu1 %730 }
 0x20c   : > { %v783_v34 = vsel %vm214_vm12, %v765_v14, -inf }
 0x20d   : > { %v791_v35 = vmax.f32 %v751_v21, %v783_v34 }
 0x20f   : > { %v699_v36 = vpop.permute.xlu0 %698  ;;  %v763_v37 = vpop.permute.xlu1 %762  ;;  %v3018_v40 = vsub.f32 %v791_v35, %v510_v22 }
 0x210   : > { %v718_v18 = vsel %vm209_vm11, %v699_v36, -inf  ;;  %v782_v41 = vsel %vm214_vm12, %v763_v37, -inf }
 0x211   : > { %v750_v24 = vmax.f32 %v718_v18, %v731_v15  ;;  %1116 = vrot.lane.b32.xlu1 %v3018_v40, %s2630_s15 }
 0x213   : > { %v790_v42 = vmax.f32 %v750_v24, %v782_v41  ;;  %v729_v45 = vpop.permute.xlu0 %728  ;;  %v697_v46 = vpop.permute.xlu1 %696 }
 0x214   : > { %v717_v56 = vsel %vm209_vm11, %v697_v46, -inf }
 0x215   : > { %v3030_v19 = vsub.f32 %v790_v42, %v509_v25  ;;  %v749_v22 = vmax.f32 %v717_v56, %v729_v45 }
 0x217   : > { %v761_v57 = vpop.permute.xlu0 %760  ;;  %1114 = vrot.lane.b32.xlu1 %v3030_v19, %s2630_s15  ;;  %v727_v47 = vpop.permute.xlu1 %726 }
 0x218   : > { %v781_v8 = vsel %vm214_vm12, %v761_v57, -inf }
 0x219   : > { %v789_v49 = vmax.f32 %v749_v22, %v781_v8 }
 0x21b   : > { %v695_v21 = vpop.permute.xlu0 %694  ;;  %v759_v14 = vpop.permute.xlu1 %758  ;;  %v3038_v15 = vsub.f32 %v789_v49, %v508_v28 }
 0x21c   : > { %v716_v20 = vsel %vm209_vm11, %v695_v21, -inf  ;;  %v780_v34 = vsel %vm214_vm12, %v759_v14, -inf }
 0x21d   : > { %v748_v25 = vmax.f32 %v716_v20, %v727_v47  ;;  %1112 = vrot.lane.b32.xlu1 %v3038_v15, %s2630_s15 }
 0x21f   : > { %v788_v35 = vmax.f32 %v748_v25, %v780_v34  ;;  %v725_v36 = vpop.permute.xlu0 %724  ;;  %v693_v37 = vpop.permute.xlu1 %692 }
 0x220   : > { %v715_v18 = vsel %vm209_vm11, %v693_v37, -inf }
 0x221   : > { %v3050_v26 = vsub.f32 %v788_v35, %v507_v29  ;;  %v747_v28 = vmax.f32 %v715_v18, %v725_v36 }
 0x223   : > { %v757_v24 = vpop.permute.xlu0 %756  ;;  %1110 = vrot.lane.b32.xlu1 %v3050_v26, %s2630_s15  ;;  %v691_v41 = vpop.permute.xlu1 %690 }
 0x224   : > { %v779_v42 = vsel %vm214_vm12, %v757_v24, -inf  ;;  %v714_v46 = vsel %vm209_vm11, %v691_v41, -inf }
 0x225   : > { %v787_v45 = vmax.f32 %v747_v28, %v779_v42 }
 0x227   : > { %v723_v56 = vpop.permute.xlu0 %722  ;;  %v755_v22 = vpop.permute.xlu1 %754  ;;  %v3060_v27 = vsub.f32 %v787_v45, %v506_v32 }
 0x228   : > { %v746_v29 = vmax.f32 %v714_v46, %v723_v56  ;;  %v778_v57 = vsel %vm214_vm12, %v755_v22, -inf }
 0x229   : > { %1108 = vrot.lane.b32.xlu0 %v3060_v27, %s2630_s15 }
 0x22a   : > { %v786_v47 = vmax.f32 %v746_v29, %v778_v57 }
 0x22b   : > { %v881_v8 = vpop.permute.xlu0 %880  ;;  %v913_v49 = vpop.permute.xlu1 %912 }
 0x22c   : > { %v897_v21 = vmax.f32 %v2933_v58, %v881_v8  ;;  %v3069_v14 = vsub.f32 %v786_v47, %v505_v33 }
 0x22e   : > { %v929_v20 = vmax.f32 %v897_v21, %v913_v49  ;;  %1106 = vrot.lane.b32.xlu1 %v3069_v14, %s2630_s15 }
 0x22f   : > { %v879_v30 = vpop.permute.xlu0 %878  ;;  %v911_v32 = vpop.permute.xlu1 %910 }
 0x230   : > { %v896_v25 = vmax.f32 %v2939_v60, %v879_v30  ;;  %952 = vrot.lane.b32.xlu0 %v929_v20, %s2633_s22 }
 0x232   : > { %v928_v34 = vmax.f32 %v896_v25, %v911_v32 }
 0x233   : > { %v909_v35 = vpop.permute.xlu0 %908  ;;  %v877_v36 = vpop.permute.xlu1 %876 }
 0x234   : > { %v895_v37 = vmax.f32 %v2945_v61, %v877_v36  ;;  %950 = vrot.lane.b32.xlu1 %v928_v34, %s2633_s22 }
 0x236   : > { %v927_v31 = vmax.f32 %v895_v37, %v909_v35 }
 0x237   : > { %v875_v33 = vpop.permute.xlu0 %874  ;;  %v907_v58 = vpop.permute.xlu1 %906 }
 0x238   : > { %v894_v18 = vmax.f32 %v2951_v62, %v875_v33  ;;  %948 = vrot.lane.b32.xlu0 %v927_v31, %s2633_s22 }
 0x23a   : > { %v926_v28 = vmax.f32 %v894_v18, %v907_v58 }
 0x23b   : > { %v905_v24 = vpop.permute.xlu0 %904  ;;  %v873_v41 = vpop.permute.xlu1 %872 }
 0x23c   : > { %v893_v60 = vmax.f32 %v2957_v63, %v873_v41  ;;  %946 = vrot.lane.b32.xlu0 %v926_v28, %s2633_s22 }
 0x23e   : > { %v925_v42 = vmax.f32 %v893_v60, %v905_v24 }
 0x23f   : > { %v871_v45 = vpop.permute.xlu0 %870  ;;  %v903_v46 = vpop.permute.xlu1 %902 }
 0x240   : > { %v892_v61 = vmax.f32 %v2963_v5, %v871_v45  ;;  %944 = vrot.lane.b32.xlu0 %v925_v42, %s2633_s22 }
 0x242   : > { %v924_v56 = vmax.f32 %v892_v61, %v903_v46 }
 0x243   : > { %v901_v22 = vpop.permute.xlu0 %900  ;;  %v869_v29 = vpop.permute.xlu1 %868 }
 0x244   : > { %v891_v62 = vmax.f32 %v2969_v6, %v869_v29  ;;  %942 = vrot.lane.b32.xlu0 %v924_v56, %s2633_s22 }
 0x246   : > { %v923_v57 = vmax.f32 %v891_v62, %v901_v22 }
 0x247   : > { %v867_v47 = vpop.permute.xlu0 %866  ;;  %v899_v8 = vpop.permute.xlu1 %898 }
 0x248   : > { %v890_v63 = vmax.f32 %v2975_v48, %v867_v47  ;;  %940 = vrot.lane.b32.xlu0 %v923_v57, %s2633_s22 }
 0x24a   : > { %v922_v49 = vmax.f32 %v890_v63, %v899_v8 }
 0x24c   : > { %938 = vrot.lane.b32.xlu0 %v922_v49, %s2633_s22  ;;  %s2659_s22 = smov 121  }
 0x277   : > { %v1121_v5 = vpop.permute.xlu1 %1120 }
 0x27d   : > { %v1119_v21 = vpop.permute.xlu1 %1118 }
 0x283   : > { %v1117_v20 = vpop.permute.xlu1 %1116 }
 0x289   : > { %v1115_v30 = vpop.permute.xlu1 %1114 }
 0x28f   : > { %v1113_v32 = vpop.permute.xlu1 %1112 }
 0x295   : > { %v1111_v25 = vpop.permute.xlu1 %1110 }
 0x29b   : > { %v1109_v34 = vpop.permute.xlu0 %1108 }
 0x2a0   : > { %v1107_v6 = vpop.permute.xlu1 %1106 }
 0x2a2   : > { %v953_v35 = vpop.permute.xlu0 %952 }
 0x2a3   : > { %969 = vst.msk [vmem:[#allocation2 + $0x38] sm:$0xff] %vm545_vm10, %v953_v35 }
 0x2a6   : > { %v951_v36 = vpop.permute.xlu1 %950 }
 0x2a7   : > { %968 = vst.msk [vmem:[#allocation2 + $0x30] sm:$0xff] %vm545_vm10, %v951_v36 }
 0x2aa   : > { %v949_v48 = vpop.permute.xlu0 %948  ;;  %v977_v37 = vld [vmem:[#allocation2 + $0x38] sm:$0xff] }
 0x2ab   : > { %967 = vst.msk [vmem:[#allocation2 + $0x28] sm:$0xff] %vm545_vm10, %v949_v48  ;;  %1032 = vrot.lane.b32.xlu1 %v977_v37, %s2634_s23  ;;  %1137 = vst.msk [vmem:[#allocation2 + $0x38] sm:$0xff] %vm545_vm10, %v1121_v5  ;;  %1000 = vrot.lane.b32.xlu0 %v977_v37, %s2635_s24 }
 0x2ae   : > { %v947_v31 = vpop.permute.xlu0 %946  ;;  %v976_v33 = vld [vmem:[#allocation2 + $0x30] sm:$0xff] }
 0x2af   : > { %966 = vst.msk [vmem:[#allocation2 + $0x20] sm:$0xff] %vm545_vm10, %v947_v31  ;;  %1064 = vrot.lane.b32.xlu0 %v977_v37, %s2636_s25  ;;  %998 = vrot.lane.b32.xlu1 %v976_v33, %s2635_s24  ;;  %1136 = vst.msk [vmem:[#allocation2 + $0x30] sm:$0xff] %vm545_vm10, %v1119_v21 }
 0x2b2   : > { %v945_v58 = vpop.permute.xlu0 %944  ;;  %v975_v18 = vld [vmem:[#allocation2 + $0x28] sm:$0xff]  ;;  %v3128_v56 = vld [vmem:[#allocation2 + $0x38] sm:$0xff] }
 0x2b3   : > { %965 = vst.msk [vmem:[#allocation2 + $0x18] sm:$0xff] %vm545_vm10, %v945_v58  ;;  %1030 = vrot.lane.b32.xlu0 %v976_v33, %s2634_s23  ;;  %1062 = vrot.lane.b32.xlu1 %v976_v33, %s2636_s25  ;;  %1135 = vst.msk [vmem:[#allocation2 + $0x28] sm:$0xff] %vm545_vm10, %v1117_v20 }
 0x2b6   : > { %v943_v28 = vpop.permute.xlu0 %942  ;;  %v974_v24 = vld [vmem:[#allocation2 + $0x20] sm:$0xff]  ;;  %v3134_v22 = vld [vmem:[#allocation2 + $0x30] sm:$0xff] }
 0x2b7   : > { %964 = vst.msk [vmem:[#allocation2 + $0x10] sm:$0xff] %vm545_vm10, %v943_v28  ;;  %996 = vrot.lane.b32.xlu0 %v975_v18, %s2635_s24  ;;  %1028 = vrot.lane.b32.xlu1 %v975_v18, %s2634_s23  ;;  %1134 = vst.msk [vmem:[#allocation2 + $0x20] sm:$0xff] %vm545_vm10, %v1115_v30 }
 0x2ba   : > { %v941_v41 = vpop.permute.xlu0 %940  ;;  %v973_v60 = vld [vmem:[#allocation2 + $0x18] sm:$0xff]  ;;  %v3144_v29 = vld [vmem:[#allocation2 + $0x28] sm:$0xff] }
 0x2bb   : > { %963 = vst.msk [vmem:[#allocation2 + $0x8] sm:$0xff] %vm545_vm10, %v941_v41  ;;  %1060 = vrot.lane.b32.xlu0 %v975_v18, %s2636_s25  ;;  %994 = vrot.lane.b32.xlu1 %v974_v24, %s2635_s24  ;;  %1133 = vst.msk [vmem:[#allocation2 + $0x18] sm:$0xff] %vm545_vm10, %v1113_v32 }
 0x2be   : > { %v939_v42 = vpop.permute.xlu0 %938  ;;  %v972_v45 = vld [vmem:[#allocation2 + $0x10] sm:$0xff]  ;;  %v3154_v62 = vld [vmem:[#allocation2 + $0x20] sm:$0xff] }
 0x2bf   : > { %962 = vst.msk [vmem:[#allocation2] sm:$0xff] %vm545_vm10, %v939_v42  ;;  %1026 = vrot.lane.b32.xlu0 %v974_v24, %s2634_s23  ;;  %1058 = vrot.lane.b32.xlu1 %v974_v24, %s2636_s25  ;;  %1132 = vst.msk [vmem:[#allocation2 + $0x10] sm:$0xff] %vm545_vm10, %v1111_v25 }
 0x2c2   : > { %v971_v46 = vld [vmem:[#allocation2 + $0x8] sm:$0xff]  ;;  %v3164_v57 = vld [vmem:[#allocation2 + $0x18] sm:$0xff] }
 0x2c3   : > { %992 = vrot.lane.b32.xlu0 %v973_v60, %s2635_s24  ;;  %1024 = vrot.lane.b32.xlu1 %v973_v60, %s2634_s23  ;;  %1131 = vst.msk [vmem:[#allocation2 + $0x8] sm:$0xff] %vm545_vm10, %v1109_v34 }
 0x2c6   : > { %v970_v61 = vld [vmem:[#allocation2] sm:$0xff]  ;;  %v3174_v47 = vld [vmem:[#allocation2 + $0x10] sm:$0xff] }
 0x2c7   : > { %1056 = vrot.lane.b32.xlu0 %v973_v60, %s2636_s25  ;;  %990 = vrot.lane.b32.xlu1 %v972_v45, %s2635_s24  ;;  %1130 = vst.msk [vmem:[#allocation2] sm:$0xff] %vm545_vm10, %v1107_v6 }
 0x2ca   : > { %v3184_v8 = vld [vmem:[#allocation2 + $0x8] sm:$0xff] }
 0x2cb   : > { %1022 = vrot.lane.b32.xlu0 %v972_v45, %s2634_s23  ;;  %1054 = vrot.lane.b32.xlu1 %v972_v45, %s2636_s25 }
 0x2ce   : > { %v3194_v63 = vld [vmem:[#allocation2] sm:$0xff] }
 0x2cf   : > { %1020 = vrot.lane.b32.xlu0 %v971_v46, %s2634_s23  ;;  %988 = vrot.lane.b32.xlu1 %v971_v46, %s2635_s24 }
 0x2d3   : > { %1052 = vrot.lane.b32.xlu0 %v971_v46, %s2636_s25  ;;  %986 = vrot.lane.b32.xlu1 %v970_v61, %s2635_s24 }
 0x2d7   : > { %1018 = vrot.lane.b32.xlu0 %v970_v61, %s2634_s23  ;;  %1050 = vrot.lane.b32.xlu1 %v970_v61, %s2636_s25 }
 0x2db   : > { %1168 = vrot.lane.b32.xlu0 %v3128_v56, %s2631_s16  ;;  %1200 = vrot.lane.b32.xlu1 %v3128_v56, %s2632_s17 }
 0x2df   : > { %1232 = vrot.lane.b32.xlu1 %v3128_v56, %s2637_s26  ;;  %1166 = vrot.lane.b32.xlu0 %v3134_v22, %s2631_s16 }
 0x2e3   : > { %1264 = vrot.lane.b32.xlu1 %v3128_v56, %s2638_s27  ;;  %1198 = vrot.lane.b32.xlu0 %v3134_v22, %s2632_s17 }
 0x2e7   : > { %1230 = vrot.lane.b32.xlu1 %v3134_v22, %s2637_s26  ;;  %1164 = vrot.lane.b32.xlu0 %v3144_v29, %s2631_s16 }
 0x2eb   : > { %1262 = vrot.lane.b32.xlu1 %v3134_v22, %s2638_s27  ;;  %1196 = vrot.lane.b32.xlu0 %v3144_v29, %s2632_s17 }
 0x2ef   : > { %1162 = vrot.lane.b32.xlu1 %v3154_v62, %s2631_s16  ;;  %1228 = vrot.lane.b32.xlu0 %v3144_v29, %s2637_s26 }
 0x2f3   : > { %1194 = vrot.lane.b32.xlu1 %v3154_v62, %s2632_s17  ;;  %1260 = vrot.lane.b32.xlu0 %v3144_v29, %s2638_s27 }
 0x2f7   : > { %1226 = vrot.lane.b32.xlu1 %v3154_v62, %s2637_s26  ;;  %1160 = vrot.lane.b32.xlu0 %v3164_v57, %s2631_s16 }
 0x2fb   : > { %1258 = vrot.lane.b32.xlu1 %v3154_v62, %s2638_s27  ;;  %1192 = vrot.lane.b32.xlu0 %v3164_v57, %s2632_s17 }
 0x2ff   : > { %1158 = vrot.lane.b32.xlu1 %v3174_v47, %s2631_s16  ;;  %1224 = vrot.lane.b32.xlu0 %v3164_v57, %s2637_s26 }
 0x303   : > { %1190 = vrot.lane.b32.xlu1 %v3174_v47, %s2632_s17  ;;  %1256 = vrot.lane.b32.xlu0 %v3164_v57, %s2638_s27 }
 0x307   : > { %1222 = vrot.lane.b32.xlu1 %v3174_v47, %s2637_s26  ;;  %1156 = vrot.lane.b32.xlu0 %v3184_v8, %s2631_s16 }
 0x30b   : > { %1254 = vrot.lane.b32.xlu1 %v3174_v47, %s2638_s27  ;;  %1188 = vrot.lane.b32.xlu0 %v3184_v8, %s2632_s17 }
 0x30f   : > { %1154 = vrot.lane.b32.xlu1 %v3194_v63, %s2631_s16  ;;  %1220 = vrot.lane.b32.xlu0 %v3184_v8, %s2637_s26 }
 0x313   : > { %1186 = vrot.lane.b32.xlu1 %v3194_v63, %s2632_s17  ;;  %1252 = vrot.lane.b32.xlu0 %v3184_v8, %s2638_s27 }
 0x317   : > { %1250 = vrot.lane.b32.xlu1 %v3194_v63, %s2638_s27  ;;  %1218 = vrot.lane.b32.xlu0 %v3194_v63, %s2637_s26 }
 0x31d   : > { %v1001_v49 = vpop.permute.xlu0 %1000  ;;  %v1033_v5 = vpop.permute.xlu1 %1032 }
 0x31e   : > { %v1017_v21 = vsel %vm209_vm11, %v1001_v49, -inf }
 0x31f   : > { %v1049_v20 = vmax.f32 %v1017_v21, %v1033_v5 }
 0x321   : > { %v1065_v30 = vpop.permute.xlu0 %1064  ;;  %v999_v32 = vpop.permute.xlu1 %998 }
 0x322   : > { %v1081_v25 = vsel %vm214_vm12, %v1065_v30, -inf  ;;  %v1016_v35 = vsel %vm209_vm11, %v999_v32, -inf }
 0x323   : > { %v1089_v34 = vmax.f32 %v1049_v20, %v1081_v25 }
 0x325   : > { %v3214_v6 = vsub.f32 %v1089_v34, %v809_v51  ;;  %v1031_v36 = vpop.permute.xlu0 %1030  ;;  %v1063_v48 = vpop.permute.xlu1 %1062 }
 0x326   : > { %v1048_v37 = vmax.f32 %v1016_v35, %v1031_v36  ;;  %v1080_v31 = vsel %vm214_vm12, %v1063_v48, -inf }
 0x327   : > { %1544 = vrot.lane.b32.xlu1 %v3214_v6, %s2630_s15 }
 0x328   : > { %v1088_v33 = vmax.f32 %v1048_v37, %v1080_v31 }
 0x329   : > { %v997_v58 = vpop.permute.xlu0 %996  ;;  %v1029_v18 = vpop.permute.xlu1 %1028 }
 0x32a   : > { %v3224_v50 = vsub.f32 %v1088_v33, %v808_v53  ;;  %v1015_v51 = vsel %vm209_vm11, %v997_v58, -inf }
 0x32b   : > { %v1047_v28 = vmax.f32 %v1015_v51, %v1029_v18 }
 0x32c   : > { %1542 = vrot.lane.b32.xlu1 %v3224_v50, %s2630_s15 }
 0x32d   : > { %v1061_v24 = vpop.permute.xlu0 %1060  ;;  %v995_v41 = vpop.permute.xlu1 %994 }
 0x32e   : > { %v1079_v60 = vsel %vm214_vm12, %v1061_v24, -inf  ;;  %v1014_v52 = vsel %vm209_vm11, %v995_v41, -inf }
 0x32f   : > { %v1087_v42 = vmax.f32 %v1047_v28, %v1079_v60 }
 0x331   : > { %v3234_v45 = vsub.f32 %v1087_v42, %v807_v55  ;;  %v1027_v53 = vpop.permute.xlu0 %1026  ;;  %v1059_v46 = vpop.permute.xlu1 %1058 }
 0x332   : > { %v1046_v61 = vmax.f32 %v1014_v52, %v1027_v53  ;;  %v1078_v49 = vsel %vm214_vm12, %v1059_v46, -inf }
 0x333   : > { %1540 = vrot.lane.b32.xlu1 %v3234_v45, %s2630_s15 }
 0x334   : > { %v1086_v5 = vmax.f32 %v1046_v61, %v1078_v49 }
 0x335   : > { %v993_v21 = vpop.permute.xlu0 %992  ;;  %v1025_v20 = vpop.permute.xlu1 %1024 }
 0x336   : > { %v3244_v54 = vsub.f32 %v1086_v5, %v806_v10  ;;  %v1013_v55 = vsel %vm209_vm11, %v993_v21, -inf }
 0x337   : > { %v1045_v30 = vmax.f32 %v1013_v55, %v1025_v20 }
 0x338   : > { %1538 = vrot.lane.b32.xlu1 %v3244_v54, %s2630_s15 }
 0x339   : > { %v1057_v32 = vpop.permute.xlu0 %1056  ;;  %v991_v25 = vpop.permute.xlu1 %990 }
 0x33a   : > { %v1077_v34 = vsel %vm214_vm12, %v1057_v32, -inf  ;;  %v1012_v3 = vsel %vm209_vm11, %v991_v25, -inf }
 0x33b   : > { %v1085_v35 = vmax.f32 %v1045_v30, %v1077_v34 }
 0x33d   : > { %v3254_v36 = vsub.f32 %v1085_v35, %v805_v16  ;;  %v1023_v10 = vpop.permute.xlu0 %1022  ;;  %v1055_v48 = vpop.permute.xlu1 %1054 }
 0x33e   : > { %v1044_v37 = vmax.f32 %v1012_v3, %v1023_v10  ;;  %v1076_v31 = vsel %vm214_vm12, %v1055_v48, -inf }
 0x33f   : > { %1536 = vrot.lane.b32.xlu1 %v3254_v36, %s2630_s15 }
 0x340   : > { %v1084_v33 = vmax.f32 %v1044_v37, %v1076_v31 }
 0x341   : > { %v1021_v58 = vpop.permute.xlu0 %1020  ;;  %v989_v18 = vpop.permute.xlu1 %988 }
 0x342   : > { %v3264_v11 = vsub.f32 %v1084_v33, %v804_v38  ;;  %v1011_v16 = vsel %vm209_vm11, %v989_v18, -inf }
 0x343   : > { %v1043_v51 = vmax.f32 %v1011_v16, %v1021_v58 }
 0x344   : > { %1534 = vrot.lane.b32.xlu1 %v3264_v11, %s2630_s15 }
 0x345   : > { %v1053_v28 = vpop.permute.xlu0 %1052  ;;  %v987_v24 = vpop.permute.xlu1 %986 }
 0x346   : > { %v1075_v41 = vsel %vm214_vm12, %v1053_v28, -inf  ;;  %v1010_v23 = vsel %vm209_vm11, %v987_v24, -inf }
 0x347   : > { %v1083_v60 = vmax.f32 %v1043_v51, %v1075_v41 }
 0x349   : > { %v3274_v42 = vsub.f32 %v1083_v60, %v803_v0  ;;  %v1019_v38 = vpop.permute.xlu0 %1018  ;;  %v1051_v52 = vpop.permute.xlu1 %1050 }
 0x34a   : > { %v1042_v53 = vmax.f32 %v1010_v23, %v1019_v38  ;;  %v1074_v46 = vsel %vm214_vm12, %v1051_v52, -inf }
 0x34b   : > { %1532 = vrot.lane.b32.xlu0 %v3274_v42, %s2630_s15 }
 0x34c   : > { %v1082_v61 = vmax.f32 %v1042_v53, %v1074_v46 }
 0x34d   : > { %v1169_v49 = vpop.permute.xlu0 %1168  ;;  %v1201_v5 = vpop.permute.xlu1 %1200 }
 0x34e   : > { %v3284_v59 = vsub.f32 %v1082_v61, %v802_v44  ;;  %v1185_v0 = vmax.f32 %v3128_v56, %v1169_v49 }
 0x350   : > { %v1217_v21 = vmax.f32 %v1185_v0, %v1201_v5  ;;  %1530 = vrot.lane.b32.xlu1 %v3284_v59, %s2630_s15  ;;  %s2653_s15 = smov 126  }
 0x351   : > { %v1167_v20 = vpop.permute.xlu0 %1166  ;;  %v1233_v55 = vpop.permute.xlu1 %1232 }
 0x352   : > { %v1249_v30 = vmax.f32 %v1217_v21, %v1233_v55  ;;  %v1184_v35 = vmax.f32 %v3134_v22, %v1167_v20 }
 0x355   : > { %v1199_v32 = vpop.permute.xlu0 %1198  ;;  %v1265_v25 = vpop.permute.xlu1 %1264 }
 0x356   : > { %v1281_v34 = vmax.f32 %v1249_v30, %v1265_v25  ;;  %v1216_v3 = vmax.f32 %v1184_v35, %v1199_v32 }
 0x358   : > { %1304 = vrot.lane.b32.xlu0 %v1281_v34, %s2639_s28 }
 0x359   : > { %v1165_v39 = vpop.permute.xlu0 %1164  ;;  %v1231_v44 = vpop.permute.xlu1 %1230 }
 0x35a   : > { %v1248_v10 = vmax.f32 %v1216_v3, %v1231_v44  ;;  %v1183_v31 = vmax.f32 %v3144_v29, %v1165_v39 }
 0x35d   : > { %v1197_v56 = vpop.permute.xlu0 %1196  ;;  %v1263_v48 = vpop.permute.xlu1 %1262 }
 0x35e   : > { %v1280_v37 = vmax.f32 %v1248_v10, %v1263_v48  ;;  %v1215_v18 = vmax.f32 %v1183_v31, %v1197_v56 }
 0x360   : > { %1302 = vrot.lane.b32.xlu1 %v1280_v37, %s2639_s28 }
 0x361   : > { %v1229_v33 = vpop.permute.xlu0 %1228  ;;  %v1163_v58 = vpop.permute.xlu1 %1162 }
 0x362   : > { %v1247_v16 = vmax.f32 %v1215_v18, %v1229_v33  ;;  %v1182_v24 = vmax.f32 %v3154_v62, %v1163_v58 }
 0x365   : > { %v1261_v51 = vpop.permute.xlu0 %1260  ;;  %v1195_v22 = vpop.permute.xlu1 %1194 }
 0x366   : > { %v1279_v28 = vmax.f32 %v1247_v16, %v1261_v51  ;;  %v1214_v23 = vmax.f32 %v1182_v24, %v1195_v22 }
 0x368   : > { %1300 = vrot.lane.b32.xlu0 %v1279_v28, %s2639_s28 }
 0x369   : > { %v1161_v41 = vpop.permute.xlu0 %1160  ;;  %v1227_v60 = vpop.permute.xlu1 %1226 }
 0x36a   : > { %v1246_v38 = vmax.f32 %v1214_v23, %v1227_v60  ;;  %v1181_v46 = vmax.f32 %v3164_v57, %v1161_v41 }
 0x36d   : > { %v1193_v52 = vpop.permute.xlu0 %1192  ;;  %v1259_v53 = vpop.permute.xlu1 %1258 }
 0x36e   : > { %v1278_v29 = vmax.f32 %v1246_v38, %v1259_v53  ;;  %v1213_v5 = vmax.f32 %v1181_v46, %v1193_v52 }
 0x370   : > { %1298 = vrot.lane.b32.xlu0 %v1278_v29, %s2639_s28 }
 0x371   : > { %v1225_v61 = vpop.permute.xlu0 %1224  ;;  %v1159_v49 = vpop.permute.xlu1 %1158 }
 0x372   : > { %v1245_v0 = vmax.f32 %v1213_v5, %v1225_v61  ;;  %v1180_v55 = vmax.f32 %v3174_v47, %v1159_v49 }
 0x375   : > { %v1257_v21 = vpop.permute.xlu0 %1256  ;;  %v1191_v20 = vpop.permute.xlu1 %1190 }
 0x376   : > { %v1277_v62 = vmax.f32 %v1245_v0, %v1257_v21  ;;  %v1212_v25 = vmax.f32 %v1180_v55, %v1191_v20 }
 0x378   : > { %1296 = vrot.lane.b32.xlu0 %v1277_v62, %s2639_s28 }
 0x379   : > { %v1157_v30 = vpop.permute.xlu0 %1156  ;;  %v1223_v32 = vpop.permute.xlu1 %1222 }
 0x37a   : > { %v1244_v34 = vmax.f32 %v1212_v25, %v1223_v32  ;;  %v1179_v44 = vmax.f32 %v3184_v8, %v1157_v30 }
 0x37d   : > { %v1189_v35 = vpop.permute.xlu0 %1188  ;;  %v1255_v39 = vpop.permute.xlu1 %1254 }
 0x37e   : > { %v1276_v57 = vmax.f32 %v1244_v34, %v1255_v39  ;;  %v1211_v56 = vmax.f32 %v1179_v44, %v1189_v35 }
 0x380   : > { %1294 = vrot.lane.b32.xlu0 %v1276_v57, %s2639_s28 }
 0x381   : > { %v1221_v3 = vpop.permute.xlu0 %1220  ;;  %v1155_v10 = vpop.permute.xlu1 %1154 }
 0x382   : > { %v1243_v48 = vmax.f32 %v1211_v56, %v1221_v3  ;;  %v1178_v47 = vmax.f32 %v3194_v63, %v1155_v10 }
 0x385   : > { %v1253_v37 = vpop.permute.xlu0 %1252  ;;  %v1187_v31 = vpop.permute.xlu1 %1186 }
 0x386   : > { %v1275_v33 = vmax.f32 %v1243_v48, %v1253_v37  ;;  %v1210_v58 = vmax.f32 %v1178_v47, %v1187_v31  ;;  %v3454_v37 = vadd.s32 4294967294, %v2982_v9 }
 0x388   : > { %1292 = vrot.lane.b32.xlu0 %v1275_v33, %s2639_s28  ;;  %vm205_vm1 = vcmp.ge.s32.totalorder %v3454_v37, 0 }
 0x389   : > { %v1219_v18 = vpop.permute.xlu0 %1218  ;;  %v1251_v51 = vpop.permute.xlu1 %1250 }
 0x38a   : > { %v1242_v16 = vmax.f32 %v1210_v58, %v1219_v18  ;;  %v2618_v58 = vld [vmem:[%s2711_s14] sm:$0x1] }
 0x38c   : > { %v1274_v22 = vmax.f32 %v1242_v16, %v1251_v51 }
 0x38e   : > { %1290 = vrot.lane.b32.xlu0 %v1274_v22, %s2639_s28 }
 0x399   : > { %v1545_v8 = vpop.permute.xlu1 %1544 }
 0x39e   : > { %v1543_v28 = vpop.permute.xlu1 %1542 }
 0x3a5   : > { %v1541_v24 = vpop.permute.xlu1 %1540 }
 0x3aa   : > { %v1539_v41 = vpop.permute.xlu1 %1538 }
 0x3b1   : > { %v1537_v60 = vpop.permute.xlu1 %1536 }
 0x3b6   : > { %v1535_v38 = vpop.permute.xlu1 %1534 }
 0x3bd   : > { %v1533_v23 = vpop.permute.xlu0 %1532 }
 0x3c2   : > { %v1531_v63 = vpop.permute.xlu1 %1530 }
 0x3ca   : > { %v1305_v52 = vpop.permute.xlu0 %1304 }
 0x3cb   : > { %1321 = vst.msk [vmem:[#allocation2 + $0x38] sm:$0xff] %vm545_vm10, %v1305_v52 }
 0x3d2   : > { %v1329_v53 = vld [vmem:[#allocation2 + $0x38] sm:$0xff]  ;;  %v1303_v29 = vpop.permute.xlu1 %1302 }
 0x3d3   : > { %1561 = vst.msk [vmem:[#allocation2 + $0x38] sm:$0xff] %vm545_vm10, %v1545_v8  ;;  %1320 = vst.msk [vmem:[#allocation2 + $0x30] sm:$0xff] %vm545_vm10, %v1303_v29  ;;  %1384 = vrot.lane.b32.xlu1 %v1329_v53, %s2635_s24  ;;  %1352 = vrot.lane.b32.xlu0 %v1329_v53, %s2632_s17  ;;  %v3473_v8 = vadd.s32 2, %v2982_v9 }
 0x3d5   : > { %vm218_vm2 = vcmp.lt.s32.totalorder %v3473_v8, 8 }
 0x3d7   : > { %1424 = vrot.lane.b32.xlu0 %v1329_v53, %s2634_s23 }
 0x3da   : > { %v1328_v46 = vld [vmem:[#allocation2 + $0x30] sm:$0xff]  ;;  %v1301_v61 = vpop.permute.xlu0 %1300  ;;  %v3331_v20 = vld [vmem:[#allocation2 + $0x38] sm:$0xff] }
 0x3db   : > { %1560 = vst.msk [vmem:[#allocation2 + $0x30] sm:$0xff] %vm545_vm10, %v1543_v28  ;;  %1319 = vst.msk [vmem:[#allocation2 + $0x28] sm:$0xff] %vm545_vm10, %v1301_v61  ;;  %1382 = vrot.lane.b32.xlu1 %v1328_v46, %s2635_s24  ;;  %1350 = vrot.lane.b32.xlu0 %v1328_v46, %s2632_s17 }
 0x3df   : > { %1456 = vrot.lane.b32.xlu0 %v1329_v53, %s2636_s25 }
 0x3e2   : > { %v3315_v49 = vld [vmem:[#allocation2 + $0x28] sm:$0xff]  ;;  %v1299_v5 = vpop.permute.xlu0 %1298  ;;  %v3349_v25 = vld [vmem:[#allocation2 + $0x30] sm:$0xff] }
 0x3e3   : > { %1559 = vst.msk [vmem:[#allocation2 + $0x28] sm:$0xff] %vm545_vm10, %v1541_v24  ;;  %1318 = vst.msk [vmem:[#allocation2 + $0x20] sm:$0xff] %vm545_vm10, %v1299_v5  ;;  %1380 = vrot.lane.b32.xlu1 %v3315_v49, %s2635_s24  ;;  %1496 = vrot.lane.b32.xlu0 %v1329_v53, %s2640_s29 }
 0x3e7   : > { %1422 = vrot.lane.b32.xlu0 %v1328_v46, %s2634_s23 }
 0x3ea   : > { %v3323_v0 = vld [vmem:[#allocation2 + $0x20] sm:$0xff]  ;;  %v1297_v21 = vpop.permute.xlu0 %1296  ;;  %v3364_v39 = vld [vmem:[#allocation2 + $0x28] sm:$0xff] }
 0x3eb   : > { %1558 = vst.msk [vmem:[#allocation2 + $0x20] sm:$0xff] %vm545_vm10, %v1539_v41  ;;  %1317 = vst.msk [vmem:[#allocation2 + $0x18] sm:$0xff] %vm545_vm10, %v1297_v21  ;;  %1378 = vrot.lane.b32.xlu1 %v3323_v0, %s2635_s24  ;;  %1348 = vrot.lane.b32.xlu0 %v3315_v49, %s2632_s17 }
 0x3ef   : > { %1624 = vrot.lane.b32.xlu1 %v3331_v20, %s2632_s17  ;;  %1454 = vrot.lane.b32.xlu0 %v1328_v46, %s2636_s25 }
 0x3f2   : > { %v3336_v62 = vld [vmem:[#allocation2 + $0x18] sm:$0xff]  ;;  %v1295_v55 = vpop.permute.xlu0 %1294  ;;  %v3378_v44 = vld [vmem:[#allocation2 + $0x20] sm:$0xff] }
 0x3f3   : > { %1557 = vst.msk [vmem:[#allocation2 + $0x18] sm:$0xff] %vm545_vm10, %v1537_v60  ;;  %1316 = vst.msk [vmem:[#allocation2 + $0x10] sm:$0xff] %vm545_vm10, %v1295_v55  ;;  %1656 = vrot.lane.b32.xlu1 %v3331_v20, %s2637_s26  ;;  %1494 = vrot.lane.b32.xlu0 %v1328_v46, %s2640_s29 }
 0x3f7   : > { %1688 = vrot.lane.b32.xlu1 %v3331_v20, %s2638_s27  ;;  %1420 = vrot.lane.b32.xlu0 %v3315_v49, %s2634_s23 }
 0x3fa   : > { %v3347_v30 = vld [vmem:[#allocation2 + $0x10] sm:$0xff]  ;;  %v1293_v32 = vpop.permute.xlu0 %1292  ;;  %v3388_v3 = vld [vmem:[#allocation2 + $0x18] sm:$0xff] }
 0x3fb   : > { %1556 = vst.msk [vmem:[#allocation2 + $0x10] sm:$0xff] %vm545_vm10, %v1535_v38  ;;  %1315 = vst.msk [vmem:[#allocation2 + $0x8] sm:$0xff] %vm545_vm10, %v1293_v32  ;;  %1346 = vrot.lane.b32.xlu0 %v3323_v0, %s2632_s17  ;;  %1654 = vrot.lane.b32.xlu1 %v3349_v25, %s2637_s26 }
 0x3ff   : > { %1592 = vrot.lane.b32.xlu0 %v3331_v20, %s2631_s16  ;;  %1686 = vrot.lane.b32.xlu1 %v3349_v25, %s2638_s27 }
 0x400   : > { %v1291_v34 = vpop.permute.xlu0 %1290 }
 0x401   : > { %1314 = vst.msk [vmem:[#allocation2] sm:$0xff] %vm545_vm10, %v1291_v34 }
 0x402   : > { %v3362_v35 = vld [vmem:[#allocation2 + $0x8] sm:$0xff]  ;;  %v3398_v10 = vld [vmem:[#allocation2 + $0x10] sm:$0xff] }
 0x403   : > { %1555 = vst.msk [vmem:[#allocation2 + $0x8] sm:$0xff] %vm545_vm10, %v1533_v23  ;;  %1652 = vrot.lane.b32.xlu1 %v3364_v39, %s2637_s26  ;;  %1590 = vrot.lane.b32.xlu0 %v3349_v25, %s2631_s16 }
 0x407   : > { %1684 = vrot.lane.b32.xlu1 %v3364_v39, %s2638_s27  ;;  %1622 = vrot.lane.b32.xlu0 %v3349_v25, %s2632_s17 }
 0x408   : > { %v3375_v57 = vld [vmem:[#allocation2] sm:$0xff] }
 0x409   : > { %1554 = vst.msk [vmem:[#allocation2] sm:$0xff] %vm545_vm10, %v1531_v63 }
 0x40a   : > { %v3408_v56 = vld [vmem:[#allocation2 + $0x8] sm:$0xff] }
 0x40b   : > { %1650 = vrot.lane.b32.xlu1 %v3378_v44, %s2637_s26  ;;  %1588 = vrot.lane.b32.xlu0 %v3364_v39, %s2631_s16 }
 0x40f   : > { %1682 = vrot.lane.b32.xlu1 %v3378_v44, %s2638_s27  ;;  %1620 = vrot.lane.b32.xlu0 %v3364_v39, %s2632_s17 }
 0x410   : > { %v3426_v48 = vld [vmem:[#allocation2] sm:$0xff] }
 0x413   : > { %1648 = vrot.lane.b32.xlu1 %v3388_v3, %s2637_s26  ;;  %1586 = vrot.lane.b32.xlu0 %v3378_v44, %s2631_s16 }
 0x417   : > { %1680 = vrot.lane.b32.xlu1 %v3388_v3, %s2638_s27  ;;  %1618 = vrot.lane.b32.xlu0 %v3378_v44, %s2632_s17 }
 0x41b   : > { %1646 = vrot.lane.b32.xlu1 %v3398_v10, %s2637_s26  ;;  %1584 = vrot.lane.b32.xlu0 %v3388_v3, %s2631_s16 }
 0x41f   : > { %1678 = vrot.lane.b32.xlu1 %v3398_v10, %s2638_s27  ;;  %1616 = vrot.lane.b32.xlu0 %v3388_v3, %s2632_s17 }
 0x423   : > { %1644 = vrot.lane.b32.xlu1 %v3408_v56, %s2637_s26  ;;  %1582 = vrot.lane.b32.xlu0 %v3398_v10, %s2631_s16 }
 0x427   : > { %1676 = vrot.lane.b32.xlu1 %v3408_v56, %s2638_s27  ;;  %1614 = vrot.lane.b32.xlu0 %v3398_v10, %s2632_s17 }
 0x42b   : > { %1344 = vrot.lane.b32.xlu1 %v3336_v62, %s2632_s17  ;;  %1580 = vrot.lane.b32.xlu0 %v3408_v56, %s2631_s16 }
 0x42f   : > { %1450 = vrot.lane.b32.xlu1 %v3323_v0, %s2636_s25  ;;  %1612 = vrot.lane.b32.xlu0 %v3408_v56, %s2632_s17 }
 0x433   : > { %1490 = vrot.lane.b32.xlu1 %v3323_v0, %s2640_s29  ;;  %1578 = vrot.lane.b32.xlu0 %v3426_v48, %s2631_s16 }
 0x437   : > { %1416 = vrot.lane.b32.xlu1 %v3336_v62, %s2634_s23  ;;  %1610 = vrot.lane.b32.xlu0 %v3426_v48, %s2632_s17 }
 0x43b   : > { %1342 = vrot.lane.b32.xlu1 %v3347_v30, %s2632_s17  ;;  %1642 = vrot.lane.b32.xlu0 %v3426_v48, %s2637_s26 }
 0x43f   : > { %1448 = vrot.lane.b32.xlu1 %v3336_v62, %s2636_s25  ;;  %1452 = vrot.lane.b32.xlu0 %v3315_v49, %s2636_s25 }
 0x443   : > { %1488 = vrot.lane.b32.xlu1 %v3336_v62, %s2640_s29  ;;  %1492 = vrot.lane.b32.xlu0 %v3315_v49, %s2640_s29 }
 0x445   : > { %v1353_v31 = vpop.permute.xlu0 %1352  ;;  %v1385_v47 = vpop.permute.xlu1 %1384 }
 0x446   : > { %v1369_v18 = vsel %vm205_vm1, %v1353_v31, -inf  ;;  %v1401_v16 = vsel %vm209_vm11, %v1385_v47, -inf }
 0x447   : > { %1674 = vrot.lane.b32.xlu1 %v3426_v48, %s2638_s27  ;;  %1418 = vrot.lane.b32.xlu0 %v3323_v0, %s2634_s23  ;;  %v1409_v22 = vmax.f32 %v1369_v18, %v1401_v16 }
 0x449   : > { %v1425_v33 = vpop.permute.xlu0 %1424 }
 0x44a   : > { %v1441_v41 = vmax.f32 %v1409_v22, %v1425_v33 }
 0x44b   : > { %1414 = vrot.lane.b32.xlu1 %v3347_v30, %s2634_s23  ;;  %221 = vrot.lane.b32.xlu0 %v2618_v58, %s2641_s30 }
 0x44d   : > { %v1351_v51 = vpop.permute.xlu0 %1350  ;;  %v1383_v60 = vpop.permute.xlu1 %1382 }
 0x44e   : > { %v1368_v5 = vsel %vm205_vm1, %v1351_v51, -inf  ;;  %v1400_v0 = vsel %vm209_vm11, %v1383_v60, -inf }
 0x44f   : > { %1340 = vrot.lane.b32.xlu1 %v3362_v35, %s2632_s17  ;;  %1376 = vrot.lane.b32.xlu0 %v3336_v62, %s2635_s24  ;;  %v1408_v21 = vmax.f32 %v1368_v5, %v1400_v0 }
 0x451   : > { %v1457_v28 = vpop.permute.xlu0 %1456 }
 0x452   : > { %v1473_v24 = vsel %vm214_vm12, %v1457_v28, -inf }
 0x453   : > { %1446 = vrot.lane.b32.xlu1 %v3347_v30, %s2636_s25  ;;  %1374 = vrot.lane.b32.xlu0 %v3347_v30, %s2635_s24  ;;  %v1481_v23 = vmax.f32 %v1441_v41, %v1473_v24 }
 0x455   : > { %v1497_v38 = vpop.permute.xlu0 %1496  ;;  %v3488_v53 = vpop.permute.xlu1 %1380 }
 0x456   : > { %v1513_v52 = vsel %vm218_vm2, %v1497_v38, -inf }
 0x457   : > { %v1521_v63 = vmax.f32 %v1481_v23, %v1513_v52  ;;  %1486 = vrot.lane.b32.xlu1 %v3347_v30, %s2640_s29  ;;  %1372 = vrot.lane.b32.xlu0 %v3362_v35, %s2635_s24 }
 0x459   : > { %v1423_v29 = vpop.permute.xlu0 %1422  ;;  %v1953_v46 = vmul.f32 %v1521_v63, %v3214_v6 }
 0x45a   : > { %v1440_v32 = vmax.f32 %v1408_v21, %v1423_v29 }
 0x45b   : > { %1412 = vrot.lane.b32.xlu1 %v3362_v35, %s2634_s23  ;;  %1370 = vrot.lane.b32.xlu0 %v3375_v57, %s2635_s24 }
 0x45c   : > { %2489 = vmatpush3.xpose.msk.msra.mxu0 %vm285_vm3, %v1953_v46 }
 0x45d   : > { %v3496_v61 = vpop.permute.xlu0 %1348  ;;  %v3498_v49 = vpop.permute.xlu1 %1378  ;;  %2490 = vmatprep.subr.mxu0 %v2629_v1 }
 0x45f   : > { %1338 = vrot.lane.b32.xlu1 %v3375_v57, %s2632_s17 }
 0x461   : > { %v1455_v62 = vpop.permute.xlu0 %1454  ;;  %v1625_v55 = vpop.permute.xlu1 %1624 }
 0x462   : > { %v1472_v30 = vsel %vm214_vm12, %v1455_v62, -inf }
 0x463   : > { %1444 = vrot.lane.b32.xlu1 %v3362_v35, %s2636_s25  ;;  %v1480_v34 = vmax.f32 %v1440_v32, %v1472_v30 }
 0x465   : > { %v1495_v31 = vpop.permute.xlu0 %1494  ;;  %v1657_v47 = vpop.permute.xlu1 %1656 }
 0x466   : > { %v1512_v33 = vsel %vm218_vm2, %v1495_v31, -inf }
 0x467   : > { %v1520_v58 = vmax.f32 %v1480_v34, %v1512_v33  ;;  %1484 = vrot.lane.b32.xlu1 %v3362_v35, %s2640_s29 }
 0x469   : > { %v1952_v18 = vmul.f32 %v1520_v58, %v3224_v50  ;;  %v3516_v16 = vpop.permute.xlu0 %1420  ;;  %v1689_v51 = vpop.permute.xlu1 %1688 }
 0x46b   : > { %2491 = vmatpush3.xpose.msk.msra.mxu0 %vm285_vm3, %v1952_v18 }
 0x46c   : > { %2492 = vmatprep.subr.mxu0 %v2629_v1 }
 0x46d   : > { %v3520_v22 = vpop.permute.xlu0 %1346  ;;  %v1655_v28 = vpop.permute.xlu1 %1654 }
 0x471   : > { %v1593_v24 = vpop.permute.xlu0 %1592  ;;  %v1687_v41 = vpop.permute.xlu1 %1686 }
 0x472   : > { %v1609_v60 = vmax.f32 %v3331_v20, %v1593_v24 }
 0x474   : > { %v1641_v23 = vmax.f32 %v1609_v60, %v1625_v55 }
 0x475   : > { %v1591_v38 = vpop.permute.xlu0 %1590  ;;  %v1653_v52 = vpop.permute.xlu1 %1652 }
 0x476   : > { %v1673_v35 = vmax.f32 %v1641_v23, %v1657_v47  ;;  %v1608_v63 = vmax.f32 %v3349_v25, %v1591_v38 }
 0x478   : > { %v1705_v29 = vmax.f32 %v1673_v35, %v1689_v51 }
 0x479   : > { %v1623_v46 = vpop.permute.xlu0 %1622  ;;  %v1685_v5 = vpop.permute.xlu1 %1684 }
 0x47a   : > { %v1640_v0 = vmax.f32 %v1608_v63, %v1623_v46  ;;  %1728 = vrot.lane.b32.xlu0 %v1705_v29, %s2639_s28 }
 0x47c   : > { %v1672_v21 = vmax.f32 %v1640_v0, %v1655_v28 }
 0x47d   : > { %v1589_v62 = vpop.permute.xlu0 %1588  ;;  %v1651_v30 = vpop.permute.xlu1 %1650 }
 0x47e   : > { %v1704_v32 = vmax.f32 %v1672_v21, %v1687_v41  ;;  %v1607_v34 = vmax.f32 %v3364_v39, %v1589_v62 }
 0x480   : > { %1726 = vrot.lane.b32.xlu1 %v1704_v32, %s2639_s28 }
 0x481   : > { %v1621_v20 = vpop.permute.xlu0 %1620  ;;  %v1683_v55 = vpop.permute.xlu1 %1682 }
 0x482   : > { %v1639_v31 = vmax.f32 %v1607_v34, %v1621_v20 }
 0x484   : > { %v1671_v47 = vmax.f32 %v1639_v31, %v1653_v52  ;;  %1410 = vrot.lane.b32.xlu1 %v3375_v57, %s2634_s23 }
 0x485   : > { %v1587_v25 = vpop.permute.xlu0 %1586  ;;  %v1649_v33 = vpop.permute.xlu1 %1648 }
 0x486   : > { %v1703_v58 = vmax.f32 %v1671_v47, %v1685_v5  ;;  %v1606_v18 = vmax.f32 %v3378_v44, %v1587_v25 }
 0x488   : > { %1724 = vrot.lane.b32.xlu0 %v1703_v58, %s2639_s28 }
 0x489   : > { %v1619_v51 = vpop.permute.xlu0 %1618  ;;  %v1681_v28 = vpop.permute.xlu1 %1680 }
 0x48a   : > { %v1638_v24 = vmax.f32 %v1606_v18, %v1619_v51 }
 0x48c   : > { %v1670_v39 = vmax.f32 %v1638_v24, %v1651_v30 }
 0x48d   : > { %v1585_v41 = vpop.permute.xlu0 %1584  ;;  %v1647_v60 = vpop.permute.xlu1 %1646 }
 0x48e   : > { %v1702_v23 = vmax.f32 %v1670_v39, %v1683_v55  ;;  %v1605_v38 = vmax.f32 %v3388_v3, %v1585_v41  ;;  %v1367_v41 = vsel %vm205_vm1, %v3496_v61, -inf }
 0x490   : > { %1722 = vrot.lane.b32.xlu1 %v1702_v23, %s2639_s28 }
 0x491   : > { %v1617_v52 = vpop.permute.xlu0 %1616  ;;  %v1679_v35 = vpop.permute.xlu1 %1678 }
 0x492   : > { %v1637_v63 = vmax.f32 %v1605_v38, %v1617_v52 }
 0x494   : > { %v1669_v29 = vmax.f32 %v1637_v63, %v1649_v33 }
 0x495   : > { %v1583_v46 = vpop.permute.xlu0 %1582  ;;  %v1645_v5 = vpop.permute.xlu1 %1644 }
 0x496   : > { %v1701_v44 = vmax.f32 %v1669_v29, %v1681_v28  ;;  %v1604_v0 = vmax.f32 %v3398_v10, %v1583_v46  ;;  %v1366_v29 = vsel %vm205_vm1, %v3520_v22, -inf }
 0x498   : > { %1720 = vrot.lane.b32.xlu0 %v1701_v44, %s2639_s28 }
 0x499   : > { %v1615_v21 = vpop.permute.xlu0 %1614  ;;  %v1677_v62 = vpop.permute.xlu1 %1676 }
 0x49a   : > { %v1636_v30 = vmax.f32 %v1604_v0, %v1615_v21  ;;  %v1398_v0 = vsel %vm209_vm11, %v3498_v49, -inf }
 0x49c   : > { %v1668_v32 = vmax.f32 %v1636_v30, %v1647_v60 }
 0x49d   : > { %v1581_v34 = vpop.permute.xlu0 %1580  ;;  %v1345_v20 = vpop.permute.xlu1 %1344 }
 0x49e   : > { %v1700_v3 = vmax.f32 %v1668_v32, %v1679_v35  ;;  %v1603_v55 = vmax.f32 %v3408_v56, %v1581_v34  ;;  %v1399_v56 = vsel %vm209_vm11, %v3488_v53, -inf }
 0x49f   : > { %v1407_v60 = vmax.f32 %v1367_v41, %v1399_v56 }
 0x4a0   : > { %1718 = vrot.lane.b32.xlu1 %v1700_v3, %s2639_s28 }
 0x4a1   : > { %v1613_v31 = vpop.permute.xlu0 %1612  ;;  %v1451_v47 = vpop.permute.xlu1 %1450  ;;  %v1439_v35 = vmax.f32 %v1407_v60, %v3516_v16  ;;  %v1406_v16 = vmax.f32 %v1366_v29, %v1398_v0 }
 0x4a2   : > { %v1635_v25 = vmax.f32 %v1603_v55, %v1613_v31  ;;  %v1470_v49 = vsel %vm214_vm12, %v1451_v47, -inf }
 0x4a4   : > { %v1667_v33 = vmax.f32 %v1635_v25, %v1645_v5 }
 0x4a5   : > { %v1579_v58 = vpop.permute.xlu0 %1578  ;;  %v1491_v18 = vpop.permute.xlu1 %1490 }
 0x4a6   : > { %v1699_v10 = vmax.f32 %v1667_v33, %v1677_v62  ;;  %v1602_v63 = vmax.f32 %v3426_v48, %v1579_v58  ;;  %v1510_v31 = vsel %vm218_vm2, %v1491_v18, -inf }
 0x4a8   : > { %1716 = vrot.lane.b32.xlu0 %v1699_v10, %s2639_s28 }
 0x4a9   : > { %v1611_v51 = vpop.permute.xlu0 %1610  ;;  %v1417_v28 = vpop.permute.xlu1 %1416 }
 0x4aa   : > { %v1634_v44 = vmax.f32 %v1602_v63, %v1611_v51 }
 0x4ad   : > { %v1643_v24 = vpop.permute.xlu0 %1642  ;;  %v1343_v39 = vpop.permute.xlu1 %1342 }
 0x4ae   : > { %v1666_v62 = vmax.f32 %v1634_v44, %v1643_v24  ;;  %v1365_v24 = vsel %vm205_vm1, %v1345_v20, -inf }
 0x4b1   : > { %v1453_v23 = vpop.permute.xlu0 %1452  ;;  %v1449_v38 = vpop.permute.xlu1 %1448 }
 0x4b2   : > { %v1471_v52 = vsel %vm214_vm12, %v1453_v23, -inf }
 0x4b3   : > { %v1479_v46 = vmax.f32 %v1439_v35, %v1471_v52  ;;  %v1364_v52 = vsel %vm205_vm1, %v1343_v39, -inf  ;;  %v1469_v35 = vsel %vm214_vm12, %v1449_v38, -inf }
 0x4b5   : > { %v1493_v61 = vpop.permute.xlu0 %1492  ;;  %v1489_v5 = vpop.permute.xlu1 %1488 }
 0x4b6   : > { %v1511_v53 = vsel %vm218_vm2, %v1493_v61, -inf }
 0x4b7   : > { %v1519_v21 = vmax.f32 %v1479_v46, %v1511_v53  ;;  %v1509_v46 = vsel %vm218_vm2, %v1489_v5, -inf }
 0x4b9   : > { %v1951_v30 = vmul.f32 %v1519_v21, %v3234_v45  ;;  %v1419_v32 = vpop.permute.xlu0 %1418  ;;  %v1675_v34 = vpop.permute.xlu1 %1674 }
 0x4ba   : > { %v1438_v3 = vmax.f32 %v1406_v16, %v1419_v32  ;;  %v1698_v55 = vmax.f32 %v1666_v62, %v1675_v34 }
 0x4bb   : > { %2493 = vmatpush3.xpose.msk.msra.mxu0 %vm285_vm3, %v1951_v30 }
 0x4bc   : > { %v1478_v2 = vmax.f32 %v1438_v3, %v1470_v49  ;;  %1714 = vrot.lane.b32.xlu1 %v1698_v55, %s2639_s28  ;;  %2494 = vmatprep.subr.mxu0 %v2629_v1 }
 0x4bd   : > { %v222_v25 = vpop.permute.xlu0 %221  ;;  %v1415_v33 = vpop.permute.xlu1 %1414 }
 0x4be   : > { %v1518_v58 = vmax.f32 %v1478_v2, %v1510_v31  ;;  %227 = vst.msk [vmem:[#allocation3 + $0x1] sm:$0x1] %vm226_vm6, %v222_v25 }
 0x4c0   : > { %v1950_v47 = vmul.f32 %v1518_v58, %v3244_v54 }
 0x4c1   : > { %v1377_v10 = vpop.permute.xlu0 %1376  ;;  %v1341_v51 = vpop.permute.xlu1 %1340 }
 0x4c2   : > { %v1397_v41 = vsel %vm209_vm11, %v1377_v10, -inf  ;;  %2495 = vmatpush3.xpose.msk.msra.mxu0 %vm285_vm3, %v1950_v47  ;;  %v1363_v3 = vsel %vm205_vm1, %v1341_v51, -inf }
 0x4c3   : > { %v1405_v18 = vmax.f32 %v1365_v24, %v1397_v41  ;;  %2496 = vmatprep.subr.mxu0 %v2629_v1 }
 0x4c5   : > { %v1437_v56 = vmax.f32 %v1405_v18, %v1417_v28  ;;  %v1375_v60 = vpop.permute.xlu0 %1374  ;;  %v1447_v23 = vpop.permute.xlu1 %1446 }
 0x4c6   : > { %v1396_v20 = vsel %vm209_vm11, %v1375_v60, -inf  ;;  %v1468_v0 = vsel %vm214_vm12, %v1447_v23, -inf }
 0x4c7   : > { %v1477_v63 = vmax.f32 %v1437_v56, %v1469_v35  ;;  %v1404_v29 = vmax.f32 %v1364_v52, %v1396_v20 }
 0x4c9   : > { %v1517_v61 = vmax.f32 %v1477_v63, %v1509_v46  ;;  %v1436_v44 = vmax.f32 %v1404_v29, %v1415_v33  ;;  %v1373_v53 = vpop.permute.xlu0 %1372  ;;  %v1487_v28 = vpop.permute.xlu1 %1486 }
 0x4ca   : > { %v1508_v38 = vsel %vm218_vm2, %v1487_v28, -inf  ;;  %v1395_v32 = vsel %vm209_vm11, %v1373_v53, -inf }
 0x4cb   : > { %v1476_v21 = vmax.f32 %v1436_v44, %v1468_v0  ;;  %v1949_v39 = vmul.f32 %v1517_v61, %v3254_v36  ;;  %v1403_v2 = vmax.f32 %v1363_v3, %v1395_v32 }
 0x4cd   : > { %v1516_v62 = vmax.f32 %v1476_v21, %v1508_v38  ;;  %2497 = vmatpush3.xpose.msk.msra.mxu0 %vm285_vm3, %v1949_v39  ;;  %v1413_v16 = vpop.permute.xlu1 %1412  ;;  %v1371_v30 = vpop.permute.xlu0 %1370 }
 0x4ce   : > { %2498 = vmatprep.subr.mxu0 %v2629_v1  ;;  %v1394_v55 = vsel %vm209_vm11, %v1371_v30, -inf  ;;  %v1435_v58 = vmax.f32 %v1403_v2, %v1413_v16 }
 0x4cf   : > { %v1948_v5 = vmul.f32 %v1516_v62, %v3264_v11  ;;  %v3676_v62 = vld [vmem:[#allocation3] sm:$0x3] }
 0x4d1   : > { %2499 = vmatpush3.xpose.msk.msra.mxu0 %vm285_vm3, %v1948_v5  ;;  %v1339_v34 = vpop.permute.xlu1 %1338 }
 0x4d2   : > { %v1362_v49 = vsel %vm205_vm1, %v1339_v34, -inf  ;;  %2500 = vmatprep.subr.mxu0 %v2629_v1 }
 0x4d3   : > { %v1402_v31 = vmax.f32 %v1362_v49, %v1394_v55 }
 0x4d5   : > { %v1445_v25 = vpop.permute.xlu1 %1444 }
 0x4d6   : > { %v1467_v33 = vsel %vm214_vm12, %v1445_v25, -inf }
 0x4d7   : > { %v1475_v47 = vmax.f32 %v1435_v58, %v1467_v33 }
 0x4d9   : > { %v1485_v10 = vpop.permute.xlu1 %1484 }
 0x4da   : > { %v1507_v51 = vsel %vm218_vm2, %v1485_v10, -inf }
 0x4db   : > { %v1515_v24 = vmax.f32 %v1475_v47, %v1507_v51 }
 0x4dd   : > { %v1947_v41 = vmul.f32 %v1515_v24, %v3274_v42 }
 0x4df   : > { %2501 = vmatpush3.xpose.msk.msra.mxu0 %vm285_vm3, %v1947_v41 }
 0x4e0   : > { %2502 = vmatprep.subr.mxu0 %v2629_v1 }
 0x4ec   : > { %v1729_v18 = vpop.permute.xlu0 %1728 }
 0x4ed   : > { %1745 = vst.msk [vmem:[#allocation2 + $0x38] sm:$0xff] %vm545_vm10, %v1729_v18 }
 0x4f2   : > { %v1727_v56 = vpop.permute.xlu1 %1726 }
 0x4f3   : > { %1744 = vst.msk [vmem:[#allocation2 + $0x30] sm:$0xff] %vm545_vm10, %v1727_v56 }
 0x4f4   : > { %v1753_v60 = vld [vmem:[#allocation2 + $0x38] sm:$0xff] }
 0x4f5   : > { %1776 = vrot.lane.b32.xlu0 %v1753_v60, %s2632_s17  ;;  %1808 = vrot.lane.b32.xlu1 %v1753_v60, %s2635_s24 }
 0x4f6   : > { %v1411_v23 = vpop.permute.xlu1 %1410 }
 0x4f7   : > { %v3627_v52 = vmax.f32 %v1402_v31, %v1411_v23 }
 0x4f9   : > { %1848 = vrot.lane.b32.xlu1 %v1753_v60, %s2634_s23 }
 0x4fa   : > { %v1725_v35 = vpop.permute.xlu0 %1724  ;;  %v1752_v20 = vld [vmem:[#allocation2 + $0x30] sm:$0xff] }
 0x4fb   : > { %1743 = vst.msk [vmem:[#allocation2 + $0x28] sm:$0xff] %vm545_vm10, %v1725_v35  ;;  %1806 = vrot.lane.b32.xlu0 %v1752_v20, %s2635_s24 }
 0x4fd   : > { %1774 = vrot.lane.b32.xlu1 %v1752_v20, %s2632_s17 }
 0x501   : > { %1880 = vrot.lane.b32.xlu1 %v1753_v60, %s2636_s25 }
 0x502   : > { %v1723_v63 = vpop.permute.xlu1 %1722  ;;  %v1751_v29 = vld [vmem:[#allocation2 + $0x28] sm:$0xff] }
 0x503   : > { %1742 = vst.msk [vmem:[#allocation2 + $0x20] sm:$0xff] %vm545_vm10, %v1723_v63  ;;  %1804 = vrot.lane.b32.xlu0 %v1751_v29, %s2635_s24 }
 0x505   : > { %1920 = vrot.lane.b32.xlu1 %v1753_v60, %s2640_s29 }
 0x509   : > { %1846 = vrot.lane.b32.xlu1 %v1752_v20, %s2634_s23 }
 0x50a   : > { %v1721_v46 = vpop.permute.xlu0 %1720  ;;  %v1750_v61 = vld [vmem:[#allocation2 + $0x20] sm:$0xff] }
 0x50b   : > { %1741 = vst.msk [vmem:[#allocation2 + $0x18] sm:$0xff] %vm545_vm10, %v1721_v46  ;;  %1802 = vrot.lane.b32.xlu0 %v1750_v61, %s2635_s24 }
 0x50d   : > { %1772 = vrot.lane.b32.xlu1 %v1751_v29, %s2632_s17 }
 0x511   : > { %1878 = vrot.lane.b32.xlu1 %v1752_v20, %s2636_s25 }
 0x512   : > { %v1719_v44 = vpop.permute.xlu1 %1718  ;;  %v1749_v53 = vld [vmem:[#allocation2 + $0x18] sm:$0xff] }
 0x513   : > { %1740 = vst.msk [vmem:[#allocation2 + $0x10] sm:$0xff] %vm545_vm10, %v1719_v44  ;;  %1768 = vrot.lane.b32.xlu0 %v1749_v53, %s2632_s17 }
 0x515   : > { %1918 = vrot.lane.b32.xlu1 %v1752_v20, %s2640_s29 }
 0x517   : > { %1874 = vrot.lane.b32.xlu0 %v1750_v61, %s2636_s25 }
 0x519   : > { %1844 = vrot.lane.b32.xlu1 %v1751_v29, %s2634_s23 }
 0x51a   : > { %v1717_v28 = vpop.permute.xlu0 %1716  ;;  %v1748_v0 = vld [vmem:[#allocation2 + $0x10] sm:$0xff] }
 0x51b   : > { %1739 = vst.msk [vmem:[#allocation2 + $0x8] sm:$0xff] %vm545_vm10, %v1717_v28  ;;  %1914 = vrot.lane.b32.xlu0 %v1750_v61, %s2640_s29 }
 0x51d   : > { %1770 = vrot.lane.b32.xlu1 %v1750_v61, %s2632_s17 }
 0x51f   : > { %1840 = vrot.lane.b32.xlu0 %v1749_v53, %s2634_s23 }
 0x521   : > { %1876 = vrot.lane.b32.xlu1 %v1751_v29, %s2636_s25 }
 0x522   : > { %v1747_v39 = vld [vmem:[#allocation2 + $0x8] sm:$0xff] }
 0x523   : > { %1766 = vrot.lane.b32.xlu0 %v1748_v0, %s2632_s17 }
 0x525   : > { %1916 = vrot.lane.b32.xlu1 %v1751_v29, %s2640_s29 }
 0x527   : > { %1872 = vrot.lane.b32.xlu0 %v1749_v53, %s2636_s25 }
 0x529   : > { %1842 = vrot.lane.b32.xlu1 %v1750_v61, %s2634_s23 }
 0x52b   : > { %1912 = vrot.lane.b32.xlu0 %v1749_v53, %s2640_s29 }
 0x52d   : > { %1800 = vrot.lane.b32.xlu1 %v1749_v53, %s2635_s24 }
 0x52e   : > { %v1715_v21 = vpop.permute.xlu1 %1714 }
 0x52f   : > { %1738 = vst.msk [vmem:[#allocation2] sm:$0xff] %vm545_vm10, %v1715_v21  ;;  %1838 = vrot.lane.b32.xlu0 %v1748_v0, %s2634_s23  ;;  %vm248_vm10 = vcmask 850944  }
 0x531   : > { %1798 = vrot.lane.b32.xlu1 %v1748_v0, %s2635_s24 }
 0x533   : > { %1764 = vrot.lane.b32.xlu0 %v1747_v39, %s2632_s17 }
 0x535   : > { %1796 = vrot.lane.b32.xlu1 %v1747_v39, %s2635_s24 }
 0x536   : > { %v1746_v38 = vld [vmem:[#allocation2] sm:$0xff] }
 0x537   : > { %1870 = vrot.lane.b32.xlu0 %v1748_v0, %s2636_s25 }
 0x539   : > { %1794 = vrot.lane.b32.xlu1 %v1746_v38, %s2635_s24  ;;  %s2661_s24 = smov 119  }
 0x53b   : > { %1910 = vrot.lane.b32.xlu0 %v1748_v0, %s2640_s29 }
 0x53d   : > { %1442 = vrot.lane.b32.xlu1 %v3375_v57, %s2636_s25 }
 0x53f   : > { %1836 = vrot.lane.b32.xlu0 %v1747_v39, %s2634_s23 }
 0x541   : > { %1482 = vrot.lane.b32.xlu1 %v3375_v57, %s2640_s29  ;;  %v273_v57 = vld [vmem:[#allocation3 + $0x1] sm:$0x1] }
 0x543   : > { %1762 = vrot.lane.b32.xlu0 %v1746_v38, %s2632_s17 }
 0x545   : > { %231 = vrot.lane.b32.xlu1 %v3676_v62, %s2631_s16 }
 0x547   : > { %1868 = vrot.lane.b32.xlu0 %v1747_v39, %s2636_s25 }
 0x549   : > { %245 = vrot.lane.b32.xlu1 %v3676_v62, %s2637_s26  ;;  %s2663_s26 = smov 117  }
 0x54b   : > { %1908 = vrot.lane.b32.xlu0 %v1747_v39, %s2640_s29 }
 0x54d   : > { %259 = vrot.lane.b32.xlu1 %v3676_v62, %s2643_s3 }
 0x54f   : > { %1834 = vrot.lane.b32.xlu0 %v1746_v38, %s2634_s23  ;;  %s2660_s23 = smov 118  }
 0x551   : > { %275 = vrot.lane.b32.xlu1 %v273_v57, %s2644_s4 }
 0x553   : > { %1866 = vrot.lane.b32.xlu0 %v1746_v38, %s2636_s25  ;;  %s2662_s25 = smov 116  }
 0x555   : > { %289 = vrot.lane.b32.xlu1 %v273_v57, %s2645_s5 }
 0x557   : > { %1906 = vrot.lane.b32.xlu0 %v1746_v38, %s2640_s29  ;;  %s153_s29 = scalar_lea.vmem %s3896_s2, %s3903_s10 }
 0x559   : > { %303 = vrot.lane.b32.xlu1 %v273_v57, %s2646_s6 }
 0x55b   : > { %238 = vrot.lane.b32.xlu0 %v3676_v62, %s2632_s17  ;;  %s2654_s17 = smov 127  }
 0x55d   : > { %317 = vrot.lane.b32.xlu1 %v273_v57, %s2647_s7 }
 0x55f   : > { %252 = vrot.lane.b32.xlu0 %v3676_v62, %s2638_s27  ;;  %s2664_s27 = smov 114  }
 0x563   : > { %266 = vrot.lane.b32.xlu0 %v3676_v62, %s2648_s8 }
 0x567   : > { %282 = vrot.lane.b32.xlu0 %v273_v57, %s2649_s11  ;;  %v1809_v16 = vpop.permute.xlu1 %1808  ;;  %v1777_v5 = vpop.permute.xlu0 %1776 }
 0x568   : > { %v1793_v32 = vsel %vm205_vm1, %v1777_v5, -inf  ;;  %v1825_v34 = vsel %vm209_vm11, %v1809_v16, -inf }
 0x569   : > { %v1833_v55 = vmax.f32 %v1793_v32, %v1825_v34 }
 0x56b   : > { %296 = vrot.lane.b32.xlu0 %v273_v57, %s2650_s12  ;;  %v1849_v30 = vpop.permute.xlu1 %1848 }
 0x56c   : > { %v1865_v31 = vmax.f32 %v1833_v55, %v1849_v30 }
 0x56d   : > { %v1807_v47 = vpop.permute.xlu0 %1806 }
 0x56e   : > { %v1824_v23 = vsel %vm209_vm11, %v1807_v47, -inf }
 0x56f   : > { %310 = vrot.lane.b32.xlu0 %v273_v57, %s2651_s13  ;;  %v1775_v3 = vpop.permute.xlu1 %1774 }
 0x570   : > { %v1792_v56 = vsel %vm205_vm1, %v1775_v3, -inf }
 0x571   : > { %v1832_v35 = vmax.f32 %v1792_v56, %v1824_v23 }
 0x573   : > { %324 = vrot.lane.b32.xlu0 %v273_v57, %s2639_s28  ;;  %v1881_v49 = vpop.permute.xlu1 %1880  ;;  %s2665_s28 = smov 115  }
 0x574   : > { %v1897_v2 = vsel %vm214_vm12, %v1881_v49, -inf }
 0x575   : > { %v1905_v25 = vmax.f32 %v1865_v31, %v1897_v2  ;;  %v1805_v41 = vpop.permute.xlu0 %1804 }
 0x576   : > { %v1823_v30 = vsel %vm209_vm11, %v1805_v41, -inf }
 0x577   : > { %v1921_v33 = vpop.permute.xlu1 %1920 }
 0x578   : > { %v1937_v58 = vsel %vm218_vm2, %v1921_v33, -inf }
 0x579   : > { %v1945_v10 = vmax.f32 %v1905_v25, %v1937_v58 }
 0x57b   : > { %v2059_v51 = vmul.f32 %v1945_v10, %v2998_v43  ;;  %v1847_v24 = vpop.permute.xlu1 %1846 }
 0x57c   : > { %v1864_v29 = vmax.f32 %v1832_v35, %v1847_v24 }
 0x57d   : > { %2508 = vmatpush3.xpose.msk.msra.mxu1 %vm285_vm3, %v2059_v51  ;;  %v1803_v60 = vpop.permute.xlu0 %1802 }
 0x57e   : > { %2509 = vmatprep.subr.mxu1 %v2629_v1  ;;  %v1822_v58 = vsel %vm209_vm11, %v1803_v60, -inf }
 0x57f   : > { %v1773_v18 = vpop.permute.xlu1 %1772 }
 0x580   : > { %v1791_v16 = vsel %vm205_vm1, %v1773_v18, -inf }
 0x581   : > { %v1831_v32 = vmax.f32 %v1791_v16, %v1823_v30 }
 0x583   : > { %v1879_v20 = vpop.permute.xlu1 %1878 }
 0x584   : > { %v1896_v63 = vsel %vm214_vm12, %v1879_v20, -inf }
 0x585   : > { %v1769_v46 = vpop.permute.xlu0 %1768  ;;  %v1904_v61 = vmax.f32 %v1864_v29, %v1896_v63 }
 0x586   : > { %v1789_v63 = vsel %vm205_vm1, %v1769_v46, -inf }
 0x587   : > { %v1919_v44 = vpop.permute.xlu1 %1918 }
 0x588   : > { %v1936_v53 = vsel %vm218_vm2, %v1919_v44, -inf }
 0x589   : > { %v1944_v28 = vmax.f32 %v1904_v61, %v1936_v53  ;;  %v1875_v0 = vpop.permute.xlu0 %1874 }
 0x58a   : > { %v1894_v56 = vsel %vm214_vm12, %v1875_v0, -inf }
 0x58b   : > { %v2058_v21 = vmul.f32 %v1944_v28, %v3010_v17  ;;  %v1845_v39 = vpop.permute.xlu1 %1844 }
 0x58c   : > { %v1863_v55 = vmax.f32 %v1831_v32, %v1845_v39 }
 0x58d   : > { %v1915_v38 = vpop.permute.xlu0 %1914  ;;  %2510 = vmatpush3.xpose.msk.msra.mxu1 %vm285_vm3, %v2058_v21 }
 0x58e   : > { %2511 = vmatprep.subr.mxu1 %v2629_v1  ;;  %v1934_v20 = vsel %vm218_vm2, %v1915_v38, -inf }
 0x58f   : > { %v1771_v57 = vpop.permute.xlu1 %1770 }
 0x590   : > { %v1790_v2 = vsel %vm205_vm1, %v1771_v57, -inf }
 0x591   : > { %v1841_v5 = vpop.permute.xlu0 %1840  ;;  %v1830_v51 = vmax.f32 %v1790_v2, %v1822_v58 }
 0x593   : > { %v1877_v34 = vpop.permute.xlu1 %1876 }
 0x594   : > { %v1895_v3 = vsel %vm214_vm12, %v1877_v34, -inf }
 0x595   : > { %v1767_v49 = vpop.permute.xlu0 %1766  ;;  %v1903_v31 = vmax.f32 %v1863_v55, %v1895_v3 }
 0x596   : > { %v1788_v16 = vsel %vm205_vm1, %v1767_v49, -inf }
 0x597   : > { %v1917_v25 = vpop.permute.xlu1 %1916 }
 0x598   : > { %v1935_v33 = vsel %vm218_vm2, %v1917_v25, -inf }
 0x599   : > { %v1943_v47 = vmax.f32 %v1903_v31, %v1935_v33  ;;  %v1873_v10 = vpop.permute.xlu0 %1872 }
 0x59a   : > { %v1893_v39 = vsel %vm214_vm12, %v1873_v10, -inf }
 0x59b   : > { %v2057_v24 = vmul.f32 %v1943_v47, %v3018_v40  ;;  %v1843_v41 = vpop.permute.xlu1 %1842 }
 0x59c   : > { %v1862_v18 = vmax.f32 %v1830_v51, %v1843_v41 }
 0x59d   : > { %v1913_v23 = vpop.permute.xlu0 %1912  ;;  %2512 = vmatpush3.xpose.msk.msra.mxu1 %vm285_vm3, %v2057_v24 }
 0x59e   : > { %v1902_v35 = vmax.f32 %v1862_v18, %v1894_v56  ;;  %2513 = vmatprep.subr.mxu1 %v2629_v1  ;;  %v1933_v30 = vsel %vm218_vm2, %v1913_v23, -inf }
 0x59f   : > { %v1801_v60 = vpop.permute.xlu1 %1800 }
 0x5a0   : > { %v1942_v29 = vmax.f32 %v1902_v35, %v1934_v20  ;;  %v1821_v61 = vsel %vm209_vm11, %v1801_v60, -inf }
 0x5a1   : > { %v1829_v44 = vmax.f32 %v1789_v63, %v1821_v61  ;;  %v1839_v53 = vpop.permute.xlu0 %1838 }
 0x5a2   : > { %v2056_v28 = vmul.f32 %v1942_v29, %v3030_v19 }
 0x5a3   : > { %v1861_v0 = vmax.f32 %v1829_v44, %v1841_v5  ;;  %v1799_v21 = vpop.permute.xlu1 %1798 }
 0x5a4   : > { %v1820_v38 = vsel %vm209_vm11, %v1799_v21, -inf  ;;  %2514 = vmatpush3.xpose.msk.msra.mxu1 %vm285_vm3, %v2056_v28 }
 0x5a5   : > { %v1901_v57 = vmax.f32 %v1861_v0, %v1893_v39  ;;  %v1765_v46 = vpop.permute.xlu0 %1764  ;;  %2515 = vmatprep.subr.mxu1 %v2629_v1  ;;  %v1828_v32 = vmax.f32 %v1788_v16, %v1820_v38  ;;  %v2652_v0 = vmov 1.0  }
 0x5a6   : > { %v1787_v29 = vsel %vm205_vm1, %v1765_v46, -inf }
 0x5a7   : > { %v1941_v5 = vmax.f32 %v1901_v57, %v1933_v30  ;;  %v1797_v34 = vpop.permute.xlu1 %1796  ;;  %v1860_v31 = vmax.f32 %v1828_v32, %v1839_v53 }
 0x5a8   : > { %v1819_v60 = vsel %vm209_vm11, %v1797_v34, -inf }
 0x5a9   : > { %v1871_v3 = vpop.permute.xlu0 %1870  ;;  %v2055_v55 = vmul.f32 %v1941_v5, %v3038_v15  ;;  %v1827_v61 = vmax.f32 %v1787_v29, %v1819_v60 }
 0x5aa   : > { %v1892_v2 = vsel %vm214_vm12, %v1871_v3, -inf }
 0x5ab   : > { %2516 = vmatpush3.xpose.msk.msra.mxu1 %vm285_vm3, %v2055_v55  ;;  %v1795_v25 = vpop.permute.xlu1 %1794  ;;  %v1900_v33 = vmax.f32 %v1860_v31, %v1892_v2 }
 0x5ac   : > { %2517 = vmatprep.subr.mxu1 %v2629_v1 }
 0x5ad   : > { %v1911_v49 = vpop.permute.xlu0 %1910 }
 0x5ae   : > { %v1932_v58 = vsel %vm218_vm2, %v1911_v49, -inf }
 0x5af   : > { %v1940_v47 = vmax.f32 %v1900_v33, %v1932_v58  ;;  %v1443_v10 = vpop.permute.xlu1 %1442 }
 0x5b0   : > { %v1466_v51 = vsel %vm214_vm12, %v1443_v10, -inf }
 0x5b1   : > { %v2054_v24 = vmul.f32 %v1940_v47, %v3050_v26  ;;  %v1837_v41 = vpop.permute.xlu0 %1836  ;;  %v1474_v18 = vmax.f32 %v3627_v52, %v1466_v51 }
 0x5b2   : > { %v1859_v53 = vmax.f32 %v1827_v61, %v1837_v41 }
 0x5b3   : > { %2518 = vmatpush3.xpose.msk.msra.mxu1 %vm285_vm3, %v2054_v24  ;;  %v1483_v56 = vpop.permute.xlu1 %1482 }
 0x5b4   : > { %v1506_v23 = vsel %vm218_vm2, %v1483_v56, -inf  ;;  %2519 = vmatprep.subr.mxu1 %v2629_v1 }
 0x5b5   : > { %v1514_v35 = vmax.f32 %v1474_v18, %v1506_v23  ;;  %v1763_v20 = vpop.permute.xlu0 %1762 }
 0x5b6   : > { %v1786_v5 = vsel %vm205_vm1, %v1763_v20, -inf }
 0x5b7   : > { %v1946_v63 = vmul.f32 %v1514_v35, %v3284_v59  ;;  %v232_v28 = vpop.permute.xlu1 %231 }
 0x5b8   : > { %v233_v2 = vrot.slane %v232_v28, 1 }
 0x5b9   : > { %v1869_v52 = vpop.permute.xlu0 %1868  ;;  %2503 = vmatpush3.xpose.msk.msra.mxu0 %vm285_vm3, %v1946_v63 }
 0x5ba   : > { %v1891_v44 = vsel %vm214_vm12, %v1869_v52, -inf  ;;  %2526 = vmatprep.subr.mxu0 %v2629_v1  ;;  %v235_v49 = vsel %vm234_vm8, %v232_v28, %v233_v2  ;;  %vm299_vm8 = vcmask 392192  }
 0x5bb   : > { %v1899_v21 = vmax.f32 %v1859_v53, %v1891_v44  ;;  %v246_v46 = vpop.permute.xlu1 %245 }
 0x5bc   : > { %2505 = vmatmul.mubr.msk.f32.vlgmr.msra.gmra.mxu0 %vm285_vm3, %v2652_v0  ;;  %v247_v51 = vrot.slane %v246_v46, 1 }
 0x5bd   : > { %v1909_v39 = vpop.permute.xlu0 %1908  ;;  %2527 = vmatpush3.xpose.msk.msra.mxu0 %vm285_vm3, %v3214_v6  ;;  %2542 = vmatprep.mubr.msk.f32.mxu0 %vm2642_vm7, %v2629_v1  ;;  %v1818_v6 = vsel %vm209_vm11, %v1795_v25, -inf }
 0x5be   : > { %v1931_v38 = vsel %vm218_vm2, %v1909_v39, -inf  ;;  %2528 = vmatprep.subr.mxu0 %v2629_v1  ;;  %v1826_v32 = vmax.f32 %v1786_v5, %v1818_v6  ;;  %v249_v23 = vsel %vm248_vm10, %v246_v46, %v247_v51  ;;  %vm313_vm10 = vcmask 261120  }
 0x5bf   : > { %v1939_v57 = vmax.f32 %v1899_v21, %v1931_v38  ;;  %v260_v3 = vpop.permute.xlu1 %259 }
 0x5c1   : > { %v2053_v16 = vmul.f32 %v1939_v57, %v3060_v27  ;;  %v1835_v30 = vpop.permute.xlu0 %1834  ;;  %2529 = vmatpush3.xpose.msk.msra.mxu0 %vm285_vm3, %v3224_v50 }
 0x5c2   : > { %2530 = vmatprep.subr.mxu0 %v2629_v1  ;;  %v1858_v55 = vmax.f32 %v1826_v32, %v1835_v30 }
 0x5c3   : > { %2520 = vmatpush3.xpose.msk.msra.mxu1 %vm285_vm3, %v2053_v16  ;;  %v276_v58 = vpop.permute.xlu1 %275 }
 0x5c4   : > { %2521 = vmatprep.subr.mxu1 %v2629_v1  ;;  %v277_v61 = vrot.slane %v276_v58, 7 }
 0x5c5   : > { %v1867_v34 = vpop.permute.xlu0 %1866  ;;  %2531 = vmatpush3.xpose.msk.msra.mxu0 %vm285_vm3, %v3234_v45 }
 0x5c6   : > { %v1890_v50 = vsel %vm214_vm12, %v1867_v34, -inf  ;;  %2532 = vmatprep.subr.mxu0 %v2629_v1 }
 0x5c7   : > { %v1898_v31 = vmax.f32 %v1858_v55, %v1890_v50 }
 0x5c9   : > { %v1907_v33 = vpop.permute.xlu0 %1906  ;;  %2533 = vmatpush3.xpose.msk.msra.mxu0 %vm285_vm3, %v3244_v54  ;;  %v237_v54 = vadd.f32 %v235_v49, %v3676_v62  ;;  %v290_v62 = vpop.permute.xlu1 %289 }
 0x5ca   : > { %v1930_v25 = vsel %vm218_vm2, %v1907_v33, -inf  ;;  %2534 = vmatprep.subr.mxu0 %v2629_v1  ;;  %v291_v39 = vrot.slane %v290_v62, 7 }
 0x5cb   : > { %v1938_v45 = vmax.f32 %v1898_v31, %v1930_v25 }
 0x5cd   : > { %v2052_v47 = vmul.f32 %v1938_v45, %v3069_v14  ;;  %v239_v10 = vpop.permute.xlu0 %238  ;;  %2535 = vmatpush3.xpose.msk.msra.mxu0 %vm285_vm3, %v3254_v36  ;;  %v261_v36 = vrot.slane %v260_v3, 1  ;;  %v304_v53 = vpop.permute.xlu1 %303 }
 0x5ce   : > { %v240_v24 = vrot.slane %v239_v10, 1  ;;  %2536 = vmatprep.subr.mxu0 %v2629_v1  ;;  %v305_v30 = vrot.slane %v304_v53, 7 }
 0x5cf   : > { %2522 = vmatpush3.xpose.msk.msra.mxu1 %vm285_vm3, %v2052_v47  ;;  %v263_v29 = vsel %vm262_vm14, %v260_v3, %v261_v36  ;;  %vm327_vm14 = vcmask 130048  }
 0x5d0   : > { %v242_v41 = vsel %vm241_vm9, %v239_v10, %v240_v24  ;;  %2545 = vmatprep.subr.mxu1 %v2629_v1  ;;  %vm306_vm9 = vcmask 326656  }
 0x5d1   : > { %v244_v18 = vadd.f32 %v242_v41, %v237_v54  ;;  %v253_v56 = vpop.permute.xlu0 %252  ;;  %2537 = vmatpush3.xpose.msk.msra.mxu0 %vm285_vm3, %v3264_v11  ;;  %v318_v6 = vpop.permute.xlu1 %317  ;;  %v307_v3 = vsel %vm306_vm9, %v305_v30, %v304_v53  ;;  %v339_v41 = vadd.s32 4294967289, %v2982_v9 }
 0x5d2   : > { %v254_v35 = vrot.slane %v253_v56, 1  ;;  %2524 = vmatmul.mubr.msk.f32.vlgmr.msra.gmra.mxu1 %vm285_vm3, %v2652_v0  ;;  %2538 = vmatprep.subr.mxu0 %v2629_v1  ;;  %v319_v55 = vrot.slane %v318_v6, 7 }
 0x5d3   : > { %v251_v20 = vadd.f32 %v249_v23, %v244_v18  ;;  %2546 = vmatpush3.xpose.msk.msra.mxu1 %vm285_vm3, %v2998_v43  ;;  %2561 = vmatprep.mubr.msk.f32.mxu1 %vm2642_vm7, %v2629_v1  ;;  %vm292_vm7 = vcmask 457728   ;;  %v345_v18 = vadd.s32 4294967290, %v2982_v9  ;;  %v368_v23 = vadd.s32 4294967292, %v2982_v9 }
 0x5d4   : > { %v256_v60 = vsel %vm255_vm13, %v253_v56, %v254_v35  ;;  %2547 = vmatprep.subr.mxu1 %v2629_v1  ;;  %vm320_vm13 = vcmask 195584   ;;  %v359_v56 = vadd.s32 4294967291, %v2982_v9 }
 0x5d5   : > { %v258_v11 = vadd.f32 %v256_v60, %v251_v20  ;;  %v267_v63 = vpop.permute.xlu0 %266  ;;  %2539 = vmatpush3.xpose.msk.msra.mxu0 %vm285_vm3, %v3274_v42  ;;  %v279_v42 = vsel %vm278_vm0, %v277_v61, %v276_v58  ;;  %v321_v45 = vsel %vm320_vm13, %v319_v55, %v318_v6  ;;  %vm346_vm4 = vcmp.ge.s32.totalorder %v345_v18, 0 }
 0x5d6   : > { %v268_v52 = vrot.slane %v267_v63, 1  ;;  %2540 = vmatprep.subr.mxu0 %v2629_v1  ;;  %vm360_vm5 = vcmp.ge.s32.totalorder %v359_v56, 0 }
 0x5d7   : > { %v265_v44 = vadd.f32 %v263_v29, %v258_v11  ;;  %2548 = vmatpush3.xpose.msk.msra.mxu1 %vm285_vm3, %v3010_v17 }
 0x5d8   : > { %v270_v43 = vsel %vm269_vm15, %v267_v63, %v268_v52  ;;  %2549 = vmatprep.subr.mxu1 %v2629_v1 }
 0x5d9   : > { %v272_v28 = vadd.f32 %v270_v43, %v265_v44  ;;  %v283_v21 = vpop.permute.xlu0 %282  ;;  %2541 = vmatpush3.xpose.msk.msra.mxu0 %vm285_vm3, %v3284_v59  ;;  %v293_v59 = vsel %vm292_vm7, %v291_v39, %v290_v62  ;;  %v377_v62 = vadd.s32 4294967293, %v2982_v9 }
 0x5da   : > { %v284_v38 = vrot.slane %v283_v21, 7 }
 0x5db   : > { %v281_v57 = vadd.f32 %v279_v42, %v272_v28  ;;  %2550 = vmatpush3.xpose.msk.msra.mxu1 %vm285_vm3, %v3018_v40  ;;  %vm378_vm15 = vcmp.ge.s32.totalorder %v377_v62, 0 }
 0x5dc   : > { %v286_v46 = vsel %vm285_vm3, %v284_v38, %v283_v21  ;;  %2551 = vmatprep.subr.mxu1 %v2629_v1  ;;  %2543 = vmatmul.mubr.msk.f32.vlgmr.msra.gmra.mxu0 %vm285_vm3, %v2652_v0 }
 0x5dd   : > { %v288_v17 = vadd.f32 %v286_v46, %v281_v57  ;;  %v297_v16 = vpop.permute.xlu0 %296 }
 0x5de   : > { %v298_v5 = vrot.slane %v297_v16, 7 }
 0x5df   : > { %v295_v32 = vadd.f32 %v293_v59, %v288_v17  ;;  %2552 = vmatpush3.xpose.msk.msra.mxu1 %vm285_vm3, %v3030_v19  ;;  %v414_v59 = vadd.s32 3, %v2982_v9 }
 0x5e0   : > { %v300_v40 = vsel %vm299_vm8, %v298_v5, %v297_v16  ;;  %2553 = vmatprep.subr.mxu1 %v2629_v1  ;;  %v423_v5 = vadd.s32 4, %v2982_v9 }
 0x5e1   : > { %v302_v34 = vadd.f32 %v300_v40, %v295_v32  ;;  %v311_v50 = vpop.permute.xlu0 %310  ;;  %vm416_vm0 = vcmp.lt.s32.totalorder %v414_v59, 8 }
 0x5e2   : > { %v312_v2 = vrot.slane %v311_v50, 7 }
 0x5e3   : > { %v309_v31 = vadd.f32 %v307_v3, %v302_v34  ;;  %2554 = vmatpush3.xpose.msk.msra.mxu1 %vm285_vm3, %v3038_v15  ;;  %v432_v34 = vadd.s32 5, %v2982_v9  ;;  %v441_v3 = vadd.s32 6, %v2982_v9 }
 0x5e4   : > { %v314_v33 = vsel %vm313_vm10, %v312_v2, %v311_v50  ;;  %2555 = vmatprep.subr.mxu1 %v2629_v1 }
 0x5e5   : > { %v316_v25 = vadd.f32 %v314_v33, %v309_v31  ;;  %v325_v19 = vpop.permute.xlu0 %324 }
 0x5e6   : > { %v326_v49 = vrot.slane %v325_v19, 7 }
 0x5e7   : > { %v323_v58 = vadd.f32 %v321_v45, %v316_v25  ;;  %2556 = vmatpush3.xpose.msk.msra.mxu1 %vm285_vm3, %v3050_v26 }
 0x5e8   : > { %v328_v47 = vsel %vm327_vm14, %v326_v49, %v325_v19  ;;  %2557 = vmatprep.subr.mxu1 %v2629_v1 }
 0x5e9   : > { %v330_v10 = vadd.f32 %v328_v47, %v323_v58 }
 0x5eb   : > { %2558 = vmatpush3.xpose.msk.msra.mxu1 %vm285_vm3, %v3060_v27  ;;  %332 = vrot.lane.b32.xlu1 %v330_v10, %s2645_s5 }
 0x5ec   : > { %2559 = vmatprep.subr.mxu1 %v2629_v1 }
 0x5ef   : > { %2560 = vmatpush3.xpose.msk.msra.mxu1 %vm285_vm3, %v3069_v14 }
 0x5f2   : > { %2562 = vmatmul.mubr.msk.f32.vlgmr.msra.gmra.mxu1 %vm285_vm3, %v2652_v0  ;;  %vm340_vm3 = vcmp.ge.s32.totalorder %v339_v41, 0 }
 0x65d   : > { %v333_v15 = vpop.permute.xlu1 %332 }
 0x65e   : > { %v334_v51 = vrot.slane %v333_v15, 1 }
 0x660   : > { %v335_v26 = vsel %vm292_vm7, %v333_v15, %v334_v51  ;;  %vm452_vm7 = vcmp.lt.s32.totalorder %v450_v13, 8 }
 0x661   : > { %337 = vst.msk [vmem:[#allocation3 + $0x1] sm:$0x1] %vm226_vm6, %v335_v26  ;;  %vm369_vm6 = vcmp.ge.s32.totalorder %v368_v23, 0 }
 0x668   : > { %v338_v27 = vld [vmem:[#allocation3 + $0x1] sm:$0x1] }
 0x669   : > { %v353_v1 = vrot.slane %v338_v27, %v352_v7  ;;  %v343_v20 = vsel %vm340_vm3, %v338_v27, 0.0 }
 0x66b   : > { %363 = vrot.lane.b32.xlu1 %v353_v1, %s2653_s15  ;;  %354 = vrot.lane.b32.xlu0 %v353_v1, %s2654_s17 }
 0x66f   : > { %381 = vrot.lane.b32.xlu1 %v353_v1, %s2655_s18  ;;  %372 = vrot.lane.b32.xlu0 %v353_v1, %s2656_s19 }
 0x673   : > { %391 = vrot.lane.b32.xlu1 %v353_v1, %s2657_s20  ;;  %386 = vrot.lane.b32.xlu0 %v353_v1, %s2658_s21 }
 0x677   : > { %404 = vrot.lane.b32.xlu1 %v353_v1, %s2631_s16  ;;  %399 = vrot.lane.b32.xlu0 %v353_v1, %s2659_s22 }
 0x67b   : > { %418 = vrot.lane.b32.xlu1 %v353_v1, %s2660_s23  ;;  %409 = vrot.lane.b32.xlu0 %v353_v1, %s2661_s24 }
 0x67c   : > { %v3862_v4 = vpop.f32.mrf.mxu0 }
 0x67e   : > { %v2506_v7 = vpop.f32.mrf.mxu0 }
 0x67f   : > { %436 = vrot.lane.b32.xlu1 %v353_v1, %s2662_s25  ;;  %427 = vrot.lane.b32.xlu0 %v353_v1, %s2663_s26  ;;  %v2619_v7 = vld [vmem:[%s2711_s14] sm:$0x1] }
 0x683   : > { %454 = vrot.lane.b32.xlu1 %v353_v1, %s2664_s27  ;;  %445 = vrot.lane.b32.xlu0 %v353_v1, %s2665_s28 }
 0x692   : > { %v3864_v14 = vpop.f32.mrf.mxu1 }
 0x694   : > { %v2525_v48 = vpop.f32.mrf.mxu1 }
 0x69c   : > { %v2237_v22 = vpop.f32.mrf.mxu0 }
 0x69d   : > { %v2327_v19 = vadd.f32 1e-07, %v2237_v22 }
 0x69e   : > { %v2544_v0 = vpop.f32.mrf.mxu0 }
 0x69f   : > { %2612 = vrcp.f32 %v2327_v19 }
 0x6ac   : > { %v2613_v0 = vpop.eup %2612 }
 0x6b2   : > { %v2323_v24 = vpop.f32.mrf.mxu1 }
 0x6b3   : > { %v2330_v49 = vadd.f32 1e-07, %v2323_v24 }
 0x6b4   : > { %v2563_v54 = vpop.f32.mrf.mxu1 }
 0x6b5   : > { %2614 = vrcp.f32 %v2330_v49 }
 0x6c2   : > { %v2615_v54 = vpop.eup %2614 }
 0x6dd   : > { %v364_v36 = vpop.permute.xlu1 %363  ;;  %v355_v35 = vpop.permute.xlu0 %354 }
 0x6de   : > { %v357_v60 = vsel %vm346_vm4, %v355_v35, 0.0  ;;  %v366_v63 = vsel %vm360_vm5, %v364_v36, 0.0 }
 0x6df   : > { %v358_v11 = vadd.f32 %v357_v60, %v343_v20 }
 0x6e1   : > { %v382_v29 = vpop.permute.xlu1 %381  ;;  %v373_v61 = vpop.permute.xlu0 %372  ;;  %v367_v52 = vadd.f32 %v366_v63, %v358_v11 }
 0x6e2   : > { %v375_v44 = vsel %vm369_vm6, %v373_v61, 0.0  ;;  %v384_v53 = vsel %vm378_vm15, %v382_v29, 0.0 }
 0x6e3   : > { %v376_v43 = vadd.f32 %v375_v44, %v367_v52 }
 0x6e5   : > { %v392_v28 = vpop.permute.xlu1 %391  ;;  %v387_v21 = vpop.permute.xlu0 %386  ;;  %v385_v42 = vadd.f32 %v384_v53, %v376_v43 }
 0x6e6   : > { %v389_v39 = vsel %vm205_vm1, %v387_v21, 0.0  ;;  %v394_v57 = vsel %vm209_vm11, %v392_v28, 0.0  ;;  %vm425_vm11 = vcmp.lt.s32.totalorder %v423_v5, 8  ;;  %vm434_vm1 = vcmp.lt.s32.totalorder %v432_v34, 8 }
 0x6e7   : > { %v390_v38 = vadd.f32 %v389_v39, %v385_v42 }
 0x6e9   : > { %v405_v46 = vpop.permute.xlu1 %404  ;;  %v400_v17 = vpop.permute.xlu0 %399  ;;  %v395_v16 = vadd.f32 %v394_v57, %v390_v38 }
 0x6ea   : > { %v407_v6 = vsel %vm214_vm12, %v405_v46, 0.0  ;;  %vm443_vm12 = vcmp.lt.s32.totalorder %v441_v3, 8 }
 0x6eb   : > { %v403_v30 = vadd.f32 %v400_v17, %v395_v16 }
 0x6ed   : > { %v408_v32 = vadd.f32 %v407_v6, %v403_v30  ;;  %v419_v40 = vpop.permute.xlu1 %418  ;;  %v410_v37 = vpop.permute.xlu0 %409 }
 0x6ee   : > { %v412_v12 = vsel %vm218_vm2, %v410_v37, 0.0  ;;  %v421_v55 = vsel %vm416_vm0, %v419_v40, 0.0  ;;  %vm2340_vm2 = vcmask 516096  }
 0x6ef   : > { %v413_v50 = vadd.f32 %v412_v12, %v408_v32 }
 0x6f1   : > { %v437_v2 = vpop.permute.xlu1 %436  ;;  %v428_v31 = vpop.permute.xlu0 %427  ;;  %v422_v33 = vadd.f32 %v421_v55, %v413_v50 }
 0x6f2   : > { %v430_v25 = vsel %vm425_vm11, %v428_v31, 0.0  ;;  %v439_v58 = vsel %vm434_vm1, %v437_v2, 0.0 }
 0x6f3   : > { %v431_v45 = vadd.f32 %v430_v25, %v422_v33 }
 0x6f5   : > { %v455_v8 = vpop.permute.xlu1 %454  ;;  %v446_v47 = vpop.permute.xlu0 %445  ;;  %v440_v10 = vadd.f32 %v439_v58, %v431_v45 }
 0x6f6   : > { %v448_v15 = vsel %vm443_vm12, %v446_v47, 0.0  ;;  %v457_v26 = vsel %vm452_vm7, %v455_v8, 0.0 }
 0x6f7   : > { %v449_v51 = vadd.f32 %v448_v15, %v440_v10 }
 0x6f9   : > { %v458_v27 = vadd.f32 %v457_v26, %v449_v51 }
 0x6fb   : > { %v460_v1 = vmul.f32 0.0010405828, %v458_v27 }
 0x6fd   : > { %v461_v9 = vsub.f32 %v460_v1, %v2619_v7 }
 0x6ff   : > { %v462_v48 = vand.u32 2147483647, %v461_v9 }
 0x701   : > { %v463_v22 = vmul.f32 5.0, %v462_v48 }
 0x703   : > { %v464_v24 = vadd.f32 1.0, %v463_v22 }
 0x705   : > { %v2051_v41 = vmul.f32 %v3862_v4, %v464_v24  ;;  %v2154_v18 = vmul.f32 %v3864_v14, %v464_v24 }
 0x707   : > { %v2329_v56 = vmul.f32 %v2613_v0, %v2051_v41  ;;  %v2332_v23 = vmul.f32 %v2615_v54, %v2154_v18 }
 0x709   : > { %v2333_v36 = vmul.f32 2.0, %v2329_v56  ;;  %v2335_v35 = vadd.f32 %v2332_v23, %v2329_v56 }
 0x70b   : > { %v2334_v62 = vmul.f32 %v2333_v36, %v2332_v23  ;;  %v2336_v20 = vadd.f32 1e-07, %v2335_v35 }
 0x70d   : > { %2616 = vrcp.f32 %v2336_v20 }
 0x71a   : > { %v2617_v60 = vpop.eup %2616 }
 0x71b   : > { %v2338_v11 = vmul.f32 %v2617_v60, %v2334_v62 }
 0x71d   : > { %v2339_v63 = vsub.f32 1.0, %v2338_v11 }
 0x71f   : > { %2341 = vst.msk [vmem:[%s153_s29] sm:$0x1] %vm2340_vm2, %v2339_v63 }
 0x720 PF: > { %s12_s9 = sadd.s32 1, %s2626_s9  }
 0x721   : > { %p9_p4 = scmp.ge.s32.totalorder %s12_s9, 4  }
 0x723   :  { %11 = sbr.rel (!%p9_p4) target bundleno = 1 (0x1), region = 61 }

</bundles_post_ra>
